<compile_context>
chip_gen: v7x
topology: tpu7x:2x2x1
jax: 0.10.0
libtpu: 0.0.40
codegen_flags: <defaults>
</compile_context>

<pallas_src>
import functools

import numpy as np
import jax
import jax.numpy as jnp
from jax.experimental import pallas as pl
from jax.experimental.pallas import tpu as pltpu


# ---------------------------------------------------------------------------
# In-kernel helpers
# ---------------------------------------------------------------------------
def _shift_with_fill(x, d, axis, fill, idx):
    """y[..., i, ...] = x[..., i + d, ...] along `axis`; out-of-range -> `fill`.

    `idx` is a pre-built broadcasted_iota along `axis`, hoisted out of the tap loop
    so each tap costs one compare + one select (roll runs on the XLU slot).
    """
    size = x.shape[axis]
    rolled = pltpu.roll(x, shift=(-d) % size, axis=axis)  # rolled[i] = x[(i+d) % size]
    valid = (idx < size - d) if d > 0 else (idx >= -d)
    return jnp.where(valid, rolled, fill)


def _minpool_same(x, win, fill):
    """win x win min-pool, stride 1, constant padding `fill` (same-size output).

    Matches torch: F.pad(min_c(img), [p, win-1-p, p, win-1-p], value=fill) followed
    by -max_pool2d(-., kernel_size=win, stride=1), with p = win // 2.  Separable
    shifted-min; min is exact, so the result is bitwise identical to the reference.
    """
    p = win // 2
    taps = [d for d in range(-p, win - p) if d != 0]
    col = jax.lax.broadcasted_iota(jnp.int32, x.shape, 1)   # hoisted once per axis
    m = x
    for d in taps:                                           # lane (W) pass
        m = jnp.minimum(m, _shift_with_fill(x, d, 1, fill, col))
    row = jax.lax.broadcasted_iota(jnp.int32, x.shape, 0)
    out = m
    for d in taps:                                           # sublane (H) pass
        out = jnp.minimum(out, _shift_with_fill(m, d, 0, fill, row))
    return out


def _boxsum_batched(planes, b_h, b_w):
    """Border-clipped box sums of several (H, W) planes.

    boxsum(z) = B_H @ z @ B_W with banded 0/1 matrices.  All planes are batched into
    two wide MXU matmuls: lane-concat for the H leg, sublane-restack for the W leg
    (instead of 2 small matmuls per plane).
    """
    f32 = jnp.float32
    hh, ww = planes[0].shape
    p = len(planes)
    z = planes[0] if p == 1 else jnp.concatenate(planes, axis=1)        # (H, p*W)
    t = jnp.dot(b_h, z, preferred_element_type=f32)                     # (H, p*W)
    if p > 1:
        t = jnp.concatenate([t[:, i * ww:(i + 1) * ww] for i in range(p)], axis=0)
    s = jnp.dot(t, b_w, preferred_element_type=f32)                     # (p*H, W)
    return [s[i * hh:(i + 1) * hh, :] for i in range(p)]


# ---------------------------------------------------------------------------
# Kernel 1: dark channel of imgPatch = (x + 1) / 2          (one image / grid step)
# ---------------------------------------------------------------------------
def _dark_channel_kernel(x_ref, dark_ref, *, win):
    p_r = (x_ref[0, 0] + 1.0) * 0.5
    p_g = (x_ref[0, 1] + 1.0) * 0.5
    p_b = (x_ref[0, 2] + 1.0) * 0.5
    dmin = jnp.minimum(jnp.minimum(p_r, p_g), p_b)          # (H, W)
    dark_ref[0] = _minpool_same(dmin, win, 1.0)


# ---------------------------------------------------------------------------
# Kernel 2: atmospheric light + transmission + guided filter + radiance recovery
# ---------------------------------------------------------------------------
def _dehaze_kernel(thresh_sm, x_ref, dark_ref, bh_ref, bw_ref, invn_ref, out_ref,
                   *, win, eps, omega, top_num):
    b = pl.program_id(0)
    f32 = jnp.float32

    x_r, x_g, x_b = x_ref[0, 0], x_ref[0, 1], x_ref[0, 2]
    p_r = (x_r + 1.0) * 0.5
    p_g = (x_g + 1.0) * 0.5
    p_b = (x_b + 1.0) * 0.5

    # grayscale guide, matching torch: ((.2989 R + .587 G + .114 B) + 1) / 2
    guide = (0.2989 * x_r + 0.587 * x_g + 0.114 * x_b + 1.0) * 0.5

    # ---- atmospheric light A, fused (threshold masked mean over top-1% dark) ----
    # thresh = top_num-th largest dark value (tiny lax.top_k in the wrapper, values
    # only).  Pixels strictly above thresh are fully selected; pixels equal to it
    # contribute the remaining (top_num - count_gt) slots as their average, so the
    # mass is exactly top_num pixels.  Tie-break differs from torch's sort order at
    # the ~1e-3 level only.
    dark = dark_ref[0]
    th = thresh_sm[b, 0]
    m_gt = (dark > th).astype(f32)
    m_eq = (dark == th).astype(f32)
    cnt_gt = jnp.sum(m_gt)
    cnt_eq = jnp.sum(m_eq)
    w_eq = (float(top_num) - cnt_gt) / jnp.maximum(cnt_eq, 1.0)
    inv_top = 1.0 / float(top_num)

    def masked_mean(p):
        return (jnp.sum(p * m_gt) + w_eq * jnp.sum(p * m_eq)) * inv_top

    a_r = masked_mean(p_r)
    a_g = masked_mean(p_g)
    a_b = masked_mean(p_b)
    inv_ar, inv_ag, inv_ab = 1.0 / a_r, 1.0 / a_g, 1.0 / a_b   # 3 scalar reciprocals

    # raw transmission: 1 - omega * dark_channel(imgPatch / A)   (reciprocal-mult)
    dmin = jnp.minimum(jnp.minimum(p_r * inv_ar, p_g * inv_ag), p_b * inv_ab)
    t_raw = 1.0 - omega * _minpool_same(dmin, win, 1.0)

    # ---- guided filter (radius r, eps); constants come in as VMEM-resident refs ---
    b_h = bh_ref[...]                                   # (H, H) band matrix
    b_w = bw_ref[...]                                   # (W, W) band matrix
    inv_n = invn_ref[...]                               # (H, W) 1 / clipped box count

    s_g, s_t, s_gt, s_gg = _boxsum_batched(
        [guide, t_raw, guide * t_raw, guide * guide], b_h, b_w)
    mean_g = s_g * inv_n
    mean_t = s_t * inv_n
    cov_gt = s_gt * inv_n - mean_g * mean_t
    var_g = s_gg * inv_n - mean_g * mean_g
    a_gf = cov_gt / (var_g + eps)
    b_gf = mean_t - a_gf * mean_g
    s_a, s_b = _boxsum_batched([a_gf, b_gf], b_h, b_w)
    t_dcp = s_a * inv_n * guide + s_b * inv_n

    # ---- J = (imgPatch - A) / T + A  (exact divide; torch has no clamp on T) -----
    inv_t = 1.0 / t_dcp
    out_ref[0, 0] = (p_r - a_r) * inv_t + a_r
    out_ref[0, 1] = (p_g - a_g) * inv_t + a_g
    out_ref[0, 2] = (p_b - a_b) * inv_t + a_b


# ---------------------------------------------------------------------------
# Wrapper
# ---------------------------------------------------------------------------
def _band_and_count(h, w, r):
    """Trace-time constants: banded 0/1 matrices and 1/(clipped window pixel count)."""
    ih = np.arange(h)
    iw = np.arange(w)
    band_h = (np.abs(ih[:, None] - ih[None, :]) <= r).astype(np.float32)
    band_w = (np.abs(iw[:, None] - iw[None, :]) <= r).astype(np.float32)
    cnt_h = np.minimum(ih + r, h - 1) - np.maximum(ih - r, 0) + 1
    cnt_w = np.minimum(iw + r, w - 1) - np.maximum(iw - r, 0) + 1
    cnt = (cnt_h[:, None] * cnt_w[None, :]).astype(np.float32)
    inv_n = (1.0 / cnt).astype(np.float32)
    return band_h, band_w, inv_n


def dcp_dehaze_forward(x, *, win_size=5, r=15, eps=1e-3, omega=0.95):
    """Forward pass of DCPDehazeGenerator.  x: (N, 3, H, W) float32 in [-1, 1]."""
    x = x.astype(jnp.float32)
    n, c, h, w = x.shape
    assert c == 3, "DCPDehazeGenerator forward needs RGB input (3 channels)"
    assert h > 2 * r + 1 and w > 2 * r + 1, "GuidedFilter requires H, W > 2r + 1"

    plane = h * w * 4                                    # bytes of one f32 plane

    def vmem_limit(live_bytes):
        # never below the 32 MiB default, never above v7x's 64 MiB physical VMEM
        return int(min(max(int(live_bytes * 1.5), 32 << 20), 64 << 20))

    batch_parallel = ("parallel",)

    # ---- kernel 1: dark channel of imgPatch --------------------------------
    k1_bytes = plane * (2 * 3 + 2 * 1) + plane * 10      # dbl-buffered blocks + temps
    dark = pl.pallas_call(
        functools.partial(_dark_channel_kernel, win=win_size),
        out_shape=jax.ShapeDtypeStruct((n, h, w), jnp.float32),
        grid_spec=pltpu.PrefetchScalarGridSpec(
            num_scalar_prefetch=0,
            grid=(n,),
            in_specs=[pl.BlockSpec((1, c, h, w), lambda i: (i, 0, 0, 0))],
            out_specs=pl.BlockSpec((1, h, w), lambda i: (i, 0, 0)),
        ),
        compiler_params=pltpu.CompilerParams(
            dimension_semantics=batch_parallel,
            vmem_limit_bytes=vmem_limit(k1_bytes)),
    )(x)

    # ---- top-1% threshold only (no index gather, no re-read of x) ----------
    # TODO(synk): torch's exact descending-sort selection is data dependent; the
    # k-th *value* comes from lax.top_k here and the masked mean is fused in-kernel.
    top_num = max(1, int(0.01 * h * w))
    thresh = jax.lax.top_k(dark.reshape(n, h * w), top_num)[0][:, -1]
    thresh = thresh.reshape(n, 1)                        # (N, 1) for SMEM

    # ---- guided-filter constants (computed once, DMA'd once) ---------------
    band_h, band_w, inv_n = _band_and_count(h, w, r)
    band_h = jnp.asarray(band_h)
    band_w = jnp.asarray(band_w)
    inv_n = jnp.asarray(inv_n)

    # ---- kernel 2: A + transmission + guided filter + dehazed output -------
    k2_bytes = (plane * (2 * 3 + 2 + 2 + 2 * 3)          # x, dark, inv_n, out blocks
                + 3 * 4 * (h * h + w * w)                # band matrices (+ copies)
                + plane * 48)                            # live intermediates
    return pl.pallas_call(
        functools.partial(_dehaze_kernel, win=win_size, eps=eps, omega=omega,
                          top_num=top_num),
        out_shape=jax.ShapeDtypeStruct((n, c, h, w), jnp.float32),
        grid_spec=pltpu.PrefetchScalarGridSpec(
            num_scalar_prefetch=0,
            grid=(n,),
            in_specs=[
                pl.BlockSpec(memory_space=pltpu.MemorySpace.SMEM),     # thresh (N,1)
                pl.BlockSpec((1, c, h, w), lambda i: (i, 0, 0, 0)),    # x
                pl.BlockSpec((1, h, w), lambda i: (i, 0, 0)),          # dark
                pl.BlockSpec((h, h), lambda i: (0, 0)),                # band_h (const)
                pl.BlockSpec((w, w), lambda i: (0, 0)),                # band_w (const)
                pl.BlockSpec((h, w), lambda i: (0, 0)),                # inv_n (const)
            ],
            out_specs=pl.BlockSpec((1, c, h, w), lambda i: (i, 0, 0, 0)),
        ),
        compiler_params=pltpu.CompilerParams(
            dimension_semantics=batch_parallel,
            vmem_limit_bytes=vmem_limit(k2_bytes)),
    )(thresh, x, dark, band_h, band_w, inv_n)


# ---------------------------------------------------------------------------
# Pure-JAX reference (independent implementation: reduce_window + top_k gather)
# ---------------------------------------------------------------------------
def ref_forward(x, *, win_size=5, r=15, eps=1e-3, omega=0.95):
    x = x.astype(jnp.float32)
    n, c, h, w = x.shape
    guide = (0.2989 * x[:, 0] + 0.587 * x[:, 1] + 0.114 * x[:, 2] + 1.0) * 0.5
    p = (x + 1.0) * 0.5

    def dark_channel(img):                       # (N, 3, H, W) -> (N, H, W)
        m = jnp.min(img, axis=1)
        pl_, pr_ = win_size // 2, win_size - 1 - win_size // 2
        mpad = jnp.pad(m, ((0, 0), (pl_, pr_), (pl_, pr_)), constant_values=1.0)
        return jax.lax.reduce_window(
            mpad, jnp.array(jnp.inf, jnp.float32), jax.lax.min,
            (1, win_size, win_size), (1, 1, 1), "VALID")

    dark1 = dark_channel(p)
    # torch-style selection: descending sort / top-k indices, mean of those pixels.
    # (Tie order differs from the kernel's threshold masked mean at the ~1e-3 level.)
    top_num = max(1, int(0.01 * h * w))
    _, idx = jax.lax.top_k(dark1.reshape(n, h * w), top_num)
    gathered = jnp.take_along_axis(p.reshape(n, c, h * w), idx[:, None, :], axis=2)
    a_light = jnp.mean(gathered, axis=2)                      # (N, 3)
    map_a = a_light[:, :, None, None]

    t_raw = 1.0 - omega * dark_channel(p / map_a)             # (N, H, W)

    def boxsum(z):                                            # clipped window sum
        return jax.lax.reduce_window(
            z, jnp.array(0.0, jnp.float32), jax.lax.add,
            (1, 2 * r + 1, 2 * r + 1), (1, 1, 1), [(0, 0), (r, r), (r, r)])

    box_n = boxsum(jnp.ones((n, h, w), jnp.float32))
    mean_g = boxsum(guide) / box_n
    mean_t = boxsum(t_raw) / box_n
    cov_gt = boxsum(guide * t_raw) / box_n - mean_g * mean_t
    var_g = boxsum(guide * guide) / box_n - mean_g * mean_g
    a_gf = cov_gt / (var_g + eps)
    b_gf = mean_t - a_gf * mean_g
    t_dcp = boxsum(a_gf) / box_n * guide + boxsum(b_gf) / box_n
    return (p - map_a) / t_dcp[:, None, :, :] + map_a


if __name__ == "__main__":
    # Small test: batch=2, RGB, 64x128 (GuidedFilter r=15 needs H, W > 31;
    # W=128 keeps the output stores lane-dense).  Inputs in [-1, 1] like a
    # normalized image, as the module expects.
    N, C, H, W = 2, 3, 64, 128
    key = jax.random.PRNGKey(0)
    x = jax.random.uniform(key, (N, C, H, W), jnp.float32, minval=-1.0, maxval=1.0)

    fwd = jax.jit(dcp_dehaze_forward)
    out = jax.block_until_ready(fwd(x))

    ref = jax.block_until_ready(jax.jit(ref_forward)(x))
    assert out.shape == (N, C, H, W)
    max_diff = float(jnp.max(jnp.abs(out - ref)))
    assert jnp.allclose(out, ref, atol=1e-2, rtol=1e-2), (
        f"mismatch vs pure-JAX reference, max abs diff = {max_diff}")

    print("KERNEL_OK")
</pallas_src>

<mosaic_0001>
module attributes {stable_mosaic.version = 11 : i64} {
  func.func @_dark_channel_kernel(%arg0: i32, %arg1: memref<1x3x64x128xf32, #tpu.memory_space<vmem>>, %arg2: memref<1x64x128xf32, #tpu.memory_space<vmem>>) attributes {dimension_semantics = [#tpu.dimension_semantics<parallel>], iteration_bounds = array<i64: 2>, scalar_prefetch = 0 : i64, scratch_operands = 0 : i64, tpu.core_type = #tpu.core_type<tc>, window_params = [{transform_indices = @transform_0, window_bounds = array<i64: 1, 3, 64, 128>}, {transform_indices = @transform_1, window_bounds = array<i64: 1, 64, 128>}]} {
    %c0 = arith.constant 0 : index
    %c0_0 = arith.constant 0 : index
    %c0_1 = arith.constant 0 : index
    %c0_2 = arith.constant 0 : index
    %0 = vector.load %arg1[%c0, %c0_0, %c0_1, %c0_2] : memref<1x3x64x128xf32, #tpu.memory_space<vmem>>, vector<1x1x64x128xf32>
    %1 = vector.shape_cast %0 : vector<1x1x64x128xf32> to vector<64x128xf32>
    %cst = arith.constant 1.000000e+00 : f32
    %2 = vector.broadcast %cst : f32 to vector<64x128xf32>
    %3 = arith.addf %1, %2 : vector<64x128xf32>
    %cst_3 = arith.constant 5.000000e-01 : f32
    %4 = vector.broadcast %cst_3 : f32 to vector<64x128xf32>
    %5 = arith.mulf %3, %4 : vector<64x128xf32>
    %c0_4 = arith.constant 0 : index
    %c1 = arith.constant 1 : index
    %c0_5 = arith.constant 0 : index
    %c0_6 = arith.constant 0 : index
    %6 = vector.load %arg1[%c0_4, %c1, %c0_5, %c0_6] : memref<1x3x64x128xf32, #tpu.memory_space<vmem>>, vector<1x1x64x128xf32>
    %7 = vector.shape_cast %6 : vector<1x1x64x128xf32> to vector<64x128xf32>
    %cst_7 = arith.constant 1.000000e+00 : f32
    %8 = vector.broadcast %cst_7 : f32 to vector<64x128xf32>
    %9 = arith.addf %7, %8 : vector<64x128xf32>
    %cst_8 = arith.constant 5.000000e-01 : f32
    %10 = vector.broadcast %cst_8 : f32 to vector<64x128xf32>
    %11 = arith.mulf %9, %10 : vector<64x128xf32>
    %c0_9 = arith.constant 0 : index
    %c2 = arith.constant 2 : index
    %c0_10 = arith.constant 0 : index
    %c0_11 = arith.constant 0 : index
    %12 = vector.load %arg1[%c0_9, %c2, %c0_10, %c0_11] : memref<1x3x64x128xf32, #tpu.memory_space<vmem>>, vector<1x1x64x128xf32>
    %13 = vector.shape_cast %12 : vector<1x1x64x128xf32> to vector<64x128xf32>
    %cst_12 = arith.constant 1.000000e+00 : f32
    %14 = vector.broadcast %cst_12 : f32 to vector<64x128xf32>
    %15 = arith.addf %13, %14 : vector<64x128xf32>
    %cst_13 = arith.constant 5.000000e-01 : f32
    %16 = vector.broadcast %cst_13 : f32 to vector<64x128xf32>
    %17 = arith.mulf %15, %16 : vector<64x128xf32>
    %18 = arith.minimumf %5, %11 : vector<64x128xf32>
    %19 = arith.minimumf %18, %17 : vector<64x128xf32>
    %20 = tpu.iota {dimensions = array<i32: 1>} : vector<64x128xi32>
    %c2_i32 = arith.constant 2 : i32
    %21 = tpu.dynamic_rotate %19 by %c2_i32 dim 1 : vector<64x128xf32>, i32 -> vector<64x128xf32>
    %c2_i32_14 = arith.constant 2 : i32
    %22 = vector.broadcast %c2_i32_14 : i32 to vector<64x128xi32>
    %23 = arith.cmpi sge, %20, %22 : vector<64x128xi32>
    %cst_15 = arith.constant 1.000000e+00 : f32
    %24 = vector.broadcast %cst_15 : f32 to vector<64x128xf32>
    %25 = arith.select %23, %21, %24 : vector<64x128xi1>, vector<64x128xf32>
    %26 = arith.minimumf %19, %25 : vector<64x128xf32>
    %c1_i32 = arith.constant 1 : i32
    %27 = tpu.dynamic_rotate %19 by %c1_i32 dim 1 : vector<64x128xf32>, i32 -> vector<64x128xf32>
    %c1_i32_16 = arith.constant 1 : i32
    %28 = vector.broadcast %c1_i32_16 : i32 to vector<64x128xi32>
    %29 = arith.cmpi sge, %20, %28 : vector<64x128xi32>
    %cst_17 = arith.constant 1.000000e+00 : f32
    %30 = vector.broadcast %cst_17 : f32 to vector<64x128xf32>
    %31 = arith.select %29, %27, %30 : vector<64x128xi1>, vector<64x128xf32>
    %32 = arith.minimumf %26, %31 : vector<64x128xf32>
    %c127_i32 = arith.constant 127 : i32
    %33 = tpu.dynamic_rotate %19 by %c127_i32 dim 1 : vector<64x128xf32>, i32 -> vector<64x128xf32>
    %c127_i32_18 = arith.constant 127 : i32
    %34 = vector.broadcast %c127_i32_18 : i32 to vector<64x128xi32>
    %35 = arith.cmpi slt, %20, %34 : vector<64x128xi32>
    %cst_19 = arith.constant 1.000000e+00 : f32
    %36 = vector.broadcast %cst_19 : f32 to vector<64x128xf32>
    %37 = arith.select %35, %33, %36 : vector<64x128xi1>, vector<64x128xf32>
    %38 = arith.minimumf %32, %37 : vector<64x128xf32>
    %c126_i32 = arith.constant 126 : i32
    %39 = tpu.dynamic_rotate %19 by %c126_i32 dim 1 : vector<64x128xf32>, i32 -> vector<64x128xf32>
    %c126_i32_20 = arith.constant 126 : i32
    %40 = vector.broadcast %c126_i32_20 : i32 to vector<64x128xi32>
    %41 = arith.cmpi slt, %20, %40 : vector<64x128xi32>
    %cst_21 = arith.constant 1.000000e+00 : f32
    %42 = vector.broadcast %cst_21 : f32 to vector<64x128xf32>
    %43 = arith.select %41, %39, %42 : vector<64x128xi1>, vector<64x128xf32>
    %44 = arith.minimumf %38, %43 : vector<64x128xf32>
    %45 = tpu.iota {dimensions = array<i32: 0>} : vector<64x128xi32>
    %c2_i32_22 = arith.constant 2 : i32
    %46 = tpu.dynamic_rotate %44 by %c2_i32_22 dim 0 : vector<64x128xf32>, i32 -> vector<64x128xf32>
    %c2_i32_23 = arith.constant 2 : i32
    %47 = vector.broadcast %c2_i32_23 : i32 to vector<64x128xi32>
    %48 = arith.cmpi sge, %45, %47 : vector<64x128xi32>
    %cst_24 = arith.constant 1.000000e+00 : f32
    %49 = vector.broadcast %cst_24 : f32 to vector<64x128xf32>
    %50 = arith.select %48, %46, %49 : vector<64x128xi1>, vector<64x128xf32>
    %51 = arith.minimumf %44, %50 : vector<64x128xf32>
    %c1_i32_25 = arith.constant 1 : i32
    %52 = tpu.dynamic_rotate %44 by %c1_i32_25 dim 0 : vector<64x128xf32>, i32 -> vector<64x128xf32>
    %c1_i32_26 = arith.constant 1 : i32
    %53 = vector.broadcast %c1_i32_26 : i32 to vector<64x128xi32>
    %54 = arith.cmpi sge, %45, %53 : vector<64x128xi32>
    %cst_27 = arith.constant 1.000000e+00 : f32
    %55 = vector.broadcast %cst_27 : f32 to vector<64x128xf32>
    %56 = arith.select %54, %52, %55 : vector<64x128xi1>, vector<64x128xf32>
    %57 = arith.minimumf %51, %56 : vector<64x128xf32>
    %c63_i32 = arith.constant 63 : i32
    %58 = tpu.dynamic_rotate %44 by %c63_i32 dim 0 : vector<64x128xf32>, i32 -> vector<64x128xf32>
    %c63_i32_28 = arith.constant 63 : i32
    %59 = vector.broadcast %c63_i32_28 : i32 to vector<64x128xi32>
    %60 = arith.cmpi slt, %45, %59 : vector<64x128xi32>
    %cst_29 = arith.constant 1.000000e+00 : f32
    %61 = vector.broadcast %cst_29 : f32 to vector<64x128xf32>
    %62 = arith.select %60, %58, %61 : vector<64x128xi1>, vector<64x128xf32>
    %63 = arith.minimumf %57, %62 : vector<64x128xf32>
    %c62_i32 = arith.constant 62 : i32
    %64 = tpu.dynamic_rotate %44 by %c62_i32 dim 0 : vector<64x128xf32>, i32 -> vector<64x128xf32>
    %c62_i32_30 = arith.constant 62 : i32
    %65 = vector.broadcast %c62_i32_30 : i32 to vector<64x128xi32>
    %66 = arith.cmpi slt, %45, %65 : vector<64x128xi32>
    %cst_31 = arith.constant 1.000000e+00 : f32
    %67 = vector.broadcast %cst_31 : f32 to vector<64x128xf32>
    %68 = arith.select %66, %64, %67 : vector<64x128xi1>, vector<64x128xf32>
    %69 = arith.minimumf %63, %68 : vector<64x128xf32>
    %c0_32 = arith.constant 0 : index
    %c0_33 = arith.constant 0 : index
    %c0_34 = arith.constant 0 : index
    %70 = vector.load %arg2[%c0_32, %c0_33, %c0_34] : memref<1x64x128xf32, #tpu.memory_space<vmem>>, vector<1x64x128xf32>
    %71 = vector.shape_cast %70 : vector<1x64x128xf32> to vector<64x128xf32>
    %72 = vector.shape_cast %69 : vector<64x128xf32> to vector<1x64x128xf32>
    tpu.vector_store %arg2[%c0_32, %c0_33, %c0_34], %72 {strides = array<i32>} : memref<1x64x128xf32, #tpu.memory_space<vmem>>, vector<1x64x128xf32>,
    return
  }
  func.func @transform_0(%arg0: i32) -> (i32, i32, i32, i32) {
    %c0_i32 = arith.constant 0 : i32
    %c0_i32_0 = arith.constant 0 : i32
    %c0_i32_1 = arith.constant 0 : i32
    %c0_i32_2 = arith.constant 0 : i32
    return %arg0, %c0_i32, %c0_i32_0, %c0_i32_1 : i32, i32, i32, i32
  }
  func.func @transform_1(%arg0: i32) -> (i32, i32, i32) {
    %c0_i32 = arith.constant 0 : i32
    %c0_i32_0 = arith.constant 0 : i32
    %c0_i32_1 = arith.constant 0 : i32
    return %arg0, %c0_i32, %c0_i32_0 : i32, i32, i32
  }
}

module attributes {stable_mosaic.version = 11 : i64} {
  func.func @_dehaze_kernel(%arg0: i32, %arg1: memref<2x1xf32, #tpu.memory_space<smem>>, %arg2: memref<1x3x64x128xf32, #tpu.memory_space<vmem>>, %arg3: memref<1x64x128xf32, #tpu.memory_space<vmem>>, %arg4: memref<64x64xf32, #tpu.memory_space<vmem>>, %arg5: memref<128x128xf32, #tpu.memory_space<vmem>>, %arg6: memref<64x128xf32, #tpu.memory_space<vmem>>, %arg7: memref<1x3x64x128xf32, #tpu.memory_space<vmem>>) attributes {dimension_semantics = [#tpu.dimension_semantics<parallel>], iteration_bounds = array<i64: 2>, scalar_prefetch = 0 : i64, scratch_operands = 0 : i64, tpu.core_type = #tpu.core_type<tc>, window_params = [{transform_indices = @transform_0, window_bounds = array<i64: 2, 1>}, {transform_indices = @transform_1, window_bounds = array<i64: 1, 3, 64, 128>}, {transform_indices = @transform_2, window_bounds = array<i64: 1, 64, 128>}, {pipeline_mode = #tpu.pipeline_mode<synchronous>, transform_indices = @transform_3, window_bounds = array<i64: 64, 64>}, {pipeline_mode = #tpu.pipeline_mode<synchronous>, transform_indices = @transform_4, window_bounds = array<i64: 128, 128>}, {pipeline_mode = #tpu.pipeline_mode<synchronous>, transform_indices = @transform_5, window_bounds = array<i64: 64, 128>}, {transform_indices = @transform_6, window_bounds = array<i64: 1, 3, 64, 128>}]} {
    %c0 = arith.constant 0 : index
    %c0_0 = arith.constant 0 : index
    %c0_1 = arith.constant 0 : index
    %c0_2 = arith.constant 0 : index
    %0 = vector.load %arg2[%c0, %c0_0, %c0_1, %c0_2] : memref<1x3x64x128xf32, #tpu.memory_space<vmem>>, vector<1x1x64x128xf32>
    %1 = vector.shape_cast %0 : vector<1x1x64x128xf32> to vector<64x128xf32>
    %c0_3 = arith.constant 0 : index
    %c1 = arith.constant 1 : index
    %c0_4 = arith.constant 0 : index
    %c0_5 = arith.constant 0 : index
    %2 = vector.load %arg2[%c0_3, %c1, %c0_4, %c0_5] : memref<1x3x64x128xf32, #tpu.memory_space<vmem>>, vector<1x1x64x128xf32>
    %3 = vector.shape_cast %2 : vector<1x1x64x128xf32> to vector<64x128xf32>
    %c0_6 = arith.constant 0 : index
    %c2 = arith.constant 2 : index
    %c0_7 = arith.constant 0 : index
    %c0_8 = arith.constant 0 : index
    %4 = vector.load %arg2[%c0_6, %c2, %c0_7, %c0_8] : memref<1x3x64x128xf32, #tpu.memory_space<vmem>>, vector<1x1x64x128xf32>
    %5 = vector.shape_cast %4 : vector<1x1x64x128xf32> to vector<64x128xf32>
    %cst = arith.constant 1.000000e+00 : f32
    %6 = vector.broadcast %cst : f32 to vector<64x128xf32>
    %7 = arith.addf %1, %6 : vector<64x128xf32>
    %cst_9 = arith.constant 5.000000e-01 : f32
    %8 = vector.broadcast %cst_9 : f32 to vector<64x128xf32>
    %9 = arith.mulf %7, %8 : vector<64x128xf32>
    %cst_10 = arith.constant 1.000000e+00 : f32
    %10 = vector.broadcast %cst_10 : f32 to vector<64x128xf32>
    %11 = arith.addf %3, %10 : vector<64x128xf32>
    %cst_11 = arith.constant 5.000000e-01 : f32
    %12 = vector.broadcast %cst_11 : f32 to vector<64x128xf32>
    %13 = arith.mulf %11, %12 : vector<64x128xf32>
    %cst_12 = arith.constant 1.000000e+00 : f32
    %14 = vector.broadcast %cst_12 : f32 to vector<64x128xf32>
    %15 = arith.addf %5, %14 : vector<64x128xf32>
    %cst_13 = arith.constant 5.000000e-01 : f32
    %16 = vector.broadcast %cst_13 : f32 to vector<64x128xf32>
    %17 = arith.mulf %15, %16 : vector<64x128xf32>
    %cst_14 = arith.constant 2.989000e-01 : f32
    %18 = vector.broadcast %cst_14 : f32 to vector<64x128xf32>
    %19 = arith.mulf %18, %1 : vector<64x128xf32>
    %cst_15 = arith.constant 5.870000e-01 : f32
    %20 = vector.broadcast %cst_15 : f32 to vector<64x128xf32>
    %21 = arith.mulf %20, %3 : vector<64x128xf32>
    %22 = arith.addf %19, %21 : vector<64x128xf32>
    %cst_16 = arith.constant 1.140000e-01 : f32
    %23 = vector.broadcast %cst_16 : f32 to vector<64x128xf32>
    %24 = arith.mulf %23, %5 : vector<64x128xf32>
    %25 = arith.addf %22, %24 : vector<64x128xf32>
    %cst_17 = arith.constant 1.000000e+00 : f32
    %26 = vector.broadcast %cst_17 : f32 to vector<64x128xf32>
    %27 = arith.addf %25, %26 : vector<64x128xf32>
    %cst_18 = arith.constant 5.000000e-01 : f32
    %28 = vector.broadcast %cst_18 : f32 to vector<64x128xf32>
    %29 = arith.mulf %27, %28 : vector<64x128xf32>
    %c0_19 = arith.constant 0 : index
    %c0_20 = arith.constant 0 : index
    %c0_21 = arith.constant 0 : index
    %30 = vector.load %arg3[%c0_19, %c0_20, %c0_21] : memref<1x64x128xf32, #tpu.memory_space<vmem>>, vector<1x64x128xf32>
    %31 = vector.shape_cast %30 : vector<1x64x128xf32> to vector<64x128xf32>
    %32 = arith.index_cast %arg0 : i32 to index
    %c0_22 = arith.constant 0 : index
    %33 = memref.load %arg1[%32, %c0_22] : memref<2x1xf32, #tpu.memory_space<smem>>
    %34 = vector.broadcast %33 : f32 to vector<64x128xf32>
    %35 = arith.cmpf ogt, %31, %34 : vector<64x128xf32>
    %36 = arith.extui %35 : vector<64x128xi1> to vector<64x128xi32>
    %37 = arith.sitofp %36 : vector<64x128xi32> to vector<64x128xf32>
    %38 = vector.broadcast %33 : f32 to vector<64x128xf32>
    %39 = arith.cmpf oeq, %31, %38 : vector<64x128xf32>
    %40 = arith.extui %39 : vector<64x128xi1> to vector<64x128xi32>
    %41 = arith.sitofp %40 : vector<64x128xi32> to vector<64x128xf32>
    %42 = vector.shape_cast %37 : vector<64x128xf32> to vector<1x64x128xf32>
    %cst_23 = arith.constant dense<0.000000e+00> : vector<1xf32>
    %43 = vector.multi_reduction <add>, %42, %cst_23 [1, 2] : vector<1x64x128xf32> to vector<1xf32>
    %44 = vector.shape_cast %43 : vector<1xf32> to vector<1x1x1xf32>
    %45 = vector.extract %44[0, 0, 0] : f32 from vector<1x1x1xf32>
    %46 = vector.shape_cast %41 : vector<64x128xf32> to vector<1x64x128xf32>
    %cst_24 = arith.constant dense<0.000000e+00> : vector<1xf32>
    %47 = vector.multi_reduction <add>, %46, %cst_24 [1, 2] : vector<1x64x128xf32> to vector<1xf32>
    %48 = vector.shape_cast %47 : vector<1xf32> to vector<1x1x1xf32>
    %49 = vector.extract %48[0, 0, 0] : f32 from vector<1x1x1xf32>
    %cst_25 = arith.constant 8.100000e+01 : f32
    %50 = arith.subf %cst_25, %45 : f32
    %cst_26 = arith.constant 1.000000e+00 : f32
    %51 = arith.maximumf %49, %cst_26 : f32
    %52 = arith.divf %50, %51 : f32
    %53 = arith.mulf %9, %37 : vector<64x128xf32>
    %54 = vector.shape_cast %53 : vector<64x128xf32> to vector<1x64x128xf32>
    %cst_27 = arith.constant dense<0.000000e+00> : vector<1xf32>
    %55 = vector.multi_reduction <add>, %54, %cst_27 [1, 2] : vector<1x64x128xf32> to vector<1xf32>
    %56 = vector.shape_cast %55 : vector<1xf32> to vector<1x1x1xf32>
    %57 = vector.extract %56[0, 0, 0] : f32 from vector<1x1x1xf32>
    %58 = arith.mulf %9, %41 : vector<64x128xf32>
    %59 = vector.shape_cast %58 : vector<64x128xf32> to vector<1x64x128xf32>
    %cst_28 = arith.constant dense<0.000000e+00> : vector<1xf32>
    %60 = vector.multi_reduction <add>, %59, %cst_28 [1, 2] : vector<1x64x128xf32> to vector<1xf32>
    %61 = vector.shape_cast %60 : vector<1xf32> to vector<1x1x1xf32>
    %62 = vector.extract %61[0, 0, 0] : f32 from vector<1x1x1xf32>
    %63 = arith.mulf %52, %62 : f32
    %64 = arith.addf %57, %63 : f32
    %cst_29 = arith.constant 0.0123456791 : f32
    %65 = arith.mulf %64, %cst_29 : f32
    %66 = arith.mulf %13, %37 : vector<64x128xf32>
    %67 = vector.shape_cast %66 : vector<64x128xf32> to vector<1x64x128xf32>
    %cst_30 = arith.constant dense<0.000000e+00> : vector<1xf32>
    %68 = vector.multi_reduction <add>, %67, %cst_30 [1, 2] : vector<1x64x128xf32> to vector<1xf32>
    %69 = vector.shape_cast %68 : vector<1xf32> to vector<1x1x1xf32>
    %70 = vector.extract %69[0, 0, 0] : f32 from vector<1x1x1xf32>
    %71 = arith.mulf %13, %41 : vector<64x128xf32>
    %72 = vector.shape_cast %71 : vector<64x128xf32> to vector<1x64x128xf32>
    %cst_31 = arith.constant dense<0.000000e+00> : vector<1xf32>
    %73 = vector.multi_reduction <add>, %72, %cst_31 [1, 2] : vector<1x64x128xf32> to vector<1xf32>
    %74 = vector.shape_cast %73 : vector<1xf32> to vector<1x1x1xf32>
    %75 = vector.extract %74[0, 0, 0] : f32 from vector<1x1x1xf32>
    %76 = arith.mulf %52, %75 : f32
    %77 = arith.addf %70, %76 : f32
    %cst_32 = arith.constant 0.0123456791 : f32
    %78 = arith.mulf %77, %cst_32 : f32
    %79 = arith.mulf %17, %37 : vector<64x128xf32>
    %80 = vector.shape_cast %79 : vector<64x128xf32> to vector<1x64x128xf32>
    %cst_33 = arith.constant dense<0.000000e+00> : vector<1xf32>
    %81 = vector.multi_reduction <add>, %80, %cst_33 [1, 2] : vector<1x64x128xf32> to vector<1xf32>
    %82 = vector.shape_cast %81 : vector<1xf32> to vector<1x1x1xf32>
    %83 = vector.extract %82[0, 0, 0] : f32 from vector<1x1x1xf32>
    %84 = arith.mulf %17, %41 : vector<64x128xf32>
    %85 = vector.shape_cast %84 : vector<64x128xf32> to vector<1x64x128xf32>
    %cst_34 = arith.constant dense<0.000000e+00> : vector<1xf32>
    %86 = vector.multi_reduction <add>, %85, %cst_34 [1, 2] : vector<1x64x128xf32> to vector<1xf32>
    %87 = vector.shape_cast %86 : vector<1xf32> to vector<1x1x1xf32>
    %88 = vector.extract %87[0, 0, 0] : f32 from vector<1x1x1xf32>
    %89 = arith.mulf %52, %88 : f32
    %90 = arith.addf %83, %89 : f32
    %cst_35 = arith.constant 0.0123456791 : f32
    %91 = arith.mulf %90, %cst_35 : f32
    %cst_36 = arith.constant 1.000000e+00 : f32
    %92 = arith.divf %cst_36, %65 : f32
    %cst_37 = arith.constant 1.000000e+00 : f32
    %93 = arith.divf %cst_37, %78 : f32
    %cst_38 = arith.constant 1.000000e+00 : f32
    %94 = arith.divf %cst_38, %91 : f32
    %95 = vector.broadcast %92 : f32 to vector<64x128xf32>
    %96 = arith.mulf %9, %95 : vector<64x128xf32>
    %97 = vector.broadcast %93 : f32 to vector<64x128xf32>
    %98 = arith.mulf %13, %97 : vector<64x128xf32>
    %99 = arith.minimumf %96, %98 : vector<64x128xf32>
    %100 = vector.broadcast %94 : f32 to vector<64x128xf32>
    %101 = arith.mulf %17, %100 : vector<64x128xf32>
    %102 = arith.minimumf %99, %101 : vector<64x128xf32>
    %103 = tpu.iota {dimensions = array<i32: 1>} : vector<64x128xi32>
    %c2_i32 = arith.constant 2 : i32
    %104 = tpu.dynamic_rotate %102 by %c2_i32 dim 1 : vector<64x128xf32>, i32 -> vector<64x128xf32>
    %c2_i32_39 = arith.constant 2 : i32
    %105 = vector.broadcast %c2_i32_39 : i32 to vector<64x128xi32>
    %106 = arith.cmpi sge, %103, %105 : vector<64x128xi32>
    %cst_40 = arith.constant 1.000000e+00 : f32
    %107 = vector.broadcast %cst_40 : f32 to vector<64x128xf32>
    %108 = arith.select %106, %104, %107 : vector<64x128xi1>, vector<64x128xf32>
    %109 = arith.minimumf %102, %108 : vector<64x128xf32>
    %c1_i32 = arith.constant 1 : i32
    %110 = tpu.dynamic_rotate %102 by %c1_i32 dim 1 : vector<64x128xf32>, i32 -> vector<64x128xf32>
    %c1_i32_41 = arith.constant 1 : i32
    %111 = vector.broadcast %c1_i32_41 : i32 to vector<64x128xi32>
    %112 = arith.cmpi sge, %103, %111 : vector<64x128xi32>
    %cst_42 = arith.constant 1.000000e+00 : f32
    %113 = vector.broadcast %cst_42 : f32 to vector<64x128xf32>
    %114 = arith.select %112, %110, %113 : vector<64x128xi1>, vector<64x128xf32>
    %115 = arith.minimumf %109, %114 : vector<64x128xf32>
    %c127_i32 = arith.constant 127 : i32
    %116 = tpu.dynamic_rotate %102 by %c127_i32 dim 1 : vector<64x128xf32>, i32 -> vector<64x128xf32>
    %c127_i32_43 = arith.constant 127 : i32
    %117 = vector.broadcast %c127_i32_43 : i32 to vector<64x128xi32>
    %118 = arith.cmpi slt, %103, %117 : vector<64x128xi32>
    %cst_44 = arith.constant 1.000000e+00 : f32
    %119 = vector.broadcast %cst_44 : f32 to vector<64x128xf32>
    %120 = arith.select %118, %116, %119 : vector<64x128xi1>, vector<64x128xf32>
    %121 = arith.minimumf %115, %120 : vector<64x128xf32>
    %c126_i32 = arith.constant 126 : i32
    %122 = tpu.dynamic_rotate %102 by %c126_i32 dim 1 : vector<64x128xf32>, i32 -> vector<64x128xf32>
    %c126_i32_45 = arith.constant 126 : i32
    %123 = vector.broadcast %c126_i32_45 : i32 to vector<64x128xi32>
    %124 = arith.cmpi slt, %103, %123 : vector<64x128xi32>
    %cst_46 = arith.constant 1.000000e+00 : f32
    %125 = vector.broadcast %cst_46 : f32 to vector<64x128xf32>
    %126 = arith.select %124, %122, %125 : vector<64x128xi1>, vector<64x128xf32>
    %127 = arith.minimumf %121, %126 : vector<64x128xf32>
    %128 = tpu.iota {dimensions = array<i32: 0>} : vector<64x128xi32>
    %c2_i32_47 = arith.constant 2 : i32
    %129 = tpu.dynamic_rotate %127 by %c2_i32_47 dim 0 : vector<64x128xf32>, i32 -> vector<64x128xf32>
    %c2_i32_48 = arith.constant 2 : i32
    %130 = vector.broadcast %c2_i32_48 : i32 to vector<64x128xi32>
    %131 = arith.cmpi sge, %128, %130 : vector<64x128xi32>
    %cst_49 = arith.constant 1.000000e+00 : f32
    %132 = vector.broadcast %cst_49 : f32 to vector<64x128xf32>
    %133 = arith.select %131, %129, %132 : vector<64x128xi1>, vector<64x128xf32>
    %134 = arith.minimumf %127, %133 : vector<64x128xf32>
    %c1_i32_50 = arith.constant 1 : i32
    %135 = tpu.dynamic_rotate %127 by %c1_i32_50 dim 0 : vector<64x128xf32>, i32 -> vector<64x128xf32>
    %c1_i32_51 = arith.constant 1 : i32
    %136 = vector.broadcast %c1_i32_51 : i32 to vector<64x128xi32>
    %137 = arith.cmpi sge, %128, %136 : vector<64x128xi32>
    %cst_52 = arith.constant 1.000000e+00 : f32
    %138 = vector.broadcast %cst_52 : f32 to vector<64x128xf32>
    %139 = arith.select %137, %135, %138 : vector<64x128xi1>, vector<64x128xf32>
    %140 = arith.minimumf %134, %139 : vector<64x128xf32>
    %c63_i32 = arith.constant 63 : i32
    %141 = tpu.dynamic_rotate %127 by %c63_i32 dim 0 : vector<64x128xf32>, i32 -> vector<64x128xf32>
    %c63_i32_53 = arith.constant 63 : i32
    %142 = vector.broadcast %c63_i32_53 : i32 to vector<64x128xi32>
    %143 = arith.cmpi slt, %128, %142 : vector<64x128xi32>
    %cst_54 = arith.constant 1.000000e+00 : f32
    %144 = vector.broadcast %cst_54 : f32 to vector<64x128xf32>
    %145 = arith.select %143, %141, %144 : vector<64x128xi1>, vector<64x128xf32>
    %146 = arith.minimumf %140, %145 : vector<64x128xf32>
    %c62_i32 = arith.constant 62 : i32
    %147 = tpu.dynamic_rotate %127 by %c62_i32 dim 0 : vector<64x128xf32>, i32 -> vector<64x128xf32>
    %c62_i32_55 = arith.constant 62 : i32
    %148 = vector.broadcast %c62_i32_55 : i32 to vector<64x128xi32>
    %149 = arith.cmpi slt, %128, %148 : vector<64x128xi32>
    %cst_56 = arith.constant 1.000000e+00 : f32
    %150 = vector.broadcast %cst_56 : f32 to vector<64x128xf32>
    %151 = arith.select %149, %147, %150 : vector<64x128xi1>, vector<64x128xf32>
    %152 = arith.minimumf %146, %151 : vector<64x128xf32>
    %cst_57 = arith.constant 0.949999988 : f32
    %153 = vector.broadcast %cst_57 : f32 to vector<64x128xf32>
    %154 = arith.mulf %153, %152 : vector<64x128xf32>
    %cst_58 = arith.constant 1.000000e+00 : f32
    %155 = vector.broadcast %cst_58 : f32 to vector<64x128xf32>
    %156 = arith.subf %155, %154 : vector<64x128xf32>
    %c0_59 = arith.constant 0 : index
    %c0_60 = arith.constant 0 : index
    %157 = vector.load %arg4[%c0_59, %c0_60] : memref<64x64xf32, #tpu.memory_space<vmem>>, vector<64x64xf32>
    %c0_61 = arith.constant 0 : index
    %c0_62 = arith.constant 0 : index
    %158 = vector.load %arg5[%c0_61, %c0_62] : memref<128x128xf32, #tpu.memory_space<vmem>>, vector<128x128xf32>
    %c0_63 = arith.constant 0 : index
    %c0_64 = arith.constant 0 : index
    %159 = vector.load %arg6[%c0_63, %c0_64] : memref<64x128xf32, #tpu.memory_space<vmem>>, vector<64x128xf32>
    %160 = arith.mulf %29, %156 : vector<64x128xf32>
    %161 = arith.mulf %29, %29 : vector<64x128xf32>
    %162 = tpu.concatenate %29, %156, %160, %161 in 1 : vector<64x128xf32>, vector<64x128xf32>, vector<64x128xf32>, vector<64x128xf32> -> vector<64x512xf32>
    %cst_65 = arith.constant dense<0.000000e+00> : vector<64x512xf32>
    %163 = tpu.matmul %157, %162, %cst_65 {dimension_numbers = #tpu.dot_dimension_numbers<[1], [0], [0], [1], [0, 0, 1, 1], [], []>} : vector<64x64xf32>, vector<64x512xf32>, vector<64x512xf32> -> vector<64x512xf32>
    %164 = vector.extract_strided_slice %163 {offsets = [0, 0], sizes = [64, 128], strides = [1, 1]} : vector<64x512xf32> to vector<64x128xf32>
    %165 = vector.extract_strided_slice %163 {offsets = [0, 128], sizes = [64, 128], strides = [1, 1]} : vector<64x512xf32> to vector<64x128xf32>
    %166 = vector.extract_strided_slice %163 {offsets = [0, 256], sizes = [64, 128], strides = [1, 1]} : vector<64x512xf32> to vector<64x128xf32>
    %167 = vector.extract_strided_slice %163 {offsets = [0, 384], sizes = [64, 128], strides = [1, 1]} : vector<64x512xf32> to vector<64x128xf32>
    %168 = tpu.concatenate %164, %165, %166, %167 in 0 : vector<64x128xf32>, vector<64x128xf32>, vector<64x128xf32>, vector<64x128xf32> -> vector<256x128xf32>
    %cst_66 = arith.constant dense<0.000000e+00> : vector<256x128xf32>
    %169 = tpu.matmul %168, %158, %cst_66 {dimension_numbers = #tpu.dot_dimension_numbers<[1], [0], [0], [1], [0, 0, 1, 1], [], []>} : vector<256x128xf32>, vector<128x128xf32>, vector<256x128xf32> -> vector<256x128xf32>
    %170 = vector.extract_strided_slice %169 {offsets = [0, 0], sizes = [64, 128], strides = [1, 1]} : vector<256x128xf32> to vector<64x128xf32>
    %171 = vector.extract_strided_slice %169 {offsets = [64, 0], sizes = [64, 128], strides = [1, 1]} : vector<256x128xf32> to vector<64x128xf32>
    %172 = vector.extract_strided_slice %169 {offsets = [128, 0], sizes = [64, 128], strides = [1, 1]} : vector<256x128xf32> to vector<64x128xf32>
    %173 = vector.extract_strided_slice %169 {offsets = [192, 0], sizes = [64, 128], strides = [1, 1]} : vector<256x128xf32> to vector<64x128xf32>
    %174 = arith.mulf %170, %159 : vector<64x128xf32>
    %175 = arith.mulf %171, %159 : vector<64x128xf32>
    %176 = arith.mulf %172, %159 : vector<64x128xf32>
    %177 = arith.mulf %174, %175 : vector<64x128xf32>
    %178 = arith.subf %176, %177 : vector<64x128xf32>
    %179 = arith.mulf %173, %159 : vector<64x128xf32>
    %180 = arith.mulf %174, %174 : vector<64x128xf32>
    %181 = arith.subf %179, %180 : vector<64x128xf32>
    %cst_67 = arith.constant 1.000000e-03 : f32
    %182 = vector.broadcast %cst_67 : f32 to vector<64x128xf32>
    %183 = arith.addf %181, %182 : vector<64x128xf32>
    %184 = arith.divf %178, %183 : vector<64x128xf32>
    %185 = arith.mulf %184, %174 : vector<64x128xf32>
    %186 = arith.subf %175, %185 : vector<64x128xf32>
    %187 = tpu.concatenate %184, %186 in 1 : vector<64x128xf32>, vector<64x128xf32> -> vector<64x256xf32>
    %cst_68 = arith.constant dense<0.000000e+00> : vector<64x256xf32>
    %188 = tpu.matmul %157, %187, %cst_68 {dimension_numbers = #tpu.dot_dimension_numbers<[1], [0], [0], [1], [0, 0, 1, 1], [], []>} : vector<64x64xf32>, vector<64x256xf32>, vector<64x256xf32> -> vector<64x256xf32>
    %189 = vector.extract_strided_slice %188 {offsets = [0, 0], sizes = [64, 128], strides = [1, 1]} : vector<64x256xf32> to vector<64x128xf32>
    %190 = vector.extract_strided_slice %188 {offsets = [0, 128], sizes = [64, 128], strides = [1, 1]} : vector<64x256xf32> to vector<64x128xf32>
    %191 = tpu.concatenate %189, %190 in 0 : vector<64x128xf32>, vector<64x128xf32> -> vector<128x128xf32>
    %cst_69 = arith.constant dense<0.000000e+00> : vector<128x128xf32>
    %192 = tpu.matmul %191, %158, %cst_69 {dimension_numbers = #tpu.dot_dimension_numbers<[1], [0], [0], [1], [0, 0, 1, 1], [], []>} : vector<128x128xf32>, vector<128x128xf32>, vector<128x128xf32> -> vector<128x128xf32>
    %193 = vector.extract_strided_slice %192 {offsets = [0, 0], sizes = [64, 128], strides = [1, 1]} : vector<128x128xf32> to vector<64x128xf32>
    %194 = vector.extract_strided_slice %192 {offsets = [64, 0], sizes = [64, 128], strides = [1, 1]} : vector<128x128xf32> to vector<64x128xf32>
    %195 = arith.mulf %193, %159 : vector<64x128xf32>
    %196 = arith.mulf %195, %29 : vector<64x128xf32>
    %197 = arith.mulf %194, %159 : vector<64x128xf32>
    %198 = arith.addf %196, %197 : vector<64x128xf32>
    %cst_70 = arith.constant 1.000000e+00 : f32
    %199 = vector.broadcast %cst_70 : f32 to vector<64x128xf32>
    %200 = arith.divf %199, %198 : vector<64x128xf32>
    %201 = vector.broadcast %65 : f32 to vector<64x128xf32>
    %202 = arith.subf %9, %201 : vector<64x128xf32>
    %203 = arith.mulf %202, %200 : vector<64x128xf32>
    %204 = vector.broadcast %65 : f32 to vector<64x128xf32>
    %205 = arith.addf %203, %204 : vector<64x128xf32>
    %c0_71 = arith.constant 0 : index
    %c0_72 = arith.constant 0 : index
    %c0_73 = arith.constant 0 : index
    %c0_74 = arith.constant 0 : index
    %206 = vector.load %arg7[%c0_71, %c0_72, %c0_73, %c0_74] : memref<1x3x64x128xf32, #tpu.memory_space<vmem>>, vector<1x1x64x128xf32>
    %207 = vector.shape_cast %206 : vector<1x1x64x128xf32> to vector<64x128xf32>
    %208 = vector.shape_cast %205 : vector<64x128xf32> to vector<1x1x64x128xf32>
    tpu.vector_store %arg7[%c0_71, %c0_72, %c0_73, %c0_74], %208 {strides = array<i32>} : memref<1x3x64x128xf32, #tpu.memory_space<vmem>>, vector<1x1x64x128xf32>,
    %209 = vector.broadcast %78 : f32 to vector<64x128xf32>
    %210 = arith.subf %13, %209 : vector<64x128xf32>
    %211 = arith.mulf %210, %200 : vector<64x128xf32>
    %212 = vector.broadcast %78 : f32 to vector<64x128xf32>
    %213 = arith.addf %211, %212 : vector<64x128xf32>
    %c0_75 = arith.constant 0 : index
    %c1_76 = arith.constant 1 : index
    %c0_77 = arith.constant 0 : index
    %c0_78 = arith.constant 0 : index
    %214 = vector.load %arg7[%c0_75, %c1_76, %c0_77, %c0_78] : memref<1x3x64x128xf32, #tpu.memory_space<vmem>>, vector<1x1x64x128xf32>
    %215 = vector.shape_cast %214 : vector<1x1x64x128xf32> to vector<64x128xf32>
    %216 = vector.shape_cast %213 : vector<64x128xf32> to vector<1x1x64x128xf32>
    tpu.vector_store %arg7[%c0_75, %c1_76, %c0_77, %c0_78], %216 {strides = array<i32>} : memref<1x3x64x128xf32, #tpu.memory_space<vmem>>, vector<1x1x64x128xf32>,
    %217 = vector.broadcast %91 : f32 to vector<64x128xf32>
    %218 = arith.subf %17, %217 : vector<64x128xf32>
    %219 = arith.mulf %218, %200 : vector<64x128xf32>
    %220 = vector.broadcast %91 : f32 to vector<64x128xf32>
    %221 = arith.addf %219, %220 : vector<64x128xf32>
    %c0_79 = arith.constant 0 : index
    %c2_80 = arith.constant 2 : index
    %c0_81 = arith.constant 0 : index
    %c0_82 = arith.constant 0 : index
    %222 = vector.load %arg7[%c0_79, %c2_80, %c0_81, %c0_82] : memref<1x3x64x128xf32, #tpu.memory_space<vmem>>, vector<1x1x64x128xf32>
    %223 = vector.shape_cast %222 : vector<1x1x64x128xf32> to vector<64x128xf32>
    %224 = vector.shape_cast %221 : vector<64x128xf32> to vector<1x1x64x128xf32>
    tpu.vector_store %arg7[%c0_79, %c2_80, %c0_81, %c0_82], %224 {strides = array<i32>} : memref<1x3x64x128xf32, #tpu.memory_space<vmem>>, vector<1x1x64x128xf32>,
    return
  }
  func.func @transform_0(%arg0: i32) -> (i32, i32) {
    %c0_i32 = arith.constant 0 : i32
    %c0_i32_0 = arith.constant 0 : i32
    %c0_i32_1 = arith.constant 0 : i32
    return %c0_i32, %c0_i32_0 : i32, i32
  }
  func.func @transform_1(%arg0: i32) -> (i32, i32, i32, i32) {
    %c0_i32 = arith.constant 0 : i32
    %c0_i32_0 = arith.constant 0 : i32
    %c0_i32_1 = arith.constant 0 : i32
    %c0_i32_2 = arith.constant 0 : i32
    return %arg0, %c0_i32, %c0_i32_0, %c0_i32_1 : i32, i32, i32, i32
  }
  func.func @transform_2(%arg0: i32) -> (i32, i32, i32) {
    %c0_i32 = arith.constant 0 : i32
    %c0_i32_0 = arith.constant 0 : i32
    %c0_i32_1 = arith.constant 0 : i32
    return %arg0, %c0_i32, %c0_i32_0 : i32, i32, i32
  }
  func.func @transform_3(%arg0: i32) -> (i32, i32) {
    %c0_i32 = arith.constant 0 : i32
    %c0_i32_0 = arith.constant 0 : i32
    %c0_i32_1 = arith.constant 0 : i32
    return %c0_i32, %c0_i32_0 : i32, i32
  }
  func.func @transform_4(%arg0: i32) -> (i32, i32) {
    %c0_i32 = arith.constant 0 : i32
    %c0_i32_0 = arith.constant 0 : i32
    %c0_i32_1 = arith.constant 0 : i32
    return %c0_i32, %c0_i32_0 : i32, i32
  }
  func.func @transform_5(%arg0: i32) -> (i32, i32) {
    %c0_i32 = arith.constant 0 : i32
    %c0_i32_0 = arith.constant 0 : i32
    %c0_i32_1 = arith.constant 0 : i32
    return %c0_i32, %c0_i32_0 : i32, i32
  }
  func.func @transform_6(%arg0: i32) -> (i32, i32, i32, i32) {
    %c0_i32 = arith.constant 0 : i32
    %c0_i32_0 = arith.constant 0 : i32
    %c0_i32_1 = arith.constant 0 : i32
    %c0_i32_2 = arith.constant 0 : i32
    return %arg0, %c0_i32, %c0_i32_0, %c0_i32_1 : i32, i32, i32, i32
  }
}

</mosaic_0001>

<bundles_post_ra>
// kernel: dcp_dehaze_forward.2
= control target key start
LH: loop header
LB: loop body
LE: loop exit
PB: predicated region body
PF: predicated region fallthrough
CT: control target
= control target key end

     0   :  { %6 = vsyncpa [#allocation3], 0  ;;  %s1207_s0 = inlined_call_operand.hbm [shape: f32[2,3,64,128], index: 0, kind: input, shape index: {}]   ;;  %s1208_s1 = inlined_call_operand.vmem [shape: f32[2,64,128], index: 1, kind: output, shape index: {}]  }
   0x1   :  { %8 = vsyncpa [#allocation3 + $0x1], 0  ;;  %s766_s6 = smov 0   ;;  %s768_s7 = smov 0  }
   0x2   :  { %s770_s8 = smov 0   ;;  %s772_s9 = smov 0  }
   0x3 LB: > { %s785_s10 = sadd.s32 4294967295, %s747_s9   ;;  %s788_s11 = sadd.s32 1, %s747_s9   ;;  %s747_s9 = sphi %s772_s9, %s1215_s9   ;;  %s743_s8 = sphi %s770_s8, %s1214_s8   ;;  %s739_s7 = sphi %s768_s7, %s1213_s7   ;;  %s735_s6 = sphi %s766_s6, %s1212_s6  }
   0x4   : > { %s18_s12 = ssub.s32 %s747_s9, %s788_s11  ;;  %s21_s13 = sadd.s32 1, %s743_s8 }
   0x5   : > { %p19_p0 = scmp.eq.s32.totalorder %s18_s12, 0  ;;  %p28_p1 = scmp.ne.s32.totalorder %s743_s8, %s739_s7 }
   0x6   : > { %p29_p2 = scmp.eq.s32.totalorder %s747_s9, 0  ;;  %p34_p3 = scmp.ne.s32.totalorder %s739_s7, %s735_s6 }
   0x7   : > { %s798_s14 = scalar_select %p19_p0, %s743_s8, %s21_s13  }
   0x8   : > { %p30_p4 = por %p29_p2, %p28_p1  ;;  %p35_p5 = scmp.eq.s32.totalorder %s785_s10, 0 }
   0x9   : > { %p644_p6 = scmp.lt.s32.totalorder %s747_s9, 2  ;;  %s84_s16 = sand.u32 1, %s743_s8  }
   0xa   : > { %p802_p7 = por %p35_p5, %p34_p3  ;;  %s635_s17 = smul.u32 192, %s84_s16 }
   0xb   : > { %s636_s18 = smul.u32 3072, %s747_s9  ;;  %p808_p8 = pnand %p644_p6, %p30_p4 }
   0xc   : > { %s88_s23 = scalar_lea.vmem [#allocation2], %s635_s17  ;;  %s820_s25 = scalar_lea.sflag [#allocation3], %s84_s16 }
   0xd   : > { %s815_s22 = scalar_lea.hbm %s1207_s0, %s636_s18  ;;  %s95_s24 = sshll.u32 %s88_s23, 4  ;;  %s817_s24 = int_to_ptr.vmem [resolvable:$true] %s95_s24 }
   0xe   : > { %s683_s26 = scalar_lea.hbm %s815_s22, 3072  ;;  %p685_p11 = pneg %p808_p8 }
   0xf   : > { %p684_p10 = scmp.ne.s32.totalorder %s815_s22, %s683_s26  ;;  %s688_s29 = scalar_lea.hbm %s1207_s0, 6144 }
  0x10   : > { %p689_p0 = scmp.lt.u32.totalorder %s815_s22, %s1207_s0  ;;  %p690_p1 = scmp.lt.u32.totalorder %s688_s29, %s683_s26 }
  0x11   : > { %p686_p12 = pnand %p685_p11, %p684_p10  ;;  %p692_p3 = scmp.lt.u32.totalorder %s683_s26, %s815_s22 }
  0x12   : > { %p691_p2 = por %p690_p1, %p689_p0 }
  0x13   : > { %p687_p13 = pneg %p686_p12 }
  0x14   : > { %p693_p4 = por %p692_p3, %p691_p2 }
  0x16   : > { %p694_p5 = pnand %p693_p4, %p687_p13 }
  0x18   : > { %697 = shalt.err (!%p694_p5)
}
  0x19   : > { %s698_s3 = scalar_lea.vmem %s817_s24, 3072  ;;  %s749_s4 = smov [#allocation2]  }
  0x1a   : > { %p699_p6 = scmp.ne.s32.totalorder %s817_s24, %s698_s3  ;;  %s703_s5 = sshll.u32 %s749_s4, 4  ;;  %s704_s5 = int_to_ptr.vmem [resolvable:$false] %s703_s5 }
  0x1b   : > { %s705_s6 = scalar_lea.vmem %s704_s5, 6144  ;;  %p706_p9 = scmp.lt.s32.totalorder %s817_s24, %s704_s5 }
  0x1c   : > { %p701_p10 = pnand %p699_p6, %p685_p11  ;;  %p707_p0 = scmp.lt.s32.totalorder %s705_s6, %s698_s3 }
  0x1e   : > { %p702_p12 = pneg %p701_p10  ;;  %p708_p1 = por %p707_p0, %p706_p9 }
  0x20   : > { %p709_p2 = pnand %p708_p1, %p702_p12 }
  0x22   : > { %712 = shalt.err (!%p709_p2)
}
  0x23   : > { %s750_s12 = smov 128   ;;  %s751_s13 = smov 8  }
  0x24   : > { %643 = dma.hbm_to_vmem [thread:$0]  (!%p808_p8), %s815_s22, 3072, %s817_s24, %s820_s25, %s750_s12, %s750_s12, %s751_s13  }
  0x25   : > { %p103_p11 = scmp.lt.s32.totalorder %s747_s9, 3  ;;  %p1211_p13 = scmp.ge.s32.totalorder %s747_s9, 1 }
  0x27   : > { %p104_p3 = pnand %p1211_p13, %p103_p11 }
  0x28   : > { %s109_s16 = sand.u32 (!%p104_p3), 1, %s739_s7  }
  0x29   : > { %107 = sbr.rel (%p104_p3) target bundleno = 258 (0x102), region = 24  ;;  %s110_s18 = scalar_lea.sflag (!%p104_p3), [#allocation3], %s109_s16 }
  0x2a   : > { %s637_s17 = smul.u32 (!%p104_p3), 192, %s109_s16 }
  0x2c   : > { %s852_s20 = scalar_lea.vmem (!%p104_p3), [#allocation2], %s637_s17 }
  0x30   : > { %730 = dma.done.wait (%p802_p7), %s110_s18, 3072  }
  0x31   : > { %732 = vsyncadd (%p802_p7), %s110_s18, 4294964224  ;;  %v138_v0 = vld [vmem:[%s852_s20 + $0x8] sm:$0xff]  ;;  %v137_v6 = vld [vmem:[%s852_s20] sm:$0xff]  ;;  %s752_s9 = smov 2   ;;  %s753_s15 = smov 1  }
  0x32   : > { %v617_v1 = vld [vmem:[%s852_s20 + $0x48] sm:$0xff]  ;;  %v146_v3 = vadd.f32 1.0, %v138_v0  ;;  %v616_v7 = vld [vmem:[%s852_s20 + $0x40] sm:$0xff]  ;;  %v145_v9 = vadd.f32 1.0, %v137_v6  ;;  %v139_v12 = vld [vmem:[%s852_s20 + $0x10] sm:$0xff]  ;;  %s754_s19 = smov 127  }
  0x33   : > { %v625_v2 = vld [vmem:[%s852_s20 + $0x88] sm:$0xff]  ;;  %v171_v4 = vadd.f32 1.0, %v617_v1  ;;  %v624_v8 = vld [vmem:[%s852_s20 + $0x80] sm:$0xff]  ;;  %v170_v10 = vadd.f32 1.0, %v616_v7  ;;  %v618_v13 = vld [vmem:[%s852_s20 + $0x50] sm:$0xff]  ;;  %v147_v18 = vadd.f32 1.0, %v139_v12 }
  0x34   : > { %v196_v5 = vadd.f32 1.0, %v625_v2  ;;  %v195_v11 = vadd.f32 1.0, %v624_v8  ;;  %v626_v14 = vld [vmem:[%s852_s20 + $0x90] sm:$0xff]  ;;  %v154_v15 = vmul.f32 0.5, %v146_v3  ;;  %v144_v19 = vld [vmem:[%s852_s20 + $0x38] sm:$0xff]  ;;  %v153_v21 = vmul.f32 0.5, %v145_v9 }
  0x35   : > { %v179_v16 = vmul.f32 0.5, %v171_v4  ;;  %v623_v20 = vld [vmem:[%s852_s20 + $0x78] sm:$0xff]  ;;  %v178_v22 = vmul.f32 0.5, %v170_v10  ;;  %v172_v24 = vadd.f32 1.0, %v618_v13  ;;  %v141_v26 = vld [vmem:[%s852_s20 + $0x20] sm:$0xff]  ;;  %v155_v28 = vmul.f32 0.5, %v147_v18 }
  0x36   : > { %v204_v17 = vmul.f32 0.5, %v196_v5  ;;  %v203_v23 = vmul.f32 0.5, %v195_v11  ;;  %v631_v25 = vld [vmem:[%s852_s20 + $0xb8] sm:$0xff]  ;;  %v197_v29 = vadd.f32 1.0, %v626_v14  ;;  %v152_v30 = vadd.f32 1.0, %v144_v19  ;;  %v620_v35 = vld [vmem:[%s852_s20 + $0x60] sm:$0xff] }
  0x37   : > { %v212_v27 = vmin.f32 %v154_v15, %v179_v16  ;;  %v211_v31 = vmin.f32 %v153_v21, %v178_v22  ;;  %v180_v32 = vmul.f32 0.5, %v172_v24  ;;  %v177_v33 = vadd.f32 1.0, %v623_v20  ;;  %v628_v36 = vld [vmem:[%s852_s20 + $0xa0] sm:$0xff]  ;;  %v140_v37 = vld [vmem:[%s852_s20 + $0x18] sm:$0xff]  ;;  %v143_v48 = vld [vmem:[%s852_s20 + $0x30] sm:$0xff]  ;;  %s755_s21 = smov 126  }
  0x38   : > { %v202_v34 = vadd.f32 1.0, %v631_v25  ;;  %v205_v39 = vmul.f32 0.5, %v197_v29  ;;  %v160_v40 = vmul.f32 0.5, %v152_v30  ;;  %v149_v41 = vadd.f32 1.0, %v141_v26  ;;  %v619_v42 = vld [vmem:[%s852_s20 + $0x58] sm:$0xff]  ;;  %v622_v53 = vld [vmem:[%s852_s20 + $0x70] sm:$0xff] }
  0x39   : > { %v874_v38 = vmin.f32 %v212_v27, %v204_v17  ;;  %v627_v43 = vld [vmem:[%s852_s20 + $0x98] sm:$0xff]  ;;  %v878_v44 = vmin.f32 %v211_v31, %v203_v23  ;;  %v213_v45 = vmin.f32 %v155_v28, %v180_v32  ;;  %v185_v46 = vmul.f32 0.5, %v177_v33  ;;  %v630_v58 = vld [vmem:[%s852_s20 + $0xb0] sm:$0xff]  ;;  %v142_v59 = vld [vmem:[%s852_s20 + $0x28] sm:$0xff]  ;;  %p132_p7 = scmp.lt.s32.totalorder %s785_s10, 1 }
  0x3a   : > { %v210_v47 = vmul.f32 0.5, %v202_v34  ;;  %v157_v49 = vmul.f32 0.5, %v149_v41  ;;  %v174_v50 = vadd.f32 1.0, %v620_v35  ;;  %v199_v51 = vadd.f32 1.0, %v628_v36  ;;  %v621_v0 = vld [vmem:[%s852_s20 + $0x68] sm:$0xff] }
  0x3b   : > { %231 = vrot.lane.b32.xlu1 %v874_v38, %s752_s9  ;;  %v148_v52 = vadd.f32 1.0, %v140_v37  ;;  %229 = vrot.lane.b32.xlu0 %v878_v44, %s752_s9  ;;  %v886_v54 = vmin.f32 %v213_v45, %v205_v39  ;;  %v218_v55 = vmin.f32 %v160_v40, %v185_v46  ;;  %v173_v56 = vadd.f32 1.0, %v619_v42  ;;  %v629_v1 = vld [vmem:[%s852_s20 + $0xa8] sm:$0xff]  ;;  %s1217_s10 = smov (!%p132_p7, %s785_s10), 1 }
  0x3c   : > { %v198_v57 = vadd.f32 1.0, %v627_v43  ;;  %v182_v60 = vmul.f32 0.5, %v174_v50  ;;  %v207_v61 = vmul.f32 0.5, %v199_v51  ;;  %v151_v63 = vadd.f32 1.0, %v143_v48  ;;  %s634_s22 = sshll.u32 %s1217_s10, 6 }
  0x3d   : > { %v156_v62 = vmul.f32 0.5, %v148_v52  ;;  %v892_v2 = vmin.f32 %v218_v55, %v210_v47  ;;  %v181_v3 = vmul.f32 0.5, %v173_v56  ;;  %v176_v5 = vadd.f32 1.0, %v622_v53  ;;  %s1101_s24 = scalar_lea.vmem %s1208_s1, %s634_s22 }
  0x3e   : > { %v206_v4 = vmul.f32 0.5, %v198_v57  ;;  %v215_v6 = vmin.f32 %v157_v49, %v182_v60  ;;  %v159_v7 = vmul.f32 0.5, %v151_v63  ;;  %v201_v8 = vadd.f32 1.0, %v630_v58 }
  0x3f   : > { %233 = vrot.lane.b32.xlu1 %v886_v54, %s752_s9  ;;  %v150_v9 = vadd.f32 1.0, %v142_v59  ;;  %243 = vrot.lane.b32.xlu0 %v892_v2, %s752_s9  ;;  %v214_v10 = vmin.f32 %v156_v62, %v181_v3  ;;  %v184_v11 = vmul.f32 0.5, %v176_v5  ;;  %v175_v12 = vadd.f32 1.0, %v621_v0 }
  0x40   : > { %v200_v13 = vadd.f32 1.0, %v629_v1  ;;  %v898_v14 = vmin.f32 %v215_v6, %v207_v61  ;;  %v209_v15 = vmul.f32 0.5, %v201_v8  ;;  %v227_v39 = vlaneseq }
  0x41   : > { %v158_v16 = vmul.f32 0.5, %v150_v9  ;;  %v900_v17 = vmin.f32 %v214_v10, %v206_v4  ;;  %v217_v18 = vmin.f32 %v159_v7, %v184_v11  ;;  %v183_v19 = vmul.f32 0.5, %v175_v12 }
  0x42   : > { %v208_v20 = vmul.f32 0.5, %v200_v13  ;;  %v938_v42 = vand.u32 127, %v227_v39  ;;  %v941_v47 = vshrl.u32 %v227_v39, 7 }
  0x43   : > { %237 = vrot.lane.b32.xlu1 %v898_v14, %s752_s9  ;;  %235 = vrot.lane.b32.xlu0 %v900_v17, %s752_s9  ;;  %v906_v21 = vmin.f32 %v217_v18, %v209_v15  ;;  %v216_v22 = vmin.f32 %v158_v16, %v183_v19 }
  0x44   : > { %vm245_vm0 = vcmp.ge.s32.totalorder %v938_v42, 2  ;;  %vm278_vm1 = vcmp.ge.s32.totalorder %v938_v42, 1  ;;  %vm311_vm2 = vcmp.lt.s32.totalorder %v938_v42, 127  ;;  %vm344_vm3 = vcmp.lt.s32.totalorder %v938_v42, 126 }
  0x45   : > { %v908_v23 = vmin.f32 %v216_v22, %v208_v20  ;;  %v951_v53 = vadd.s32 56, %v941_v47  ;;  %vm378_vm4 = vcmp.lt.s32.totalorder %v941_v47, 2  ;;  %vm387_vm5 = vcmp.ge.s32.totalorder %v941_v47, 2 }
  0x46   : > { %vm419_vm6 = vcmp.lt.s32.totalorder %v941_v47, 1  ;;  %vm428_vm7 = vcmp.ge.s32.totalorder %v941_v47, 1  ;;  %vm460_vm8 = vcmp.lt.s32.totalorder %v941_v47, 7  ;;  %vm501_vm9 = vcmp.lt.s32.totalorder %v941_v47, 6 }
  0x47   : > { %241 = vrot.lane.b32.xlu1 %v906_v21, %s752_s9  ;;  %239 = vrot.lane.b32.xlu0 %v908_v23, %s752_s9  ;;  %vm476_vm10 = vcmp.lt.s32.totalorder %v951_v53, 63  ;;  %vm517_vm11 = vcmp.lt.s32.totalorder %v951_v53, 62 }
  0x4b   : > { %276 = vrot.lane.b32.xlu1 %v892_v2, %s753_s15  ;;  %262 = vrot.lane.b32.xlu0 %v878_v44, %s753_s15 }
  0x4f   : > { %266 = vrot.lane.b32.xlu1 %v886_v54, %s753_s15  ;;  %264 = vrot.lane.b32.xlu0 %v874_v38, %s753_s15 }
  0x53   : > { %270 = vrot.lane.b32.xlu1 %v898_v14, %s753_s15  ;;  %268 = vrot.lane.b32.xlu0 %v900_v17, %s753_s15 }
  0x57   : > { %274 = vrot.lane.b32.xlu1 %v906_v21, %s753_s15  ;;  %272 = vrot.lane.b32.xlu0 %v908_v23, %s753_s15 }
  0x5b   : > { %309 = vrot.lane.b32.xlu1 %v892_v2, %s754_s19  ;;  %295 = vrot.lane.b32.xlu0 %v878_v44, %s754_s19 }
  0x5f   : > { %299 = vrot.lane.b32.xlu1 %v886_v54, %s754_s19  ;;  %297 = vrot.lane.b32.xlu0 %v874_v38, %s754_s19 }
  0x63   : > { %303 = vrot.lane.b32.xlu1 %v898_v14, %s754_s19  ;;  %301 = vrot.lane.b32.xlu0 %v900_v17, %s754_s19 }
  0x67   : > { %307 = vrot.lane.b32.xlu1 %v906_v21, %s754_s19  ;;  %305 = vrot.lane.b32.xlu0 %v908_v23, %s754_s19 }
  0x6b   : > { %342 = vrot.lane.b32.xlu1 %v892_v2, %s755_s21  ;;  %328 = vrot.lane.b32.xlu0 %v878_v44, %s755_s21 }
  0x6f   : > { %332 = vrot.lane.b32.xlu1 %v886_v54, %s755_s21  ;;  %330 = vrot.lane.b32.xlu0 %v874_v38, %s755_s21 }
  0x73   : > { %336 = vrot.lane.b32.xlu1 %v898_v14, %s755_s21  ;;  %334 = vrot.lane.b32.xlu0 %v900_v17, %s755_s21 }
  0x77   : > { %340 = vrot.lane.b32.xlu1 %v906_v21, %s755_s21  ;;  %338 = vrot.lane.b32.xlu0 %v908_v23, %s755_s21 }
  0xad   : > { %v232_v24 = vpop.permute.xlu1 %231  ;;  %v230_v25 = vpop.permute.xlu0 %229 }
  0xae   : > { %v247_v49 = vsel %vm245_vm0, %v232_v24, 1.0  ;;  %v246_v56 = vsel %vm245_vm0, %v230_v25, 1.0 }
  0xaf   : > { %v255_v55 = vmin.f32 %v874_v38, %v247_v49  ;;  %v254_v3 = vmin.f32 %v878_v44, %v246_v56 }
  0xb1   : > { %v234_v26 = vpop.permute.xlu1 %233  ;;  %v244_v27 = vpop.permute.xlu0 %243 }
  0xb2   : > { %v253_v50 = vsel %vm245_vm0, %v244_v27, 1.0  ;;  %v248_v57 = vsel %vm245_vm0, %v234_v26, 1.0 }
  0xb3   : > { %v261_v59 = vmin.f32 %v892_v2, %v253_v50  ;;  %v256_v4 = vmin.f32 %v886_v54, %v248_v57 }
  0xb5   : > { %v238_v28 = vpop.permute.xlu1 %237  ;;  %v236_v29 = vpop.permute.xlu0 %235 }
  0xb6   : > { %v250_v58 = vsel %vm245_vm0, %v238_v28, 1.0  ;;  %v249_v60 = vsel %vm245_vm0, %v236_v29, 1.0 }
  0xb7   : > { %v258_v5 = vmin.f32 %v898_v14, %v250_v58  ;;  %v257_v8 = vmin.f32 %v900_v17, %v249_v60 }
  0xb9   : > { %v242_v30 = vpop.permute.xlu1 %241  ;;  %v240_v31 = vpop.permute.xlu0 %239 }
  0xba   : > { %v252_v61 = vsel %vm245_vm0, %v242_v30, 1.0  ;;  %v251_v62 = vsel %vm245_vm0, %v240_v31, 1.0 }
  0xbb   : > { %v260_v9 = vmin.f32 %v906_v21, %v252_v61  ;;  %v259_v54 = vmin.f32 %v908_v23, %v251_v62 }
  0xbd   : > { %v277_v32 = vpop.permute.xlu1 %276  ;;  %v263_v33 = vpop.permute.xlu0 %262 }
  0xbe   : > { %v286_v38 = vsel %vm278_vm1, %v277_v32, 1.0  ;;  %v279_v63 = vsel %vm278_vm1, %v263_v33, 1.0 }
  0xbf   : > { %v294_v10 = vmin.f32 %v261_v59, %v286_v38  ;;  %v287_v11 = vmin.f32 %v254_v3, %v279_v63 }
  0xc1   : > { %v267_v34 = vpop.permute.xlu1 %266  ;;  %v265_v35 = vpop.permute.xlu0 %264 }
  0xc2   : > { %v281_v0 = vsel %vm278_vm1, %v267_v34, 1.0  ;;  %v280_v1 = vsel %vm278_vm1, %v265_v35, 1.0 }
  0xc3   : > { %v289_v12 = vmin.f32 %v256_v4, %v281_v0  ;;  %v288_v13 = vmin.f32 %v255_v55, %v280_v1 }
  0xc5   : > { %v271_v36 = vpop.permute.xlu1 %270  ;;  %v269_v37 = vpop.permute.xlu0 %268 }
  0xc6   : > { %v283_v14 = vsel %vm278_vm1, %v271_v36, 1.0  ;;  %v282_v15 = vsel %vm278_vm1, %v269_v37, 1.0 }
  0xc7   : > { %v291_v28 = vmin.f32 %v258_v5, %v283_v14  ;;  %v1009_v29 = vmin.f32 %v257_v8, %v282_v15 }
  0xc9   : > { %v275_v40 = vpop.permute.xlu1 %274  ;;  %v273_v41 = vpop.permute.xlu0 %272 }
  0xca   : > { %v285_v16 = vsel %vm278_vm1, %v275_v40, 1.0  ;;  %v284_v19 = vsel %vm278_vm1, %v273_v41, 1.0 }
  0xcb   : > { %v1011_v30 = vmin.f32 %v260_v9, %v285_v16  ;;  %v1015_v32 = vmin.f32 %v259_v54, %v284_v19 }
  0xcd   : > { %v310_v43 = vpop.permute.xlu1 %309  ;;  %v296_v45 = vpop.permute.xlu0 %295 }
  0xce   : > { %v319_v6 = vsel %vm311_vm2, %v310_v43, 1.0  ;;  %v312_v44 = vsel %vm311_vm2, %v296_v45, 1.0 }
  0xcf   : > { %v327_v17 = vmin.f32 %v294_v10, %v319_v6  ;;  %v320_v20 = vmin.f32 %v287_v11, %v312_v44 }
  0xd1   : > { %v300_v46 = vpop.permute.xlu1 %299  ;;  %v298_v48 = vpop.permute.xlu0 %297 }
  0xd2   : > { %v314_v21 = vsel %vm311_vm2, %v300_v46, 1.0  ;;  %v313_v24 = vsel %vm311_vm2, %v298_v48, 1.0 }
  0xd3   : > { %v322_v33 = vmin.f32 %v289_v12, %v314_v21  ;;  %v321_v37 = vmin.f32 %v288_v13, %v313_v24 }
  0xd5   : > { %v304_v51 = vpop.permute.xlu1 %303  ;;  %v302_v52 = vpop.permute.xlu0 %301 }
  0xd6   : > { %v316_v25 = vsel %vm311_vm2, %v304_v51, 1.0  ;;  %v315_v45 = vsel %vm311_vm2, %v302_v52, 1.0 }
  0xd7   : > { %v324_v39 = vmin.f32 %v291_v28, %v316_v25  ;;  %v323_v0 = vmin.f32 %v1009_v29, %v315_v45 }
  0xd9   : > { %v308_v2 = vpop.permute.xlu1 %307  ;;  %v306_v7 = vpop.permute.xlu0 %305 }
  0xda   : > { %v318_v46 = vsel %vm311_vm2, %v308_v2, 1.0  ;;  %v1032_v50 = vsel %vm311_vm2, %v306_v7, 1.0 }
  0xdb   : > { %v326_v1 = vmin.f32 %v1011_v30, %v318_v46  ;;  %v325_v3 = vmin.f32 %v1015_v32, %v1032_v50 }
  0xdd   : > { %v343_v18 = vpop.permute.xlu1 %342  ;;  %v329_v23 = vpop.permute.xlu0 %328 }
  0xde   : > { %v352_v22 = vsel %vm344_vm3, %v343_v18, 1.0  ;;  %v345_v27 = vsel %vm344_vm3, %v329_v23, 1.0 }
  0xdf   : > { %v1005_v26 = vmin.f32 %v327_v17, %v352_v22  ;;  %v1013_v31 = vmin.f32 %v320_v20, %v345_v27 }
  0xe1   : > { %v377_v34 = vrot.slane %v1005_v26, 6  ;;  %v418_v35 = vrot.slane %v1005_v26, 7  ;;  %v333_v36 = vpop.permute.xlu1 %332  ;;  %v370_v40 = vrot.slane %v1013_v31, 6  ;;  %v411_v41 = vrot.slane %v1013_v31, 7  ;;  %v331_v43 = vpop.permute.xlu0 %330 }
  0xe2   : > { %v347_v48 = vsel %vm344_vm3, %v333_v36, 1.0  ;;  %v346_v49 = vsel %vm344_vm3, %v331_v43, 1.0  ;;  %v459_v51 = vrot.slane %v1005_v26, 1  ;;  %v500_v52 = vrot.slane %v1005_v26, 2 }
  0xe3   : > { %v386_v55 = vsel %vm378_vm4, %v377_v34, %v370_v40  ;;  %v427_v57 = vsel %vm419_vm6, %v418_v35, %v411_v41  ;;  %v452_v58 = vrot.slane %v1013_v31, 1  ;;  %v493_v59 = vrot.slane %v1013_v31, 2 }
  0xe4   : > { %v395_v56 = vsel %vm387_vm5, %v386_v55, 1.0  ;;  %v1049_v38 = vmin.f32 %v322_v33, %v347_v48  ;;  %v354_v62 = vmin.f32 %v321_v37, %v346_v49  ;;  %v436_v4 = vsel %vm428_vm7, %v427_v57, 1.0 }
  0xe5   : > { %v337_v60 = vpop.permute.xlu1 %336  ;;  %v403_v61 = vmin.f32 %v1013_v31, %v395_v56  ;;  %v335_v2 = vpop.permute.xlu0 %334  ;;  %v468_v44 = vsel %vm460_vm8, %v459_v51, %v452_v58  ;;  %v1078_v54 = vsel %vm501_vm9, %v500_v52, %v493_v59 }
  0xe6   : > { %v349_v63 = vsel %vm344_vm3, %v337_v60, 1.0  ;;  %v372_v5 = vrot.slane %v1049_v38, 6  ;;  %v371_v8 = vrot.slane %v354_v62, 6  ;;  %v412_v9 = vrot.slane %v354_v62, 7 }
  0xe7   : > { %v1068_v6 = vmin.f32 %v324_v39, %v349_v63  ;;  %v444_v7 = vmin.f32 %v403_v61, %v436_v4  ;;  %v453_v10 = vrot.slane %v354_v62, 1  ;;  %v494_v11 = vrot.slane %v354_v62, 2 }
  0xe8   : > { %v348_v12 = vsel %vm344_vm3, %v335_v2, 1.0  ;;  %v413_v13 = vrot.slane %v1049_v38, 7  ;;  %v454_v14 = vrot.slane %v1049_v38, 1  ;;  %v384_v15 = vsel %vm378_vm4, %v371_v8, %v372_v5 }
  0xe9   : > { %v385_v16 = vsel %vm378_vm4, %v370_v40, %v371_v8  ;;  %v341_v17 = vpop.permute.xlu1 %340  ;;  %v495_v18 = vrot.slane %v1049_v38, 2  ;;  %v467_v20 = vsel %vm460_vm8, %v452_v58, %v453_v10  ;;  %v374_v21 = vrot.slane %v1068_v6, 6  ;;  %v339_v45 = vpop.permute.xlu0 %338 }
  0xea   : > { %v404_v19 = vmin.f32 %v354_v62, %v385_v16  ;;  %v405_v22 = vmin.f32 %v1049_v38, %v384_v15  ;;  %v426_v23 = vsel %vm419_vm6, %v411_v41, %v412_v9  ;;  %v485_v24 = vmin.f32 %v444_v7, %v467_v20 }
  0xeb   : > { %v456_v25 = vrot.slane %v1068_v6, 1  ;;  %v508_v28 = vsel %vm501_vm9, %v493_v59, %v494_v11  ;;  %v356_v29 = vmin.f32 %v323_v0, %v348_v12  ;;  %v351_v30 = vsel %vm344_vm3, %v341_v17, 1.0 }
  0xec   : > { %v445_v27 = vmin.f32 %v404_v19, %v426_v23  ;;  %v425_v31 = vsel %vm419_vm6, %v412_v9, %v413_v13  ;;  %v466_v33 = vsel %vm460_vm8, %v453_v10, %v454_v14  ;;  %v526_v36 = vmin.f32 %v485_v24, %v508_v28 }
  0xed   : > { %v1111_v37 = vmin.f32 %v326_v1, %v351_v30  ;;  %v373_v40 = vrot.slane %v356_v29, 6  ;;  %v414_v41 = vrot.slane %v356_v29, 7  ;;  %v455_v43 = vrot.slane %v356_v29, 1 }
  0xee   : > { %v486_v39 = vmin.f32 %v445_v27, %v466_v33  ;;  %v446_v46 = vmin.f32 %v405_v22, %v425_v31  ;;  %v507_v48 = vsel %vm501_vm9, %v494_v11, %v495_v18  ;;  %534 = vst [vmem:[%s1101_s24] sm:$0xff] %v526_v36  ;;  %v496_v49 = vrot.slane %v356_v29, 2 }
  0xef   : > { %v376_v55 = vrot.slane %v1111_v37, 6  ;;  %v382_v57 = vsel %vm378_vm4, %v373_v40, %v374_v21  ;;  %v383_v58 = vsel %vm378_vm4, %v372_v5, %v373_v40  ;;  %v417_v59 = vrot.slane %v1111_v37, 7 }
  0xf0   : > { %v527_v56 = vmin.f32 %v486_v39, %v507_v48  ;;  %v484_v60 = vsel %vm476_vm10, %v468_v44, 1.0  ;;  %v415_v61 = vrot.slane %v1068_v6, 7  ;;  %v406_v38 = vmin.f32 %v356_v29, %v383_v58 }
  0xf1   : > { %v350_v62 = vsel %vm344_vm3, %v339_v45, 1.0  ;;  %v497_v63 = vrot.slane %v1068_v6, 2  ;;  %v424_v0 = vsel %vm419_vm6, %v413_v13, %v414_v41  ;;  %v465_v1 = vsel %vm460_vm8, %v454_v14, %v455_v43 }
  0xf2   : > { %535 = vst [vmem:[%s1101_s24 + $0x8] sm:$0xff] %v527_v56  ;;  %v379_v2 = vsel %vm378_vm4, %v376_v55, %v377_v34  ;;  %v407_v4 = vmin.f32 %v1068_v6, %v382_v57  ;;  %v447_v5 = vmin.f32 %v406_v38, %v424_v0  ;;  %v487_v7 = vmin.f32 %v446_v46, %v465_v1 }
  0xf3   : > { %v410_v42 = vmin.f32 %v1005_v26, %v379_v2  ;;  %v464_v8 = vsel %vm460_vm8, %v455_v43, %v456_v25  ;;  %v506_v9 = vsel %vm501_vm9, %v495_v18, %v496_v49  ;;  %v420_v34 = vsel %vm419_vm6, %v417_v59, %v418_v35 }
  0xf4   : > { %v358_v10 = vmin.f32 %v325_v3, %v350_v62  ;;  %v423_v44 = vsel %vm419_vm6, %v414_v41, %v415_v61  ;;  %v488_v11 = vmin.f32 %v447_v5, %v464_v8  ;;  %v528_v12 = vmin.f32 %v487_v7, %v506_v9 }
  0xf5   : > { %v451_v13 = vmin.f32 %v410_v42, %v420_v34  ;;  %v505_v14 = vsel %vm501_vm9, %v496_v49, %v497_v63  ;;  %v525_v35 = vsel %vm517_vm11, %v1078_v54, 1.0  ;;  %v448_v18 = vmin.f32 %v407_v4, %v423_v44 }
  0xf6   : > { %v375_v15 = vrot.slane %v358_v10, 6  ;;  %v416_v16 = vrot.slane %v358_v10, 7  ;;  %v457_v17 = vrot.slane %v358_v10, 1  ;;  %v529_v32 = vmin.f32 %v488_v11, %v505_v14  ;;  %536 = vst [vmem:[%s1101_s24 + $0x10] sm:$0xff] %v528_v12 }
  0xf7   : > { %v492_v50 = vmin.f32 %v451_v13, %v484_v60  ;;  %v458_v3 = vrot.slane %v1111_v37, 1  ;;  %v498_v22 = vrot.slane %v358_v10, 2  ;;  %v499_v54 = vrot.slane %v1111_v37, 2 }
  0xf8   : > { %v380_v19 = vsel %vm378_vm4, %v375_v15, %v376_v55  ;;  %v381_v20 = vsel %vm378_vm4, %v374_v21, %v375_v15  ;;  %537 = vst [vmem:[%s1101_s24 + $0x18] sm:$0xff] %v529_v32  ;;  %v421_v27 = vsel %vm419_vm6, %v416_v16, %v417_v59  ;;  %v422_v28 = vsel %vm419_vm6, %v415_v61, %v416_v16 }
  0xf9   : > { %v533_v23 = vmin.f32 %v492_v50, %v525_v35  ;;  %v408_v24 = vmin.f32 %v358_v10, %v381_v20  ;;  %v409_v53 = vmin.f32 %v1111_v37, %v380_v19  ;;  %v463_v21 = vsel %vm460_vm8, %v456_v25, %v457_v17 }
  0xfa   : > { %v489_v31 = vmin.f32 %v448_v18, %v463_v21  ;;  %v461_v33 = vsel %vm460_vm8, %v458_v3, %v459_v51  ;;  %v462_v36 = vsel %vm460_vm8, %v457_v17, %v458_v3  ;;  %v504_v6 = vsel %vm501_vm9, %v497_v63, %v498_v22 }
  0xfb   : > { %541 = vst [vmem:[%s1101_s24 + $0x38] sm:$0xff] %v533_v23  ;;  %v449_v29 = vmin.f32 %v408_v24, %v422_v28  ;;  %v450_v30 = vmin.f32 %v409_v53, %v421_v27  ;;  %v502_v40 = vsel %vm501_vm9, %v499_v54, %v500_v52  ;;  %v503_v41 = vsel %vm501_vm9, %v498_v22, %v499_v54 }
  0xfc   : > { %v530_v25 = vmin.f32 %v489_v31, %v504_v6 }
  0xfd   : > { %v490_v37 = vmin.f32 %v449_v29, %v462_v36  ;;  %v491_v39 = vmin.f32 %v450_v30, %v461_v33 }
  0xfe   : > { %538 = vst [vmem:[%s1101_s24 + $0x20] sm:$0xff] %v530_v25 }
  0xff   : > { %v531_v43 = vmin.f32 %v490_v37, %v503_v41  ;;  %v532_v45 = vmin.f32 %v491_v39, %v502_v40 }
 0x101   : > { %539 = vst [vmem:[%s1101_s24 + $0x28] sm:$0xff] %v531_v43  ;;  %540 = vst [vmem:[%s1101_s24 + $0x30] sm:$0xff] %v532_v45 }
 0x102 PF: > { %p11_p8 = scmp.ge.s32.totalorder %s788_s11, 4   ;;  %s1212_s6 = smov %s739_s7 }
 0x103   : > { %s1213_s7 = smov %s743_s8  ;;  %s1214_s8 = smov %s798_s14 }
 0x104   : > { %s1215_s9 = smov %s788_s11  ;;  %13 = sbr.rel (!%p11_p8) target bundleno = 3 (0x3), region = 66 }
 0x10b   :  { %563 = vsyncpa [#allocation3], 1 }
 0x10c   :  { %565 = vsyncpa [#allocation3 + $0x1], 1 }

// kernel: dcp_dehaze_forward.3
= control target key start
LH: loop header
LB: loop body
LE: loop exit
PB: predicated region body
PF: predicated region fallthrough
CT: control target
= control target key end

     0   :  { %s4352_s0 = inlined_call_operand.vmem [shape: f32[2,1], index: 0, kind: input, shape index: {}]   ;;  %s4353_s1 = inlined_call_operand.vmem [shape: f32[2,3,64,128], index: 1, kind: input, shape index: {}]   ;;  %s4354_s2 = inlined_call_operand.vmem [shape: f32[2,64,128], index: 2, kind: input, shape index: {}]   ;;  %s4355_s3 = inlined_call_operand.vmem [shape: f32[64,64], index: 3, kind: input, shape index: {}]   ;;  %s4356_s4 = inlined_call_operand.vmem [shape: f32[128,128], index: 4, kind: input, shape index: {}]   ;;  %s4357_s5 = inlined_call_operand.vmem [shape: f32[64,128], index: 5, kind: input, shape index: {}]   ;;  %s4358_s6 = inlined_call_operand.hbm [shape: f32[2,3,64,128], index: 6, kind: output, shape index: {}]  }
   0x1   :  { %4437 = sst [smem:[#allocation53_spill]] %s4352_s0 }
   0x2   :  { %4438 = sst [smem:[#allocation54_spill]] %s4353_s1 }
   0x3   :  { %11 = vsyncpa [#allocation4], 0 }
   0x4   :  { %12 = vsyncpa [#allocation3], 0 }
   0x5   :  { %14 = vsyncpa [#allocation3 + $0x1], 0  ;;  %s2841_s21 = smov 0   ;;  %s2843_s22 = smov 0  }
   0x6   :  { %s2845_s23 = smov 0   ;;  %s2847_s24 = smov 0  }
   0x7 LB: > { %s2862_s25 = sadd.s32 4294967295, %s2794_s24   ;;  %s2174_s26 = sadd.s32 4294967294, %s2794_s24   ;;  %s2794_s24 = sphi %s2847_s24, %s4588_s24   ;;  %s2790_s23 = sphi %s2845_s23, %s4587_s23   ;;  %s2786_s22 = sphi %s2843_s22, %s4586_s22   ;;  %s2782_s21 = sphi %s2841_s21, %s4585_s21  }
   0x8   : > { %s2866_s27 = sadd.s32 1, %s2794_s24   ;;  %s163_s28 = sadd.s32 1, %s2790_s23 }
   0x9   : > { %s160_s29 = ssub.s32 %s2794_s24, %s2866_s27  ;;  %p173_p0 = scmp.ne.s32.totalorder %s2790_s23, %s2786_s22 }
   0xa   : > { %p161_p1 = scmp.eq.s32.totalorder %s160_s29, 0  ;;  %p174_p2 = scmp.eq.s32.totalorder %s2862_s25, 1 }
   0xb   : > { %p179_p3 = scmp.ne.s32.totalorder %s2786_s22, %s2782_s21  ;;  %p180_p4 = scmp.eq.s32.totalorder %s2174_s26, 1 }
   0xc   : > { %s2877_s30 = scalar_select %p161_p1, %s2790_s23, %s163_s28  }
   0xd   : > { %p2879_p5 = por %p174_p2, %p173_p0  ;;  %p2883_p6 = por %p180_p4, %p179_p3 }
   0xe   : > { %p2175_p7 = scmp.ge.s32.totalorder %s2794_s24, 1  ;;  %p187_p8 = scmp.lt.s32.totalorder %s2794_s24, 3 }
   0xf   : > { %p2629_p9 = scmp.eq.s32.totalorder %s2862_s25, 0  ;;  %s4442_s0 = sld [smem:[#allocation53_spill]] }
  0x10   : > { %p2890_p10 = pnand %p2175_p7, %p187_p8 }
  0x12   : > { %p2621_p11 = pneg %p2890_p10 }
  0x14   : > { %p2622_p12 = pnand %p2629_p9, %p2621_p11 }
  0x15   : > { %s200_s12 = sshll.u32 %s4442_s0, 4  ;;  %s201_s12 = int_to_ptr.vmem [resolvable:$true] %s200_s12 }
  0x16   : > { %s2713_s13 = scalar_lea.vmem %s201_s12, 32  ;;  %p2715_p0 = pneg %p2622_p12 }
  0x17   : > { %p2714_p13 = scmp.ne.s32.totalorder %s201_s12, %s2713_s13  ;;  %p2721_p3 = scmp.lt.s32.totalorder %s201_s12, %s201_s12 }
  0x18   : > { %p2722_p4 = scmp.lt.s32.totalorder %s2713_s13, %s2713_s13 }
  0x19   : > { %p2716_p1 = pnand %p2715_p0, %p2714_p13 }
  0x1a   : > { %p2723_p7 = por %p2722_p4, %p2721_p3 }
  0x1b   : > { %p2717_p2 = pneg %p2716_p1 }
  0x1d   : > { %p2724_p8 = pnand %p2723_p7, %p2717_p2 }
  0x1f   : > { %2727 = shalt.err (!%p2724_p8)
}
  0x20   : > { %s2796_s14 = smov [#allocation2]   ;;  %238 = sbr.rel (%p2890_p10) target bundleno = 1662 (0x67e), region = 44 }
  0x21   : > { %2624 = dma.vmem_to_smem (!%p2622_p12), %s201_s12, 32, %s2796_s14, [#allocation4]  }
  0x27   : > { %2773 = dma.done.wait (%p2629_p9), [#allocation4], 32  }
  0x28   : > { %2775 = vsyncadd (%p2629_p9), [#allocation4], 4294967264 }
  0x29   : > { %244 = sfence }
  0x2a   : > { %p274_p11 = scmp.lt.s32.totalorder %s2862_s25, 1  ;;  %s2199_s15 = sshll.u32 %s2862_s25, 7  ;;  %v4359_v0 = vmov 0.0  }
  0x2b   : > { %s423_s16 = sld [smem:[#allocation2 + %s2199_s15]]  ;;  %1176 = vmatprep.mubr.f32.mxu0 %v4359_v0  ;;  %1289 = vmatprep.mubr.f32.mxu1 %v4359_v0  ;;  %s2798_s13 = smov 1.0  }
  0x2c   : > { %s275_s17 = scalar_select %p274_p11, %s2862_s25, 1 }
  0x2d   : > { %s4443_s1 = sld [smem:[#allocation54_spill]] }
  0x2e   : > { %s2259_s18 = sshll.u32 %s275_s17, 6  ;;  %s2589_s28 = smul.u32 192, %s275_s17 }
  0x2f   : > { %s283_s26 = scalar_lea.vmem %s4354_s2, %s2259_s18 }
  0x30   : > { %v414_v1 = vld [vmem:[%s283_s26] sm:$0xff]  ;;  %v415_v2 = vld [vmem:[%s283_s26 + $0x8] sm:$0xff]  ;;  %v416_v3 = vld [vmem:[%s283_s26 + $0x10] sm:$0xff] }
  0x31   : > { %v417_v4 = vld [vmem:[%s283_s26 + $0x18] sm:$0xff]  ;;  %v418_v5 = vld [vmem:[%s283_s26 + $0x20] sm:$0xff]  ;;  %v2915_v6 = vstv %s423_s16  ;;  %v419_v7 = vld [vmem:[%s283_s26 + $0x28] sm:$0xff] }
  0x32   : > { %v420_v8 = vld [vmem:[%s283_s26 + $0x30] sm:$0xff]  ;;  %v2917_v9 = vld [vmem:[%s283_s26 + $0x38] sm:$0xff]  ;;  %vm425_vm0 = vcmp.gt.f32.partialorder %v414_v1, %v2915_v6  ;;  %vm426_vm1 = vcmp.gt.f32.partialorder %v415_v2, %v2915_v6  ;;  %vm427_vm2 = vcmp.gt.f32.partialorder %v416_v3, %v2915_v6  ;;  %vm428_vm3 = vcmp.gt.f32.partialorder %v417_v4, %v2915_v6 }
  0x33   : > { %vm429_vm4 = vcmp.gt.f32.partialorder %v418_v5, %v2915_v6  ;;  %v2925_v10 = vsel %vm425_vm0, 1.0, %v4359_v0  ;;  %v2928_v11 = vsel %vm426_vm1, 1.0, %v4359_v0  ;;  %s2933_s10 = scalar_lea.vmem %s4443_s1, %s2589_s28  ;;  %vm430_vm5 = vcmp.gt.f32.partialorder %v419_v7, %v2915_v6 }
  0x34   : > { %vm431_vm6 = vcmp.gt.f32.partialorder %v420_v8, %v2915_v6  ;;  %vm432_vm7 = vcmp.gt.f32.partialorder %v2917_v9, %v2915_v6  ;;  %v2940_v12 = vsel %vm427_vm2, 1.0, %v4359_v0  ;;  %v473_v13 = vadd.f32 %v2928_v11, %v2925_v10  ;;  %v2952_v15 = vld [vmem:[%s2933_s10] sm:$0xff]  ;;  %v2965_v20 = vld [vmem:[%s2933_s10 + $0x8] sm:$0xff]  ;;  %v2968_v21 = vld [vmem:[%s2933_s10 + $0x10] sm:$0xff] }
  0x35   : > { %vm449_vm8 = vcmp.eq.f32.partialorder %v414_v1, %v2915_v6  ;;  %vm450_vm9 = vcmp.eq.f32.partialorder %v415_v2, %v2915_v6  ;;  %vm451_vm10 = vcmp.eq.f32.partialorder %v416_v3, %v2915_v6  ;;  %v2948_v14 = vsel %vm428_vm3, 1.0, %v4359_v0  ;;  %4444 = vst [vmem:[#allocation8_spill] sm:$0xff] %v2968_v21  ;;  %v2971_v22 = vld [vmem:[%s2933_s10 + $0x18] sm:$0xff]  ;;  %v3000_v30 = vld [vmem:[%s2933_s10 + $0x20] sm:$0xff]  ;;  %v3003_v31 = vld [vmem:[%s2933_s10 + $0x28] sm:$0xff] }
  0x36   : > { %vm452_vm11 = vcmp.eq.f32.partialorder %v417_v4, %v2915_v6  ;;  %v2955_v16 = vsel %vm429_vm4, 1.0, %v4359_v0  ;;  %v474_v17 = vadd.f32 %v2940_v12, %v473_v13  ;;  %v2959_v18 = vsel %vm449_vm8, 1.0, %v4359_v0  ;;  %4445 = vst [vmem:[#allocation9_spill] sm:$0xff] %v2971_v22  ;;  %4446 = vst [vmem:[#allocation10_spill] sm:$0xff] %v3000_v30  ;;  %v3017_v39 = vld [vmem:[%s2933_s10 + $0x30] sm:$0xff]  ;;  %v3020_v40 = vld [vmem:[%s2933_s10 + $0x38] sm:$0xff] }
  0x37   : > { %v2962_v19 = vsel %vm450_vm9, 1.0, %v4359_v0  ;;  %v2976_v23 = vsel %vm430_vm5, 1.0, %v4359_v0  ;;  %v2981_v24 = vsel %vm431_vm6, 1.0, %v4359_v0  ;;  %v2987_v25 = vsel %vm432_vm7, 1.0, %v4359_v0  ;;  %4447 = vst [vmem:[#allocation11_spill] sm:$0xff] %v3003_v31  ;;  %4448 = vst [vmem:[#allocation12_spill] sm:$0xff] %v3017_v39 }
  0x38   : > { %v2990_v26 = vsel %vm451_vm10, 1.0, %v4359_v0  ;;  %v475_v27 = vadd.f32 %v2948_v14, %v474_v17  ;;  %vm453_vm12 = vcmp.eq.f32.partialorder %v418_v5, %v2915_v6  ;;  %v2995_v28 = vsel %vm452_vm11, 1.0, %v4359_v0  ;;  %4449 = vst [vmem:[#allocation13_spill] sm:$0xff] %v3020_v40 }
  0x39   : > { %v489_v29 = vadd.f32 %v2962_v19, %v2959_v18  ;;  %v310_v32 = vadd.f32 1.0, %v2952_v15  ;;  %v311_v33 = vadd.f32 1.0, %v2965_v20  ;;  %v312_v34 = vadd.f32 1.0, %v2968_v21 }
  0x3a   : > { %v313_v35 = vadd.f32 1.0, %v2971_v22  ;;  %v476_v36 = vadd.f32 %v2955_v16, %v475_v27  ;;  %vm454_vm13 = vcmp.eq.f32.partialorder %v419_v7, %v2915_v6  ;;  %vm455_vm14 = vcmp.eq.f32.partialorder %v420_v8, %v2915_v6  ;;  %v3074_v7 = vld [vmem:[%s2933_s10 + $0x48] sm:$0xff]  ;;  %v3077_v8 = vld [vmem:[%s2933_s10 + $0x50] sm:$0xff] }
  0x3b   : > { %v490_v37 = vadd.f32 %v2990_v26, %v489_v29  ;;  %v3014_v38 = vsel %vm453_vm12, 1.0, %v4359_v0  ;;  %v314_v41 = vadd.f32 1.0, %v3000_v30  ;;  %v3023_v42 = vmul.f32 0.5, %v310_v32  ;;  %4456 = vst [vmem:[#allocation20_spill] sm:$0xff] %v3077_v8  ;;  %v3086_v29 = vld [vmem:[%s2933_s10 + $0x58] sm:$0xff]  ;;  %v3089_v32 = vld [vmem:[%s2933_s10 + $0x60] sm:$0xff] }
  0x3c   : > { %v3025_v43 = vmul.f32 0.5, %v311_v33  ;;  %v477_v44 = vadd.f32 %v2976_v23, %v476_v36  ;;  %v315_v46 = vadd.f32 1.0, %v3003_v31  ;;  %v3030_v47 = vmul.f32 0.5, %v312_v34  ;;  %4459 = vst [vmem:[#allocation23_spill] sm:$0xff] %v3086_v29  ;;  %4460 = vst [vmem:[#allocation24_spill] sm:$0xff] %v3089_v32 }
  0x3d   : > { %4450 = vst [vmem:[#allocation14_spill] sm:$0xff] %v3023_v42  ;;  %v491_v45 = vadd.f32 %v2995_v28, %v490_v37  ;;  %vm456_vm15 = vcmp.eq.f32.partialorder %v2917_v9, %v2915_v6  ;;  %v3035_v48 = vsel %vm454_vm13, 1.0, %v4359_v0  ;;  %v3038_v49 = vsel %vm455_vm14, 1.0, %v4359_v0  ;;  %v3071_v6 = vld [vmem:[%s2933_s10 + $0x40] sm:$0xff] }
  0x3e   : > { %4451 = vst [vmem:[#allocation15_spill] sm:$0xff] %v3025_v43  ;;  %4452 = vst [vmem:[#allocation16_spill] sm:$0xff] %v3030_v47  ;;  %v3040_v50 = vmul.f32 0.5, %v313_v35  ;;  %v478_v51 = vadd.f32 %v2981_v24, %v477_v44  ;;  %v316_v53 = vadd.f32 1.0, %v3017_v39  ;;  %v317_v54 = vadd.f32 1.0, %v3020_v40 }
  0x3f   : > { %v492_v52 = vadd.f32 %v3014_v38, %v491_v45  ;;  %v3046_v55 = vmul.f32 0.5, %v314_v41  ;;  %v511_v56 = vmul.f32 %v2925_v10, %v3023_v42  ;;  %v512_v57 = vmul.f32 %v2928_v11, %v3025_v43  ;;  %v3097_v41 = vld [vmem:[%s2933_s10 + $0x68] sm:$0xff] }
  0x40   : > { %4453 = vst [vmem:[#allocation17_spill] sm:$0xff] %v3040_v50  ;;  %v513_v58 = vmul.f32 %v2940_v12, %v3030_v47  ;;  %v479_v59 = vadd.f32 %v2987_v25, %v478_v51  ;;  %v3056_v61 = vmul.f32 0.5, %v315_v46  ;;  %v3059_v62 = vsel %vm456_vm15, 1.0, %v4359_v0  ;;  %4461 = vst [vmem:[#allocation25_spill] sm:$0xff] %v3097_v41 }
  0x41   : > { %4454 = vst [vmem:[#allocation18_spill] sm:$0xff] %v3046_v55  ;;  %v493_v60 = vadd.f32 %v3035_v48, %v492_v52  ;;  %v514_v63 = vmul.f32 %v2948_v14, %v3040_v50  ;;  %v519_v1 = vadd.f32 %v512_v57, %v511_v56  ;;  %v535_v3 = vmul.f32 %v2959_v18, %v3023_v42 }
  0x42   : > { %4455 = vst [vmem:[#allocation19_spill] sm:$0xff] %v3056_v61  ;;  %480 = vadd.xlane.f32.xlu0 %v479_v59  ;;  %v536_v4 = vmul.f32 %v2962_v19, %v3025_v43  ;;  %v537_v5 = vmul.f32 %v2990_v26, %v3030_v47  ;;  %v3079_v9 = vmul.f32 0.5, %v316_v53  ;;  %v3081_v13 = vmul.f32 0.5, %v317_v54  ;;  %v3105_v53 = vld [vmem:[%s2933_s10 + $0x70] sm:$0xff] }
  0x43   : > { %v494_v2 = vadd.f32 %v3038_v49, %v493_v60  ;;  %v515_v17 = vmul.f32 %v2955_v16, %v3046_v55  ;;  %v520_v27 = vadd.f32 %v519_v1, %v513_v58  ;;  %v516_v34 = vmul.f32 %v2976_v23, %v3056_v61  ;;  %4462 = vst [vmem:[#allocation26_spill] sm:$0xff] %v3105_v53  ;;  %v3114_v60 = vld [vmem:[%s2933_s10 + $0x78] sm:$0xff] }
  0x44   : > { %4457 = vst [vmem:[#allocation21_spill] sm:$0xff] %v3079_v9  ;;  %4458 = vst [vmem:[#allocation22_spill] sm:$0xff] %v3081_v13  ;;  %v538_v35 = vmul.f32 %v2995_v28, %v3040_v50  ;;  %v543_v36 = vadd.f32 %v536_v4, %v535_v3  ;;  %v326_v44 = vadd.f32 1.0, %v3071_v6  ;;  %v327_v45 = vadd.f32 1.0, %v3074_v7 }
  0x45   : > { %v495_v33 = vadd.f32 %v3059_v62, %v494_v2  ;;  %v521_v37 = vadd.f32 %v520_v27, %v514_v63  ;;  %v328_v46 = vadd.f32 1.0, %v3077_v8  ;;  %v539_v51 = vmul.f32 %v3014_v38, %v3046_v55  ;;  %4463 = vst [vmem:[#allocation27_spill] sm:$0xff] %v3114_v60  ;;  %v3174_v8 = vld [vmem:[%s2933_s10 + $0xa0] sm:$0xff] }
  0x46   : > { %v544_v52 = vadd.f32 %v543_v36, %v537_v5  ;;  %v329_v54 = vadd.f32 1.0, %v3086_v29  ;;  %v330_v56 = vadd.f32 1.0, %v3089_v32  ;;  %v517_v57 = vmul.f32 %v2981_v24, %v3079_v9 }
  0x47   : > { %496 = vadd.xlane.f32.xlu0 %v495_v33  ;;  %v522_v58 = vadd.f32 %v521_v37, %v515_v17  ;;  %v540_v59 = vmul.f32 %v3035_v48, %v3056_v61  ;;  %v3116_v63 = vmul.f32 0.5, %v326_v44  ;;  %v331_v2 = vadd.f32 1.0, %v3097_v41 }
  0x48   : > { %v545_v1 = vadd.f32 %v544_v52, %v538_v35  ;;  %v3119_v3 = vmul.f32 0.5, %v327_v45  ;;  %v3121_v4 = vmul.f32 0.5, %v328_v46  ;;  %v518_v5 = vmul.f32 %v2987_v25, %v3081_v13 }
  0x49   : > { %4464 = vst [vmem:[#allocation28_spill] sm:$0xff] %v3116_v63  ;;  %v523_v27 = vadd.f32 %v522_v58, %v516_v34  ;;  %v332_v17 = vadd.f32 1.0, %v3105_v53  ;;  %v3126_v33 = vmul.f32 0.5, %v329_v54  ;;  %v541_v36 = vmul.f32 %v3038_v49, %v3079_v9 }
  0x4a   : > { %4465 = vst [vmem:[#allocation29_spill] sm:$0xff] %v3119_v3  ;;  %4466 = vst [vmem:[#allocation30_spill] sm:$0xff] %v3121_v4  ;;  %v546_v37 = vadd.f32 %v545_v1, %v539_v51  ;;  %v333_v35 = vadd.f32 1.0, %v3114_v60  ;;  %v3131_v44 = vmul.f32 0.5, %v330_v56  ;;  %v562_v46 = vmul.f32 %v2925_v10, %v3116_v63 }
  0x4b   : > { %4467 = vst [vmem:[#allocation31_spill] sm:$0xff] %v3126_v33  ;;  %v524_v45 = vadd.f32 %v523_v27, %v517_v57  ;;  %v563_v34 = vmul.f32 %v2928_v11, %v3119_v3  ;;  %v564_v52 = vmul.f32 %v2940_v12, %v3121_v4  ;;  %v542_v51 = vmul.f32 %v3059_v62, %v3081_v13 }
  0x4c   : > { %4468 = vst [vmem:[#allocation32_spill] sm:$0xff] %v3131_v44  ;;  %v547_v54 = vadd.f32 %v546_v37, %v540_v59  ;;  %v3141_v58 = vmul.f32 0.5, %v331_v2  ;;  %v3143_v57 = vmul.f32 0.5, %v332_v17  ;;  %v565_v1 = vmul.f32 %v2948_v14, %v3126_v33  ;;  %v3154_v2 = vld [vmem:[%s2933_s10 + $0x80] sm:$0xff]  ;;  %v3160_v17 = vld [vmem:[%s2933_s10 + $0x90] sm:$0xff] }
  0x4d   : > { %v525_v56 = vadd.f32 %v524_v45, %v518_v5  ;;  %v570_v27 = vadd.f32 %v563_v34, %v562_v46  ;;  %v586_v41 = vmul.f32 %v2959_v18, %v3116_v63  ;;  %v587_v32 = vmul.f32 %v2962_v19, %v3119_v3  ;;  %v3157_v5 = vld [vmem:[%s2933_s10 + $0x88] sm:$0xff]  ;;  %4471 = vst [vmem:[#allocation35_spill] sm:$0xff] %v3160_v17  ;;  %v3167_v46 = vld [vmem:[%s2933_s10 + $0x98] sm:$0xff] }
  0x4e   : > { %4469 = vst [vmem:[#allocation33_spill] sm:$0xff] %v3141_v58  ;;  %4470 = vst [vmem:[#allocation34_spill] sm:$0xff] %v3143_v57  ;;  %v548_v0 = vadd.f32 %v547_v54, %v541_v36  ;;  %v588_v59 = vmul.f32 %v2990_v26, %v3121_v4  ;;  %v3162_v37 = vmul.f32 0.5, %v333_v35  ;;  %v566_v36 = vmul.f32 %v2955_v16, %v3131_v44  ;;  %v3177_v35 = vld [vmem:[%s2933_s10 + $0xa8] sm:$0xff] }
  0x4f   : > { %526 = vadd.xlane.f32.xlu1 %v525_v56  ;;  %v571_v45 = vadd.f32 %v570_v27, %v564_v52  ;;  %v567_v54 = vmul.f32 %v2976_v23, %v3141_v58  ;;  %v589_v30 = vmul.f32 %v2995_v28, %v3126_v33  ;;  %v594_v31 = vadd.f32 %v587_v32, %v586_v41 }
  0x50   : > { %4472 = vst [vmem:[#allocation36_spill] sm:$0xff] %v3162_v37  ;;  %v549_v34 = vadd.f32 %v548_v0, %v542_v51  ;;  %4473 = vst [vmem:[#allocation37_spill] sm:$0xff] %v3177_v35  ;;  %v342_v21 = vadd.f32 1.0, %v3154_v2  ;;  %v343_v52 = vadd.f32 1.0, %v3157_v5  ;;  %v344_v27 = vadd.f32 1.0, %v3160_v17 }
  0x51   : > { %v572_v56 = vadd.f32 %v571_v45, %v565_v1  ;;  %v568_v0 = vmul.f32 %v2981_v24, %v3143_v57  ;;  %v590_v51 = vmul.f32 %v3014_v38, %v3131_v44  ;;  %v595_v29 = vadd.f32 %v594_v31, %v588_v59  ;;  %v3190_v45 = vld [vmem:[%s2933_s10 + $0xb0] sm:$0xff] }
  0x52   : > { %v345_v32 = vadd.f32 1.0, %v3167_v46  ;;  %v591_v1 = vmul.f32 %v3035_v48, %v3141_v58  ;;  %4474 = vst [vmem:[#allocation38_spill] sm:$0xff] %v3190_v45  ;;  %v346_v22 = vadd.f32 1.0, %v3174_v8  ;;  %v3193_v17 = vmul.f32 0.5, %v342_v21 }
  0x53   : > { %550 = vadd.xlane.f32.xlu1 %v549_v34  ;;  %v573_v41 = vadd.f32 %v572_v56, %v566_v36  ;;  %v596_v60 = vadd.f32 %v595_v29, %v589_v30  ;;  %v347_v53 = vadd.f32 1.0, %v3177_v35  ;;  %v3196_v40 = vmul.f32 0.5, %v343_v52  ;;  %v3203_v36 = vld [vmem:[%s2933_s10 + $0xb8] sm:$0xff] }
  0x54   : > { %4475 = vst [vmem:[#allocation39_spill] sm:$0xff] %v3193_v17  ;;  %v3198_v39 = vmul.f32 0.5, %v344_v27  ;;  %v569_v31 = vmul.f32 %v2987_v25, %v3162_v37  ;;  %v3205_v34 = vmul.f32 0.5, %v345_v32  ;;  %v592_v56 = vmul.f32 %v3038_v49, %v3143_v57 }
  0x55   : > { %4476 = vst [vmem:[#allocation40_spill] sm:$0xff] %v3196_v40  ;;  %v574_v59 = vadd.f32 %v573_v41, %v567_v54  ;;  %v597_v21 = vadd.f32 %v596_v60, %v590_v51  ;;  %v348_v30 = vadd.f32 1.0, %v3190_v45  ;;  %v613_v29 = vmul.f32 %v2925_v10, %v3193_v17 }
  0x56   : > { %4477 = vst [vmem:[#allocation41_spill] sm:$0xff] %v3198_v39  ;;  %4478 = vst [vmem:[#allocation42_spill] sm:$0xff] %v3205_v34  ;;  %v3212_v27 = vmul.f32 0.5, %v346_v22  ;;  %v614_v35 = vmul.f32 %v2928_v11, %v3196_v40  ;;  %v615_v54 = vmul.f32 %v2940_v12, %v3198_v39  ;;  %v593_v32 = vmul.f32 %v3059_v62, %v3162_v37 }
  0x57   : > { %v575_v52 = vadd.f32 %v574_v59, %v568_v0  ;;  %v598_v41 = vadd.f32 %v597_v21, %v591_v1  ;;  %v349_v60 = vadd.f32 1.0, %v3203_v36  ;;  %v3221_v51 = vmul.f32 0.5, %v347_v53 }
  0x58   : > { %4479 = vst [vmem:[#allocation43_spill] sm:$0xff] %v3212_v27  ;;  %v616_v10 = vmul.f32 %v2948_v14, %v3205_v34  ;;  %v621_v22 = vadd.f32 %v614_v35, %v613_v29  ;;  %v637_v0 = vmul.f32 %v2959_v18, %v3193_v17  ;;  %v638_v12 = vmul.f32 %v2962_v19, %v3196_v40 }
  0x59   : > { %4480 = vst [vmem:[#allocation44_spill] sm:$0xff] %v3221_v51  ;;  %v576_v45 = vadd.f32 %v575_v52, %v569_v31  ;;  %v599_v11 = vadd.f32 %v598_v41, %v592_v56  ;;  %v639_v59 = vmul.f32 %v2990_v26, %v3198_v39  ;;  %v3231_v1 = vmul.f32 0.5, %v348_v30 }
  0x5a   : > { %v617_v53 = vmul.f32 %v2955_v16, %v3212_v27  ;;  %v622_v31 = vadd.f32 %v621_v22, %v615_v54  ;;  %v640_v14 = vmul.f32 %v2995_v28, %v3205_v34  ;;  %v645_v35 = vadd.f32 %v638_v12, %v637_v0 }
  0x5b   : > { %577 = vadd.xlane.f32.xlu0 %v576_v45  ;;  %4481 = vst [vmem:[#allocation45_spill] sm:$0xff] %v3231_v1  ;;  %v600_v21 = vadd.f32 %v599_v11, %v593_v32  ;;  %v3237_v18 = vmul.f32 0.5, %v349_v60  ;;  %v618_v19 = vmul.f32 %v2976_v23, %v3221_v51  ;;  %v641_v26 = vmul.f32 %v3014_v38, %v3212_v27 }
  0x5c   : > { %v623_v56 = vadd.f32 %v622_v31, %v616_v10  ;;  %v646_v45 = vadd.f32 %v645_v35, %v639_v59  ;;  %v619_v16 = vmul.f32 %v2981_v24, %v3231_v1  ;;  %v642_v29 = vmul.f32 %v3035_v48, %v3221_v51 }
  0x5d   : > { %4482 = vst [vmem:[#allocation46_spill] sm:$0xff] %v3237_v18  ;;  %601 = vadd.xlane.f32.xlu1 %v600_v21  ;;  %v620_v52 = vmul.f32 %v2987_v25, %v3237_v18  ;;  %v643_v23 = vmul.f32 %v3038_v49, %v3231_v1  ;;  %v644_v38 = vmul.f32 %v3059_v62, %v3237_v18  ;;  %vm1087_vm12 = vcmask 523264  }
  0x5e   : > { %v624_v30 = vadd.f32 %v623_v56, %v617_v53  ;;  %v647_v28 = vadd.f32 %v646_v45, %v640_v14 }
  0x60   : > { %v625_v54 = vadd.f32 %v624_v30, %v618_v19  ;;  %v648_v32 = vadd.f32 %v647_v28, %v641_v26 }
  0x62   : > { %v626_v41 = vadd.f32 %v625_v54, %v619_v16  ;;  %v649_v60 = vadd.f32 %v648_v32, %v642_v29 }
  0x64   : > { %v627_v10 = vadd.f32 %v626_v41, %v620_v52  ;;  %v650_v24 = vadd.f32 %v649_v60, %v643_v23 }
  0x66   : > { %628 = vadd.xlane.f32.xlu0 %v627_v10  ;;  %v651_v22 = vadd.f32 %v650_v24, %v644_v38 }
  0x68   : > { %652 = vadd.xlane.f32.xlu1 %v651_v22 }
  0xcf   : > { %v481_v48 = vpop.xlane.xlu0 %480 }
  0xd0   : > { %v482_v0 = vrot.slane %v481_v48, 4 }
  0xd2   : > { %v483_v11 = vadd.f32 %v482_v0, %v481_v48 }
  0xd4   : > { %v497_v12 = vpop.xlane.xlu0 %496  ;;  %v484_v25 = vrot.slane %v483_v11, 2 }
  0xd5   : > { %v498_v59 = vrot.slane %v497_v12, 4 }
  0xd6   : > { %v485_v31 = vadd.f32 %v484_v25, %v483_v11 }
  0xd7   : > { %v499_v53 = vadd.f32 %v498_v59, %v497_v12 }
  0xd8   : > { %v486_v21 = vrot.slane %v485_v31, 1 }
  0xd9   : > { %v500_v49 = vrot.slane %v499_v53, 2 }
  0xda   : > { %v487_v14 = vadd.f32 %v486_v21, %v485_v31 }
  0xdb   : > { %v501_v35 = vadd.f32 %v500_v49, %v499_v53 }
  0xdc   : > { %2590 = vpush %v487_v14  ;;  %v527_v56 = vpop.xlane.xlu1 %526 }
  0xdd   : > { %v502_v62 = vrot.slane %v501_v35, 1  ;;  %v528_v30 = vrot.slane %v527_v56, 4 }
  0xdf   : > { %v503_v19 = vadd.f32 %v502_v62, %v501_v35  ;;  %v529_v32 = vadd.f32 %v528_v30, %v527_v56 }
  0xe0   : > { %v551_v26 = vpop.xlane.xlu1 %550 }
  0xe1   : > { %2592 = vpush %v503_v19  ;;  %v552_v29 = vrot.slane %v551_v26, 4  ;;  %v530_v22 = vrot.slane %v529_v32, 2 }
  0xe3   : > { %v553_v38 = vadd.f32 %v552_v29, %v551_v26  ;;  %v531_v31 = vadd.f32 %v530_v22, %v529_v32 }
  0xe5   : > { %v554_v0 = vrot.slane %v553_v38, 2  ;;  %v532_v62 = vrot.slane %v531_v31, 1 }
  0xe7   : > { %v555_v21 = vadd.f32 %v554_v0, %v553_v38  ;;  %v533_v29 = vadd.f32 %v532_v62, %v531_v31 }
  0xe8   : > { %v578_v45 = vpop.xlane.xlu0 %577 }
  0xe9   : > { %v579_v52 = vrot.slane %v578_v45, 4  ;;  %v556_v56 = vrot.slane %v555_v21, 1 }
  0xea   : > { %v602_v16 = vpop.xlane.xlu1 %601 }
  0xeb   : > { %v603_v23 = vrot.slane %v602_v16, 4  ;;  %v580_v10 = vadd.f32 %v579_v52, %v578_v45  ;;  %v557_v52 = vadd.f32 %v556_v56, %v555_v21 }
  0xed   : > { %v604_v24 = vadd.f32 %v603_v23, %v602_v16  ;;  %v581_v25 = vrot.slane %v580_v10, 2 }
  0xef   : > { %v605_v59 = vrot.slane %v604_v24, 2  ;;  %v582_v14 = vadd.f32 %v581_v25, %v580_v10 }
  0xf1   : > { %v606_v35 = vadd.f32 %v605_v59, %v604_v24  ;;  %v583_v45 = vrot.slane %v582_v14, 1 }
  0xf3   : > { %v629_v28 = vpop.xlane.xlu0 %628  ;;  %v607_v16 = vrot.slane %v606_v35, 1  ;;  %v584_v23 = vadd.f32 %v583_v45, %v582_v14 }
  0xf4   : > { %v630_v41 = vrot.slane %v629_v28, 4 }
  0xf5   : > { %v653_v54 = vpop.xlane.xlu1 %652  ;;  %v608_v32 = vadd.f32 %v607_v16, %v606_v35 }
  0xf6   : > { %v654_v60 = vrot.slane %v653_v54, 4  ;;  %v631_v48 = vadd.f32 %v630_v41, %v629_v28 }
  0xf8   : > { %v655_v11 = vadd.f32 %v654_v60, %v653_v54  ;;  %v632_v53 = vrot.slane %v631_v48, 2 }
  0xfa   : > { %v656_v49 = vrot.slane %v655_v11, 2  ;;  %v633_v19 = vadd.f32 %v632_v53, %v631_v48 }
  0xfc   : > { %v657_v26 = vadd.f32 %v656_v49, %v655_v11  ;;  %v634_v28 = vrot.slane %v633_v19, 1 }
  0xfe   : > { %v658_v54 = vrot.slane %v657_v26, 1  ;;  %v635_v41 = vadd.f32 %v634_v28, %v633_v19 }
 0x100   : > { %v659_v38 = vadd.f32 %v658_v54, %v657_v26 }
 0x10d   : > { %s3253_s11 = spop %2590 }
 0x10e   : > { %s505_s15 = ssub.f32 81.0, %s3253_s11 }
 0x112   : > { %s2593_s12 = spop %2592 }
 0x113   : > { %s506_s14 = smax.f32 %s2798_s13, %s2593_s12 }
 0x114   : > { %v507_v12 = vstv %s506_s14 }
 0x115   : > { %2673 = vrcp.f32 %v507_v12 }
 0x11f   : > { %v2674_v30 = vpop.eup %2673 }
 0x120   : > { %2594 = vpush %v2674_v30 }
 0x121   : > { %2596 = vpush %v533_v29 }
 0x122   : > { %2598 = vpush %v557_v52 }
 0x123   : > { %2600 = vpush %v584_v23 }
 0x124   : > { %2602 = vpush %v608_v32 }
 0x125   : > { %2604 = vpush %v635_v41 }
 0x126   : > { %2606 = vpush %v659_v38 }
 0x151   : > { %s2595_s16 = spop %2594 }
 0x152   : > { %s510_s17 = smul.f32 %s2595_s16, %s505_s15  ;;  %s2597_s18 = spop %2596 }
 0x153   : > { %s2599_s19 = spop %2598 }
 0x154   : > { %s559_s20 = smul.f32 %s2599_s19, %s510_s17  ;;  %s2601_s26 = spop %2600 }
 0x155   : > { %s2603_s28 = spop %2602  ;;  %s2801_s19 = smov 127  }
 0x156   : > { %s560_s29 = sadd.f32 %s2597_s18, %s559_s20  ;;  %s610_s9 = smul.f32 %s2603_s28, %s510_s17 }
 0x157   : > { %s2605_s10 = spop %2604  ;;  %s2800_s18 = smov 1  }
 0x158   : > { %s561_s12 = smul.f32 0.012345679, %s560_s29  ;;  %s611_s13 = sadd.f32 %s2601_s26, %s610_s9 }
 0x159   : > { %s2607_s0 = spop %2606  ;;  %s2802_s20 = smov 126  }
 0x15a   : > { %v3256_v60 = vstv %s561_s12  ;;  %s612_s14 = smul.f32 0.012345679, %s611_s13  ;;  %s2803_s12 = smov [#allocation5]  }
 0x15b   : > { %4483 = vst [vmem:[#allocation47_spill] sm:$0xff] %v3256_v60  ;;  %s661_s1 = smul.f32 %s2607_s0, %s510_s17  ;;  %2675 = vrcp.f32 %v3256_v60  ;;  %s2799_s17 = smov 2  }
 0x15c   : > { %v3259_v10 = vstv %s612_s14  ;;  %s2732_s13 = sshll.u32 %s2803_s12, 4  ;;  %s2733_s13 = int_to_ptr.vmem [resolvable:$false] %s2732_s13 }
 0x15d   : > { %4484 = vst [vmem:[#allocation48_spill] sm:$0xff] %v3259_v10  ;;  %s662_s11 = sadd.f32 %s2605_s10, %s661_s1  ;;  %2677 = vrcp.f32 %v3259_v10  ;;  %s2734_s14 = scalar_lea.vmem %s2733_s13, 6144 }
 0x15f   : > { %s663_s15 = smul.f32 0.012345679, %s662_s11 }
 0x161   : > { %v3262_v24 = vstv %s663_s15 }
 0x162   : > { %4485 = vst [vmem:[#allocation49_spill] sm:$0xff] %v3262_v24  ;;  %2679 = vrcp.f32 %v3262_v24 }
 0x165   : > { %v2676_v22 = vpop.eup %2675 }
 0x166   : > { %2608 = vpush %v2676_v22 }
 0x167   : > { %v2678_v48 = vpop.eup %2677 }
 0x168   : > { %2610 = vpush %v2678_v48 }
 0x16c   : > { %v2680_v0 = vpop.eup %2679 }
 0x16d   : > { %2612 = vpush %v2680_v0 }
 0x197   : > { %s2609_s16 = spop %2608 }
 0x198   : > { %v3265_v11 = vstv %s2609_s16 }
 0x199   : > { %s2611_s0 = spop %2610  ;;  %v681_v25 = vmul.f32 %v3265_v11, %v3081_v13  ;;  %v674_v59 = vmul.f32 %v3265_v11, %v3023_v42  ;;  %v675_v14 = vmul.f32 %v3265_v11, %v3025_v43  ;;  %v676_v28 = vmul.f32 %v3265_v11, %v3030_v47 }
 0x19a   : > { %v3267_v12 = vstv %s2611_s0  ;;  %v677_v41 = vmul.f32 %v3265_v11, %v3040_v50 }
 0x19b   : > { %v690_v53 = vmul.f32 %v3267_v12, %v3162_v37  ;;  %v683_v31 = vmul.f32 %v3267_v12, %v3116_v63  ;;  %v684_v35 = vmul.f32 %v3267_v12, %v3119_v3  ;;  %v685_v52 = vmul.f32 %v3267_v12, %v3121_v4 }
 0x19c   : > { %v686_v38 = vmul.f32 %v3267_v12, %v3126_v33 }
 0x19d   : > { %v698_v49 = vmin.f32 %v681_v25, %v690_v53  ;;  %v691_v21 = vmin.f32 %v674_v59, %v683_v31  ;;  %v692_v16 = vmin.f32 %v675_v14, %v684_v35  ;;  %v693_v54 = vmin.f32 %v676_v28, %v685_v52 }
 0x19e   : > { %s2613_s1 = spop %2612  ;;  %v694_v22 = vmin.f32 %v677_v41, %v686_v38  ;;  %v678_v25 = vmul.f32 %v3265_v11, %v3046_v55  ;;  %v687_v59 = vmul.f32 %v3267_v12, %v3131_v44  ;;  %v688_v14 = vmul.f32 %v3267_v12, %v3141_v58 }
 0x19f   : > { %v3281_v62 = vstv %s2613_s1  ;;  %v358_v35 = vmul.f32 0.2989, %v2952_v15  ;;  %v680_v15 = vmul.f32 %v3265_v11, %v3079_v9  ;;  %v383_v38 = vmul.f32 0.114, %v3157_v5 }
 0x1a0   : > { %v707_v19 = vmul.f32 %v3281_v62, %v3237_v18  ;;  %v700_v56 = vmul.f32 %v3281_v62, %v3193_v17  ;;  %v701_v30 = vmul.f32 %v3281_v62, %v3196_v40  ;;  %v702_v23 = vmul.f32 %v3281_v62, %v3198_v39 }
 0x1a1   : > { %v703_v48 = vmul.f32 %v3281_v62, %v3205_v34  ;;  %v695_v53 = vmin.f32 %v678_v25, %v687_v59  ;;  %v704_v31 = vmul.f32 %v3281_v62, %v3212_v27  ;;  %v705_v28 = vmul.f32 %v3281_v62, %v3221_v51 }
 0x1a2   : > { %v3287_v26 = vmin.f32 %v698_v49, %v707_v19  ;;  %v3289_v45 = vmin.f32 %v691_v21, %v700_v56  ;;  %v3297_v29 = vmin.f32 %v692_v16, %v701_v30  ;;  %v3313_v32 = vmin.f32 %v693_v54, %v702_v23 }
 0x1a3   : > { %v3329_v0 = vmin.f32 %v694_v22, %v703_v48  ;;  %v3345_v49 = vmin.f32 %v695_v53, %v704_v31  ;;  %v679_v21 = vmul.f32 %v3265_v11, %v3056_v61  ;;  %v366_v19 = vmul.f32 0.587, %v3071_v6  ;;  %v4488_v31 = vld [vmem:[#allocation12_spill] sm:$0xff] }
 0x1a4   : > { %732 = vrot.lane.b32.xlu1 %v3287_v26, %s2799_s17  ;;  %718 = vrot.lane.b32.xlu0 %v3289_v45, %s2799_s17  ;;  %v382_v30 = vmul.f32 0.114, %v3154_v2  ;;  %v689_v6 = vmul.f32 %v3267_v12, %v3143_v57  ;;  %v359_v54 = vmul.f32 0.2989, %v2965_v20  ;;  %v367_v2 = vmul.f32 0.587, %v3074_v7 }
 0x1a5   : > { %v696_v56 = vmin.f32 %v679_v21, %v688_v14  ;;  %v374_v16 = vadd.f32 %v366_v19, %v358_v35  ;;  %v706_v20 = vmul.f32 %v3281_v62, %v3231_v1  ;;  %v364_v21 = vmul.f32 0.2989, %v4488_v31  ;;  %v4489_v14 = vld [vmem:[#allocation13_spill] sm:$0xff]  ;;  %v4490_v19 = vld [vmem:[#allocation26_spill] sm:$0xff] }
 0x1a6   : > { %v375_v41 = vadd.f32 %v367_v2, %v359_v54  ;;  %v697_v22 = vmin.f32 %v680_v15, %v689_v6  ;;  %v365_v35 = vmul.f32 0.2989, %v4489_v14  ;;  %v385_v1 = vmul.f32 0.114, %v3167_v46 }
 0x1a7   : > { %v3364_v52 = vmin.f32 %v696_v56, %v705_v28  ;;  %v390_v23 = vadd.f32 %v382_v30, %v374_v16  ;;  %v372_v56 = vmul.f32 0.587, %v4490_v19  ;;  %v4491_v16 = vld [vmem:[#allocation27_spill] sm:$0xff]  ;;  %v389_v28 = vmul.f32 0.114, %v3203_v36 }
 0x1a8   : > { %720 = vrot.lane.b32.xlu1 %v3297_v29, %s2799_s17  ;;  %765 = vrot.lane.b32.xlu0 %v3287_v26, %s2800_s18  ;;  %v391_v48 = vadd.f32 %v383_v38, %v375_v41  ;;  %v3383_v12 = vmin.f32 %v697_v22, %v706_v20  ;;  %v373_v30 = vmul.f32 0.587, %v4491_v16  ;;  %v716_v41 = vlaneseq }
 0x1a9   : > { %v398_v11 = vadd.f32 1.0, %v390_v23  ;;  %v3418_v15 = vadd.f32 %v372_v56, %v364_v21 }
 0x1aa   : > { %v399_v7 = vadd.f32 1.0, %v391_v48  ;;  %v381_v6 = vadd.f32 %v373_v30, %v365_v35  ;;  %v3422_v48 = vand.u32 127, %v716_v41  ;;  %v4494_v30 = vld [vmem:[#allocation8_spill] sm:$0xff] }
 0x1ab   : > { %v3385_v25 = vmul.f32 0.5, %v398_v11 }
 0x1ac   : > { %751 = vrot.lane.b32.xlu1 %v3289_v45, %s2800_s18  ;;  %784 = vrot.lane.b32.xlu0 %v3289_v45, %s2801_s19  ;;  %v3387_v59 = vmul.f32 0.5, %v399_v7  ;;  %v3420_v54 = vadd.f32 %v389_v28, %v381_v6  ;;  %vm734_vm0 = vcmp.ge.s32.totalorder %v3422_v48, 2  ;;  %vm767_vm1 = vcmp.ge.s32.totalorder %v3422_v48, 1  ;;  %v4495_v6 = vld [vmem:[#allocation20_spill] sm:$0xff] }
 0x1ad   : > { %4486 = vst [vmem:[#allocation50_spill] sm:$0xff] %v3385_v25  ;;  %v1079_v5 = vmul.f32 %v3385_v25, %v3385_v25  ;;  %vm800_vm2 = vcmp.lt.s32.totalorder %v3422_v48, 127  ;;  %vm833_vm3 = vcmp.lt.s32.totalorder %v3422_v48, 126  ;;  %v360_v28 = vmul.f32 0.2989, %v4494_v30 }
 0x1ae   : > { %4487 = vst [vmem:[#allocation51_spill] sm:$0xff] %v3387_v59  ;;  %v1080_v53 = vmul.f32 %v3387_v59, %v3387_v59 }
 0x1b0   : > { %753 = vrot.lane.b32.xlu1 %v3297_v29, %s2800_s18  ;;  %722 = vrot.lane.b32.xlu0 %v3313_v32, %s2799_s17  ;;  %v2492_v62 = vpack.c.bf16 %v1080_v53, %v1079_v5  ;;  %v4492_v5 = vld [vmem:[#allocation9_spill] sm:$0xff] }
 0x1b1   : > { %v361_v53 = vmul.f32 0.2989, %v4492_v5  ;;  %v368_v5 = vmul.f32 0.587, %v4495_v6 }
 0x1b2   : > { %2493 = vmatprep.subr.bf16.mxu1 %v2492_v62  ;;  %v4493_v62 = vld [vmem:[#allocation23_spill] sm:$0xff] }
 0x1b3   : > { %v369_v31 = vmul.f32 0.587, %v4493_v62  ;;  %v376_v6 = vadd.f32 %v368_v5, %v360_v28 }
 0x1b4   : > { %798 = vrot.lane.b32.xlu1 %v3287_v26, %s2801_s19  ;;  %786 = vrot.lane.b32.xlu0 %v3297_v29, %s2801_s19 }
 0x1b5   : > { %v377_v62 = vadd.f32 %v369_v31, %v361_v53  ;;  %v4498_v31 = vld [vmem:[#allocation10_spill] sm:$0xff] }
 0x1b7   : > { %v393_v46 = vadd.f32 %v385_v1, %v377_v62 }
 0x1b8   : > { %724 = vrot.lane.b32.xlu1 %v3329_v0, %s2799_s17  ;;  %831 = vrot.lane.b32.xlu0 %v3287_v26, %s2802_s20 }
 0x1bc   : > { %817 = vrot.lane.b32.xlu1 %v3289_v45, %s2802_s20  ;;  %757 = vrot.lane.b32.xlu0 %v3329_v0, %s2800_s18 }
 0x1c0   : > { %755 = vrot.lane.b32.xlu1 %v3313_v32, %s2800_s18  ;;  %726 = vrot.lane.b32.xlu0 %v3345_v49, %s2799_s17 }
 0x1c4   : > { %819 = vrot.lane.b32.xlu1 %v3297_v29, %s2802_s20  ;;  %788 = vrot.lane.b32.xlu0 %v3313_v32, %s2801_s19 }
 0x1c8   : > { %728 = vrot.lane.b32.xlu1 %v3364_v52, %s2799_s17  ;;  %759 = vrot.lane.b32.xlu0 %v3345_v49, %s2800_s18 }
 0x1cc   : > { %790 = vrot.lane.b32.xlu1 %v3329_v0, %s2801_s19  ;;  %821 = vrot.lane.b32.xlu0 %v3313_v32, %s2802_s20 }
 0x1d0   : > { %761 = vrot.lane.b32.xlu1 %v3364_v52, %s2800_s18  ;;  %730 = vrot.lane.b32.xlu0 %v3383_v12, %s2799_s17  ;;  %s271_s17 = sand.u32 1, %s2786_s22  }
 0x1d1   : > { %s4311_s9 = scalar_lea.sflag [#allocation3], %s271_s17 }
 0x1d4   : > { %823 = vrot.lane.b32.xlu1 %v3329_v0, %s2802_s20  ;;  %794 = vrot.lane.b32.xlu0 %v3364_v52, %s2801_s19 }
 0x1d8   : > { %792 = vrot.lane.b32.xlu1 %v3345_v49, %s2801_s19  ;;  %825 = vrot.lane.b32.xlu0 %v3345_v49, %s2802_s20 }
 0x1dc   : > { %763 = vrot.lane.b32.xlu1 %v3383_v12, %s2800_s18  ;;  %796 = vrot.lane.b32.xlu0 %v3383_v12, %s2801_s19  ;;  %s4207_s18 = smul.u32 192, %s271_s17 }
 0x1de   : > { %s4231_s19 = scalar_lea.vmem [#allocation5], %s4207_s18 }
 0x1df   : > { %s2088_s26 = sshll.u32 %s4231_s19, 4  ;;  %s4293_s26 = int_to_ptr.vmem [resolvable:$true] %s2088_s26 }
 0x1e0   : > { %827 = vrot.lane.b32.xlu1 %v3364_v52, %s2802_s20  ;;  %s2728_s10 = scalar_lea.vmem %s4293_s26, 3072  ;;  %p2735_p13 = scmp.lt.s32.totalorder %s4293_s26, %s2733_s13 }
 0x1e1   : > { %p2729_p9 = scmp.ne.s32.totalorder %s4293_s26, %s2728_s10  ;;  %p2736_p0 = scmp.lt.s32.totalorder %s2734_s14, %s2728_s10 }
 0x1e3   : > { %p2730_p10 = pnand %p2729_p9, %p2879_p5  ;;  %p2737_p1 = por %p2736_p0, %p2735_p13 }
 0x1e4   : > { %829 = vrot.lane.b32.xlu1 %v3383_v12, %s2802_s20  ;;  %s2614_s20 = smul.u32 3072, %s2862_s25 }
 0x1e5   : > { %p2731_p12 = pneg %p2730_p10 }
 0x1e6   : > { %s4301_s29 = scalar_lea.hbm %s4358_s6, %s2614_s20 }
 0x1e7   : > { %p2738_p2 = pnand %p2737_p1, %p2731_p12 }
 0x216   : > { %v733_v2 = vpop.permute.xlu1 %732  ;;  %v719_v23 = vpop.permute.xlu0 %718 }
 0x217   : > { %v742_v21 = vsel %vm734_vm0, %v733_v2, 1.0  ;;  %v735_v14 = vsel %vm734_vm0, %v719_v23, 1.0 }
 0x218   : > { %v750_v2 = vmin.f32 %v3287_v26, %v742_v21  ;;  %v743_v23 = vmin.f32 %v3289_v45, %v735_v14  ;;  %v4497_v26 = vld [vmem:[#allocation35_spill] sm:$0xff]  ;;  %v3453_v45 = vshrl.u32 %v716_v41, 7  ;;  %v362_v14 = vmul.f32 0.2989, %v4498_v31  ;;  %v4501_v31 = vld [vmem:[#allocation37_spill] sm:$0xff] }
 0x219   : > { %v384_v21 = vmul.f32 0.114, %v4497_v26 }
 0x21a   : > { %v721_v38 = vpop.permute.xlu1 %720  ;;  %v766_v22 = vpop.permute.xlu0 %765  ;;  %vm867_vm4 = vcmp.lt.s32.totalorder %v3453_v45, 2  ;;  %vm876_vm5 = vcmp.ge.s32.totalorder %v3453_v45, 2  ;;  %vm908_vm6 = vcmp.lt.s32.totalorder %v3453_v45, 1  ;;  %vm949_vm7 = vcmp.lt.s32.totalorder %v3453_v45, 7 }
 0x21b   : > { %v775_v56 = vsel %vm767_vm1, %v766_v22, 1.0  ;;  %v736_v41 = vsel %vm734_vm0, %v721_v38, 1.0  ;;  %v392_v1 = vadd.f32 %v384_v21, %v376_v6  ;;  %vm990_vm8 = vcmp.lt.s32.totalorder %v3453_v45, 6 }
 0x21c   : > { %v783_v57 = vmin.f32 %v750_v2, %v775_v56  ;;  %v4499_v56 = vld [vmem:[#allocation24_spill] sm:$0xff]  ;;  %v4500_v2 = vld [vmem:[#allocation25_spill] sm:$0xff]  ;;  %v744_v38 = vmin.f32 %v3297_v29, %v736_v41  ;;  %vm917_vm9 = vcmp.ge.s32.totalorder %v3453_v45, 1 }
 0x21e   : > { %v752_v11 = vpop.permute.xlu1 %751  ;;  %v785_v20 = vpop.permute.xlu0 %784 }
 0x21f   : > { %v768_v16 = vsel %vm767_vm1, %v752_v11, 1.0  ;;  %v4496_v11 = vld [vmem:[#allocation11_spill] sm:$0xff] }
 0x220   : > { %v776_v9 = vmin.f32 %v743_v23, %v768_v16  ;;  %v363_v51 = vmul.f32 0.2989, %v4496_v11  ;;  %v370_v16 = vmul.f32 0.587, %v4499_v56  ;;  %v371_v23 = vmul.f32 0.587, %v4500_v2 }
 0x221   : > { %v400_v56 = vadd.f32 1.0, %v392_v1 }
 0x222   : > { %v754_v36 = vpop.permute.xlu1 %753  ;;  %v3425_v7 = vpop.permute.xlu0 %722  ;;  %v378_v5 = vadd.f32 %v370_v16, %v362_v14  ;;  %v379_v62 = vadd.f32 %v371_v23, %v363_v51 }
 0x226   : > { %v799_v35 = vpop.permute.xlu1 %798  ;;  %v787_v19 = vpop.permute.xlu0 %786 }
 0x227   : > { %v808_v18 = vsel %vm800_vm2, %v799_v35, 1.0  ;;  %v801_v35 = vsel %vm800_vm2, %v785_v20, 1.0  ;;  %v401_v20 = vadd.f32 1.0, %v393_v46  ;;  %v802_v46 = vsel %vm800_vm2, %v787_v19, 1.0 }
 0x228   : > { %v816_v53 = vmin.f32 %v783_v57, %v808_v18  ;;  %v809_v11 = vmin.f32 %v776_v9, %v801_v35  ;;  %v769_v9 = vsel %vm767_vm1, %v754_v36, 1.0  ;;  %v387_v35 = vmul.f32 0.114, %v4501_v31 }
 0x229   : > { %v3484_v36 = vadd.s32 56, %v3453_v45  ;;  %v777_v51 = vmin.f32 %v744_v38, %v769_v9  ;;  %v3495_v19 = vmul.f32 0.5, %v401_v20  ;;  %v3505_v20 = vmul.f32 0.5, %v400_v56 }
 0x22a   : > { %v3447_v22 = vpop.permute.xlu1 %724  ;;  %v832_v27 = vpop.permute.xlu0 %831  ;;  %v395_v41 = vadd.f32 %v387_v35, %v379_v62 }
 0x22b   : > { %v841_v30 = vsel %vm833_vm3, %v832_v27, 1.0  ;;  %4502 = vst [vmem:[#allocation12_spill] sm:$0xff] %v3495_v19  ;;  %v810_v2 = vmin.f32 %v777_v51, %v802_v46  ;;  %4503 = vst [vmem:[#allocation13_spill] sm:$0xff] %v3505_v20  ;;  %v3522_v38 = vmul.f32 %v3505_v20, %v3505_v20  ;;  %v3526_v31 = vmul.f32 %v3495_v19, %v3495_v19 }
 0x22c   : > { %v3460_v37 = vmin.f32 %v816_v53, %v841_v30  ;;  %v386_v30 = vmul.f32 0.114, %v3174_v8  ;;  %vm965_vm10 = vcmp.lt.s32.totalorder %v3484_v36, 63  ;;  %vm1006_vm11 = vcmp.lt.s32.totalorder %v3484_v36, 62 }
 0x22e   : > { %v818_v27 = vpop.permute.xlu1 %817  ;;  %v3462_v28 = vpop.permute.xlu0 %757  ;;  %v4384_v26 = vrot.slane %v3460_v37, 6  ;;  %v394_v16 = vadd.f32 %v386_v30, %v378_v5 }
 0x22f   : > { %v834_v57 = vsel %vm833_vm3, %v818_v27, 1.0  ;;  %v4383_v27 = vrot.slane %v3460_v37, 7 }
 0x230   : > { %v3468_v18 = vmin.f32 %v809_v11, %v834_v57  ;;  %v737_v57 = vsel %vm734_vm0, %v3425_v7, 1.0  ;;  %v402_v35 = vadd.f32 1.0, %v394_v16 }
 0x231   : > { %v745_v46 = vmin.f32 %v3313_v32, %v737_v57 }
 0x232   : > { %v859_v6 = vrot.slane %v3468_v18, 6  ;;  %v756_v21 = vpop.permute.xlu1 %755  ;;  %v3478_v53 = vpop.permute.xlu0 %726  ;;  %v4385_v29 = vrot.slane %v3468_v18, 7  ;;  %v4506_v13 = vrot.slane %v3468_v18, 2 }
 0x233   : > { %v770_v30 = vsel %vm767_vm1, %v756_v21, 1.0 }
 0x234   : > { %v875_v8 = vsel %vm867_vm4, %v4384_v26, %v859_v6  ;;  %v916_v62 = vsel %vm908_vm6, %v4383_v27, %v4385_v29  ;;  %v778_v16 = vmin.f32 %v745_v46, %v770_v30  ;;  %v4504_v26 = vld [vmem:[#allocation38_spill] sm:$0xff]  ;;  %v3547_v29 = vmul.f32 0.5, %v402_v35 }
 0x235   : > { %v884_v14 = vsel %vm876_vm5, %v875_v8, 1.0  ;;  %v388_v7 = vmul.f32 0.114, %v4504_v26  ;;  %v738_v30 = vsel %vm734_vm0, %v3447_v22, 1.0 }
 0x236   : > { %v820_v23 = vpop.permute.xlu1 %819  ;;  %v789_v11 = vpop.permute.xlu0 %788  ;;  %v892_v5 = vmin.f32 %v3468_v18, %v884_v14  ;;  %4505 = vst [vmem:[#allocation26_spill] sm:$0xff] %v3547_v29 }
 0x237   : > { %v835_v1 = vsel %vm833_vm3, %v820_v23, 1.0  ;;  %v803_v21 = vsel %vm800_vm2, %v789_v11, 1.0  ;;  %v925_v23 = vsel %vm917_vm9, %v916_v62, 1.0 }
 0x238   : > { %v3507_v9 = vmin.f32 %v810_v2, %v835_v1  ;;  %v403_v2 = vadd.f32 1.0, %v395_v41  ;;  %v4386_v1 = vrot.slane %v3468_v18, 1  ;;  %v933_v57 = vmin.f32 %v892_v5, %v925_v23 }
 0x23a   : > { %v860_v56 = vrot.slane %v3507_v9, 6  ;;  %v729_v51 = vpop.permute.xlu1 %728  ;;  %v760_v8 = vpop.permute.xlu0 %759  ;;  %v942_v14 = vrot.slane %v3507_v9, 1  ;;  %v983_v27 = vrot.slane %v3507_v9, 2  ;;  %v901_v26 = vrot.slane %v3507_v9, 7 }
 0x23b   : > { %v3560_v62 = vmul.f32 0.5, %v403_v2  ;;  %v3576_v2 = vmul.f32 %v3547_v29, %v3547_v29 }
 0x23c   : > { %v874_v32 = vsel %vm867_vm4, %v859_v6, %v860_v56  ;;  %v956_v41 = vsel %vm949_vm7, %v4386_v1, %v942_v14  ;;  %v811_v6 = vmin.f32 %v778_v16, %v803_v21  ;;  %v997_v35 = vsel %vm990_vm8, %v4506_v13, %v983_v27 }
 0x23d   : > { %v974_v23 = vmin.f32 %v933_v57, %v956_v41  ;;  %v893_v11 = vmin.f32 %v3507_v9, %v874_v32  ;;  %4507 = vst [vmem:[#allocation27_spill] sm:$0xff] %v3560_v62  ;;  %v396_v16 = vadd.f32 %v388_v7, %v3418_v15  ;;  %v746_v57 = vmin.f32 %v3329_v0, %v738_v30 }
 0x23e   : > { %v791_v5 = vpop.permute.xlu1 %790  ;;  %v822_v46 = vpop.permute.xlu0 %821  ;;  %v771_v9 = vsel %vm767_vm1, %v3462_v28, 1.0  ;;  %v739_v13 = vsel %vm734_vm0, %v3478_v53, 1.0  ;;  %v4508_v15 = vrot.slane %v3468_v18, 7  ;;  %v740_v21 = vsel %vm734_vm0, %v729_v51, 1.0 }
 0x23f   : > { %v836_v1 = vsel %vm833_vm3, %v822_v46, 1.0  ;;  %v1015_v22 = vmin.f32 %v974_v23, %v997_v35  ;;  %v804_v53 = vsel %vm800_vm2, %v791_v5, 1.0  ;;  %v3589_v46 = vmul.f32 %v3560_v62, %v3560_v62 }
 0x240   : > { %v3562_v39 = vmin.f32 %v811_v6, %v836_v1  ;;  %v915_v0 = vsel %vm908_vm6, %v4508_v15, %v901_v26  ;;  %v779_v23 = vmin.f32 %v746_v57, %v771_v9  ;;  %v747_v35 = vmin.f32 %v3345_v49, %v739_v13 }
 0x241   : > { %v934_v30 = vmin.f32 %v893_v11, %v915_v0  ;;  %v1023_v6 = vmul.f32 0.95, %v1015_v22  ;;  %v772_v28 = vsel %vm767_vm1, %v760_v8, 1.0  ;;  %v404_v34 = vadd.f32 1.0, %v396_v16 }
 0x242   : > { %v861_v1 = vrot.slane %v3562_v39, 6  ;;  %v762_v32 = vpop.permute.xlu1 %761  ;;  %v731_v41 = vpop.permute.xlu0 %730  ;;  %v943_v7 = vrot.slane %v3562_v39, 1  ;;  %v902_v5 = vrot.slane %v3562_v39, 7  ;;  %v812_v0 = vmin.f32 %v779_v23, %v804_v53 }
 0x243   : > { %v4509_v49 = vrot.slane %v3562_v39, 2  ;;  %v1031_v9 = vsub.f32 1.0, %v1023_v6  ;;  %v780_v53 = vmin.f32 %v747_v35, %v772_v28  ;;  %v741_v6 = vsel %vm734_vm0, %v731_v41, 1.0 }
 0x244   : > { %v955_v15 = vsel %vm949_vm7, %v942_v14, %v943_v7  ;;  %v873_v22 = vsel %vm867_vm4, %v860_v56, %v861_v1  ;;  %v748_v56 = vmin.f32 %v3364_v52, %v740_v21 }
 0x245   : > { %v975_v11 = vmin.f32 %v934_v30, %v955_v15  ;;  %v996_v51 = vsel %vm990_vm8, %v983_v27, %v4509_v49  ;;  %v894_v14 = vmin.f32 %v3562_v39, %v873_v22  ;;  %v405_v30 = vadd.f32 1.0, %v3420_v54 }
 0x246   : > { %v824_v44 = vpop.permute.xlu1 %823  ;;  %v795_v57 = vpop.permute.xlu0 %794  ;;  %v773_v27 = vsel %vm767_vm1, %v762_v32, 1.0  ;;  %v1071_v28 = vmul.f32 %v1031_v9, %v3385_v25 }
 0x247   : > { %v837_v8 = vsel %vm833_vm3, %v824_v44, 1.0  ;;  %v1016_v13 = vmin.f32 %v975_v11, %v996_v51  ;;  %v914_v44 = vsel %vm908_vm6, %v901_v26, %v902_v5 }
 0x248   : > { %v3610_v23 = vmin.f32 %v812_v0, %v837_v8  ;;  %v935_v35 = vmin.f32 %v894_v14, %v914_v44 }
 0x249   : > { %v1024_v22 = vmul.f32 0.95, %v1016_v13 }
 0x24a   : > { %v862_v54 = vrot.slane %v3610_v23, 6  ;;  %v944_v52 = vrot.slane %v3610_v23, 1  ;;  %v793_v21 = vpop.permute.xlu1 %792  ;;  %v826_v16 = vpop.permute.xlu0 %825  ;;  %v903_v11 = vrot.slane %v3610_v23, 7  ;;  %v985_v41 = vrot.slane %v3610_v23, 2 }
 0x24b   : > { %v805_v32 = vsel %vm800_vm2, %v793_v21, 1.0  ;;  %v1032_v0 = vsub.f32 1.0, %v1024_v22  ;;  %v838_v26 = vsel %vm833_vm3, %v826_v16, 1.0  ;;  %v781_v21 = vmin.f32 %v748_v56, %v773_v27 }
 0x24c   : > { %v813_v49 = vmin.f32 %v780_v53, %v805_v32  ;;  %v872_v51 = vsel %vm867_vm4, %v861_v1, %v862_v54  ;;  %v954_v8 = vsel %vm949_vm7, %v943_v7, %v944_v52  ;;  %v749_v22 = vmin.f32 %v3383_v12, %v741_v6 }
 0x24d   : > { %v2476_v13 = vpack.c.bf16 %v1032_v0, %v1031_v9  ;;  %v1072_v14 = vmul.f32 %v1032_v0, %v3387_v59  ;;  %v895_v44 = vmin.f32 %v3610_v23, %v872_v51  ;;  %v976_v15 = vmin.f32 %v935_v35, %v954_v8 }
 0x24e   : > { %v846_v17 = vmin.f32 %v813_v49, %v838_v26  ;;  %v764_v53 = vpop.permute.xlu1 %763  ;;  %v3636_v32 = vmul.f32 0.5, %v404_v34  ;;  %v806_v16 = vsel %vm800_vm2, %v795_v57, 1.0  ;;  %v913_v9 = vsel %vm908_vm6, %v902_v5, %v903_v11  ;;  %v797_v0 = vpop.permute.xlu0 %796 }
 0x24f   : > { %v774_v1 = vsel %vm767_vm1, %v764_v53, 1.0  ;;  %2477 = vmatprep.subr.bf16.mxu0 %v2476_v13  ;;  %v2494_v7 = vpack.c.bf16 %v1072_v14, %v1071_v28  ;;  %v4511_v12 = vpack.c.bf16 %v3387_v59, %v3385_v25  ;;  %v936_v56 = vmin.f32 %v895_v44, %v913_v9 }
 0x250   : > { %4510 = vst [vmem:[#allocation9_spill] sm:$0xff] %v3636_v32  ;;  %v863_v23 = vrot.slane %v846_v17, 6  ;;  %v945_v35 = vrot.slane %v846_v17, 1  ;;  %v4512_v34 = vrot.slane %v3562_v39, 2  ;;  %v904_v27 = vrot.slane %v846_v17, 7 }
 0x251   : > { %2479 = vmatpush1.bf16.msra.mxu0 %v4511_v12  ;;  %v782_v6 = vmin.f32 %v749_v22, %v774_v1  ;;  %2495 = vmatpush1.bf16.msra.mxu1 %v2494_v7  ;;  %v986_v28 = vrot.slane %v846_v17, 2  ;;  %v814_v26 = vmin.f32 %v781_v21, %v806_v16  ;;  %v4513_v8 = vpack.c.bf16 %v3526_v31, %v3522_v38 }
 0x252   : > { %v995_v57 = vsel %vm990_vm8, %v4512_v34, %v985_v41  ;;  %v828_v5 = vpop.permute.xlu1 %827  ;;  %v953_v51 = vsel %vm949_vm7, %v944_v52, %v945_v35  ;;  %v871_v39 = vsel %vm867_vm4, %v862_v54, %v863_v23  ;;  %v3658_v13 = vmul.f32 0.5, %v405_v30 }
 0x253   : > { %v1017_v49 = vmin.f32 %v976_v15, %v995_v57  ;;  %2497 = vmatprep.subr.bf16.mxu1 %v4513_v8  ;;  %v948_v14 = vrot.slane %v3460_v37, 1  ;;  %v839_v44 = vsel %vm833_vm3, %v828_v5, 1.0  ;;  %v977_v15 = vmin.f32 %v936_v56, %v953_v51 }
 0x254   : > { %4514 = vst [vmem:[#allocation23_spill] sm:$0xff] %v3658_v13  ;;  %v807_v22 = vsel %vm800_vm2, %v797_v0, 1.0  ;;  %v847_v52 = vmin.f32 %v814_v26, %v839_v44  ;;  %v994_v38 = vsel %vm990_vm8, %v985_v41, %v986_v28  ;;  %v896_v31 = vmin.f32 %v846_v17, %v871_v39 }
 0x255   : > { %v1025_v21 = vmul.f32 0.95, %v1017_v49  ;;  %v815_v53 = vmin.f32 %v782_v6, %v807_v22  ;;  %v1018_v16 = vmin.f32 %v977_v15, %v994_v38  ;;  %v912_v30 = vsel %vm908_vm6, %v903_v11, %v904_v27 }
 0x256   : > { %v864_v1 = vrot.slane %v847_v52, 6  ;;  %v905_v7 = vrot.slane %v847_v52, 7  ;;  %v946_v9 = vrot.slane %v847_v52, 1  ;;  %v830_v12 = vpop.permute.xlu1 %829  ;;  %v937_v56 = vmin.f32 %v896_v31, %v912_v30 }
 0x257   : > { %v1033_v54 = vsub.f32 1.0, %v1025_v21  ;;  %v840_v34 = vsel %vm833_vm3, %v830_v12, 1.0  ;;  %v1026_v57 = vmul.f32 0.95, %v1018_v16  ;;  %v987_v17 = vrot.slane %v847_v52, 2 }
 0x258   : > { %v848_v6 = vmin.f32 %v815_v53, %v840_v34  ;;  %v870_v0 = vsel %vm867_vm4, %v863_v23, %v864_v1  ;;  %v911_v11 = vsel %vm908_vm6, %v904_v27, %v905_v7  ;;  %v952_v49 = vsel %vm949_vm7, %v945_v35, %v946_v9 }
 0x259   : > { %v1073_v41 = vmul.f32 %v1033_v54, %v3505_v20  ;;  %v1034_v26 = vsub.f32 1.0, %v1026_v57  ;;  %v897_v5 = vmin.f32 %v847_v52, %v870_v0  ;;  %v978_v51 = vmin.f32 %v937_v56, %v952_v49 }
 0x25a   : > { %v993_v48 = vsel %vm990_vm8, %v986_v28, %v987_v17  ;;  %v865_v8 = vrot.slane %v848_v6, 6  ;;  %v906_v39 = vrot.slane %v848_v6, 7  ;;  %v947_v44 = vrot.slane %v848_v6, 1 }
 0x25b   : > { %v988_v15 = vrot.slane %v848_v6, 2  ;;  %v2480_v21 = vpack.c.bf16 %v1034_v26, %v1033_v54  ;;  %v1074_v22 = vmul.f32 %v1034_v26, %v3495_v19  ;;  %v938_v23 = vmin.f32 %v897_v5, %v911_v11 }
 0x25c   : > { %v1019_v38 = vmin.f32 %v978_v51, %v993_v48  ;;  %v951_v27 = vsel %vm949_vm7, %v946_v9, %v947_v44  ;;  %v4515_v35 = vrot.slane %v3460_v37, 6  ;;  %v869_v28 = vsel %vm867_vm4, %v864_v1, %v865_v8 }
 0x25d   : > { %v989_v31 = vrot.slane %v3460_v37, 2  ;;  %2481 = vmatprep.subr.bf16.mxu0 %v2480_v21  ;;  %v2498_v53 = vpack.c.bf16 %v1074_v22, %v1073_v41  ;;  %v979_v16 = vmin.f32 %v938_v23, %v951_v27  ;;  %v898_v30 = vmin.f32 %v848_v6, %v869_v28 }
 0x25e   : > { %v868_v52 = vsel %vm867_vm4, %v865_v8, %v4515_v35  ;;  %v1027_v54 = vmul.f32 0.95, %v1019_v38  ;;  %v4516_v12 = vpack.c.bf16 %v3495_v19, %v3505_v20  ;;  %v992_v9 = vsel %vm990_vm8, %v987_v17, %v988_v15 }
 0x25f   : > { %v899_v56 = vmin.f32 %v3460_v37, %v868_v52  ;;  %v910_v34 = vsel %vm908_vm6, %v905_v7, %v906_v39  ;;  %v4517_v1 = vrot.slane %v3468_v18, 1  ;;  %2499 = vmatpush1.bf16.msra.mxu1 %v2498_v53  ;;  %v1020_v41 = vmin.f32 %v979_v16, %v992_v9  ;;  %v1048_v53 = vld [vmem:[%s4356_s4 + $0x8] sm:$0xff] }
 0x260   : > { %2483 = vmatpush1.bf16.msra.mxu0 %v4516_v12  ;;  %v4518_v6 = vrot.slane %v3460_v37, 7  ;;  %v939_v11 = vmin.f32 %v898_v30, %v910_v34  ;;  %v4519_v17 = vpack.c.bf16 %v3589_v46, %v3576_v2  ;;  %v950_v7 = vsel %vm949_vm7, %v947_v44, %v948_v14 }
 0x261   : > { %v957_v57 = vsel %vm949_vm7, %v948_v14, %v4517_v1  ;;  %v4520_v26 = vrot.slane %v3468_v18, 2  ;;  %v1028_v37 = vmul.f32 0.95, %v1020_v41  ;;  %v1035_v51 = vsub.f32 1.0, %v1027_v54  ;;  %v1049_v1 = vld [vmem:[%s4356_s4 + $0x10] sm:$0xff]  ;;  %v3750_v41 = vld [vmem:[%s4355_s3] sm:$0xff] }
 0x262   : > { %v909_v0 = vsel %vm908_vm6, %v906_v39, %v4518_v6  ;;  %2501 = vmatprep.subr.bf16.mxu1 %v4519_v17  ;;  %v973_v48 = vsel %vm965_vm10, %v957_v57, 1.0  ;;  %v980_v8 = vmin.f32 %v939_v11, %v950_v7  ;;  %v991_v2 = vsel %vm990_vm8, %v988_v15, %v989_v31  ;;  %v1050_v57 = vld [vmem:[%s4356_s4 + $0x18] sm:$0xff]  ;;  %v1052_v11 = vld [vmem:[%s4356_s4 + $0x28] sm:$0xff] }
 0x263   : > { %v940_v49 = vmin.f32 %v899_v56, %v909_v0  ;;  %v998_v5 = vsel %vm990_vm8, %v989_v31, %v4520_v26  ;;  %v1085_v46 = vmul.f32 %v3636_v32, %v3636_v32  ;;  %v1086_v18 = vmul.f32 %v3658_v13, %v3658_v13  ;;  %v1047_v31 = vld [vmem:[%s4356_s4] sm:$0xff]  ;;  %v1053_v26 = vld [vmem:[%s4356_s4 + $0x30] sm:$0xff] }
 0x264   : > { %v1036_v14 = vsub.f32 1.0, %v1028_v37  ;;  %v1014_v44 = vsel %vm1006_vm11, %v998_v5, 1.0  ;;  %v1021_v21 = vmin.f32 %v980_v8, %v991_v2  ;;  %v2486_v22 = vpack.c.bf16 %v3560_v62, %v3547_v29  ;;  %v1051_v0 = vld [vmem:[%s4356_s4 + $0x20] sm:$0xff]  ;;  %v1054_v5 = vld [vmem:[%s4356_s4 + $0x38] sm:$0xff]  ;;  %v3788_v37 = vld [vmem:[%s4355_s3 + $0x10] sm:$0xff] }
 0x265   : > { %v981_v39 = vmin.f32 %v940_v49, %v973_v48  ;;  %v1075_v38 = vmul.f32 %v1035_v51, %v3547_v29  ;;  %v2504_v35 = vpack.c.bf16 %v1086_v18, %v1085_v46  ;;  %v2490_v54 = vpack.c.bf16 %v3658_v13, %v3636_v32  ;;  %v3767_v49 = vld [vmem:[%s4355_s3 + $0x8] sm:$0xff]  ;;  %v1055_v48 = vld [vmem:[%s4356_s4 + $0x40] sm:$0xff]  ;;  %v1057_v46 = vld [vmem:[%s4356_s4 + $0x50] sm:$0xff] }
 0x266   : > { %v2484_v36 = vpack.c.bf16 %v1036_v14, %v1035_v51  ;;  %v1076_v27 = vmul.f32 %v1036_v14, %v3560_v62  ;;  %v1029_v45 = vmul.f32 0.95, %v1021_v21  ;;  %v3739_v56 = vpack.c.bf16 %v1048_v53, %v1047_v31  ;;  %v1056_v8 = vld [vmem:[%s4356_s4 + $0x48] sm:$0xff]  ;;  %v1058_v18 = vld [vmem:[%s4356_s4 + $0x58] sm:$0xff]  ;;  %v3830_v14 = vld [vmem:[%s4355_s3 + $0x20] sm:$0xff] }
 0x267   : > { %v1022_v23 = vmin.f32 %v981_v39, %v1014_v44  ;;  %v3753_v6 = vpack.c.bf16 %v1050_v57, %v1049_v1  ;;  %v4521_v17 = vmov 0.0   ;;  %v3774_v7 = vpack.c.bf16 %v1052_v11, %v1051_v0  ;;  %v3809_v39 = vld [vmem:[%s4355_s3 + $0x18] sm:$0xff]  ;;  %4522 = vst [vmem:[#allocation8_spill] sm:$0xff] %v3830_v14  ;;  %v1059_v21 = vld [vmem:[%s4356_s4 + $0x60] sm:$0xff] }
 0x268   : > { %2485 = vmatprep.subr.bf16.mxu0 %v2484_v36  ;;  %v2502_v52 = vpack.c.bf16 %v1076_v27, %v1075_v38  ;;  %v1037_v28 = vsub.f32 1.0, %v1029_v45  ;;  %v3795_v51 = vpack.c.bf16 %v1054_v5, %v1053_v26  ;;  %v3816_v2 = vpack.c.bf16 %v1056_v8, %v1055_v48  ;;  %v3866_v38 = vld [vmem:[%s4355_s3 + $0x30] sm:$0xff]  ;;  %v3879_v27 = vld [vmem:[%s4355_s3 + $0x38] sm:$0xff] }
 0x269   : > { %v1030_v15 = vmul.f32 0.95, %v1022_v23  ;;  %2487 = vmatpush1.bf16.msra.mxu0 %v2486_v22  ;;  %v3837_v44 = vpack.c.bf16 %v1058_v18, %v1057_v46  ;;  %v1060_v22 = vld [vmem:[%s4356_s4 + $0x68] sm:$0xff]  ;;  %4526 = vst [vmem:[#allocation10_spill] sm:$0xff] %v3866_v38  ;;  %4527 = vst [vmem:[#allocation24_spill] sm:$0xff] %v3879_v27  ;;  %v1061_v45 = vld [vmem:[%s4356_s4 + $0x70] sm:$0xff] }
 0x26a   : > { %2503 = vmatpush1.bf16.msra.mxu1 %v2502_v52  ;;  %v1077_v30 = vmul.f32 %v1037_v28, %v3636_v32  ;;  %v3851_v23 = vld [vmem:[%s4355_s3 + $0x28] sm:$0xff]  ;;  %v3858_v36 = vpack.c.bf16 %v1060_v22, %v1059_v21 }
 0x26b   : > { %v1038_v16 = vsub.f32 1.0, %v1030_v15  ;;  %2505 = vmatprep.subr.bf16.mxu1 %v2504_v35  ;;  %4523 = vst [vmem:[#allocation20_spill] sm:$0xff] %v3837_v44  ;;  %4524 = vst [vmem:[#allocation11_spill] sm:$0xff] %v3851_v23  ;;  %v1062_v15 = vld [vmem:[%s4356_s4 + $0x78] sm:$0xff] }
 0x26c   : > { %4525 = vst [vmem:[#allocation35_spill] sm:$0xff] %v3858_v36  ;;  %v3896_v35 = vpack.c.bf16 %v1062_v15, %v1061_v45 }
 0x26d   : > { %v2488_v12 = vpack.c.bf16 %v1038_v16, %v1037_v28  ;;  %v1078_v9 = vmul.f32 %v1038_v16, %v3658_v13 }
 0x26e   : > { %4528 = vst [vmem:[#allocation25_spill] sm:$0xff] %v3896_v35 }
 0x26f   : > { %2489 = vmatprep.subr.bf16.mxu0 %v2488_v12  ;;  %v2506_v34 = vpack.c.bf16 %v1078_v9, %v1077_v30 }
 0x270   : > { %2491 = vmatpush1.bf16.msra.mxu0 %v2490_v54 }
 0x271   : > { %2507 = vmatpush1.bf16.msra.mxu1 %v2506_v34  ;;  %2509 = vmatprep.subr.bf16.mxu0 %v3739_v56 }
 0x273   : > { %2216 = vmatmul.mubr.msk.f32.vlgmr.msra.gmra.mrb[0].mxu0 %vm1087_vm12, %v3750_v41 }
 0x274   : > { %1182 = vmatprep.mubr.f32.mxu0 %v4521_v17  ;;  %2224 = vmatmul.mubr.msk.f32.vlgmr.msra.gmra.mrb[0].mxu1 %vm1087_vm12, %v3750_v41 }
 0x275   : > { %1295 = vmatprep.mubr.f32.mxu1 %v4521_v17  ;;  %2511 = vmatpush3.bf16.msra.mxu0 %v3739_v56 }
 0x276   : > { %2513 = vmatprep.subr.bf16.mxu0 %v3753_v6 }
 0x277   : > { %2217 = vmatmul.mubr.msk.f32.gmra.mrb[2].mxu0 %vm1087_vm12, %v3767_v49 }
 0x278   : > { %1188 = vmatprep.mubr.f32.mxu0 %v4521_v17  ;;  %2225 = vmatmul.mubr.msk.f32.gmra.mrb[2].mxu1 %vm1087_vm12, %v3767_v49 }
 0x279   : > { %1301 = vmatprep.mubr.f32.mxu1 %v4521_v17  ;;  %2515 = vmatpush3.bf16.msra.mxu0 %v3753_v6 }
 0x27a   : > { %2517 = vmatprep.subr.bf16.mxu0 %v3774_v7 }
 0x27b   : > { %2218 = vmatmul.mubr.msk.f32.gmra.mrb[4].mxu0 %vm1087_vm12, %v3788_v37 }
 0x27c   : > { %1194 = vmatprep.mubr.f32.mxu0 %v4521_v17  ;;  %2226 = vmatmul.mubr.msk.f32.gmra.mrb[4].mxu1 %vm1087_vm12, %v3788_v37 }
 0x27d   : > { %1307 = vmatprep.mubr.f32.mxu1 %v4521_v17  ;;  %2519 = vmatpush3.bf16.msra.mxu0 %v3774_v7 }
 0x27e   : > { %2521 = vmatprep.subr.bf16.mxu0 %v3795_v51 }
 0x27f   : > { %2219 = vmatmul.mubr.msk.f32.gmra.mrb[6].mxu0 %vm1087_vm12, %v3809_v39 }
 0x280   : > { %1200 = vmatprep.mubr.f32.mxu0 %v4521_v17  ;;  %2227 = vmatmul.mubr.msk.f32.gmra.mrb[6].mxu1 %vm1087_vm12, %v3809_v39 }
 0x281   : > { %1313 = vmatprep.mubr.f32.mxu1 %v4521_v17  ;;  %2523 = vmatpush3.bf16.msra.mxu0 %v3795_v51 }
 0x282   : > { %2525 = vmatprep.subr.bf16.mxu0 %v3816_v2 }
 0x283   : > { %2220 = vmatmul.mubr.msk.f32.gmra.mrb[8].mxu0 %vm1087_vm12, %v3830_v14 }
 0x284   : > { %1206 = vmatprep.mubr.f32.mxu0 %v4521_v17  ;;  %2228 = vmatmul.mubr.msk.f32.gmra.mrb[8].mxu1 %vm1087_vm12, %v3830_v14 }
 0x285   : > { %1319 = vmatprep.mubr.f32.mxu1 %v4521_v17  ;;  %2527 = vmatpush3.bf16.msra.mxu0 %v3816_v2 }
 0x286   : > { %2529 = vmatprep.subr.bf16.mxu0 %v3837_v44 }
 0x287   : > { %2221 = vmatmul.mubr.msk.f32.gmra.mrb[10].mxu0 %vm1087_vm12, %v3851_v23 }
 0x288   : > { %1212 = vmatprep.mubr.f32.mxu0 %v4521_v17  ;;  %2229 = vmatmul.mubr.msk.f32.gmra.mrb[10].mxu1 %vm1087_vm12, %v3851_v23 }
 0x289   : > { %1325 = vmatprep.mubr.f32.mxu1 %v4521_v17  ;;  %2531 = vmatpush3.bf16.msra.mxu0 %v3837_v44 }
 0x28a   : > { %2533 = vmatprep.subr.bf16.mxu0 %v3858_v36 }
 0x28b   : > { %2222 = vmatmul.mubr.msk.f32.gmra.mrb[12].mxu0 %vm1087_vm12, %v3866_v38 }
 0x28c   : > { %1218 = vmatprep.mubr.f32.mxu0 %v4521_v17  ;;  %2230 = vmatmul.mubr.msk.f32.gmra.mrb[12].mxu1 %vm1087_vm12, %v3866_v38 }
 0x28d   : > { %1331 = vmatprep.mubr.f32.mxu1 %v4521_v17  ;;  %2535 = vmatpush3.bf16.msra.mxu0 %v3858_v36 }
 0x28e   : > { %2537 = vmatprep.subr.bf16.mxu0 %v3896_v35 }
 0x28f   : > { %2223 = vmatmul.mubr.msk.f32.gmra.mrb[14].mxu0 %vm1087_vm12, %v3879_v27 }
 0x290   : > { %2231 = vmatmul.mubr.msk.f32.gmra.mrb[14].mxu1 %vm1087_vm12, %v3879_v27 }
 0x291   : > { %1731 = vmatprep.mubr.f32.mxu1 %v4521_v17  ;;  %2539 = vmatpush3.bf16.msra.mxu0 %v3896_v35 }
 0x346   : > { %v1178_v52 = vpop.f32.mrb[0].mxu0 }
 0x347   : > { %v1180_v28 = vpop.f32.mrb[1].mxu0  ;;  %2372 = vmatprep.mubr.f32.mxu0 %v1178_v52  ;;  %v1291_v31 = vpop.f32.mrb[0].mxu1 }
 0x348   : > { %v1293_v53 = vpop.f32.mrb[1].mxu1 }
 0x34a   : > { %v1184_v16 = vpop.f32.mrb[2].mxu0 }
 0x34b   : > { %v1186_v54 = vpop.f32.mrb[3].mxu0  ;;  %2373 = vmatmul.mubr.f32.vlgmr.msra.gmra.mrb[16].mxu0 %v1184_v16  ;;  %v1297_v30 = vpop.f32.mrb[2].mxu1 }
 0x34c   : > { %v1299_v12 = vpop.f32.mrb[3].mxu1 }
 0x34e   : > { %v1190_v9 = vpop.f32.mrb[4].mxu0 }
 0x34f   : > { %v1192_v34 = vpop.f32.mrb[5].mxu0  ;;  %2375 = vmatprep.mubr.f32.mxu0 %v1190_v9  ;;  %v1303_v1 = vpop.f32.mrb[4].mxu1 }
 0x350   : > { %v1305_v57 = vpop.f32.mrb[5].mxu1 }
 0x352   : > { %v1196_v0 = vpop.f32.mrb[6].mxu0 }
 0x353   : > { %v1198_v11 = vpop.f32.mrb[7].mxu0  ;;  %2376 = vmatmul.mubr.f32.gmra.mrb[18].mxu0 %v1196_v0  ;;  %v1309_v26 = vpop.f32.mrb[6].mxu1 }
 0x354   : > { %v1311_v5 = vpop.f32.mrb[7].mxu1 }
 0x356   : > { %v1202_v48 = vpop.f32.mrb[8].mxu0 }
 0x357   : > { %v1204_v8 = vpop.f32.mrb[9].mxu0  ;;  %2378 = vmatprep.mubr.f32.mxu0 %v1202_v48  ;;  %v1315_v46 = vpop.f32.mrb[8].mxu1 }
 0x358   : > { %v1317_v18 = vpop.f32.mrb[9].mxu1 }
 0x35a   : > { %v1208_v21 = vpop.f32.mrb[10].mxu0 }
 0x35b   : > { %v1210_v22 = vpop.f32.mrb[11].mxu0  ;;  %2379 = vmatmul.mubr.f32.gmra.mrb[20].mxu0 %v1208_v21  ;;  %v1321_v45 = vpop.f32.mrb[10].mxu1 }
 0x35c   : > { %v1323_v15 = vpop.f32.mrb[11].mxu1 }
 0x35e   : > { %v1214_v52 = vpop.f32.mrb[12].mxu0 }
 0x35f   : > { %v1216_v16 = vpop.f32.mrb[13].mxu0  ;;  %2381 = vmatprep.mubr.f32.mxu0 %v1214_v52  ;;  %v1327_v9 = vpop.f32.mrb[12].mxu1 }
 0x360   : > { %v1329_v40 = vpop.f32.mrb[13].mxu1 }
 0x362   : > { %v1220_v24 = vpop.f32.mrb[14].mxu0 }
 0x363   : > { %v1222_v32 = vpop.f32.mrb[15].mxu0  ;;  %2382 = vmatmul.mubr.f32.gmra.mrb[22].mxu0 %v1220_v24  ;;  %v1333_v0 = vpop.f32.mrb[14].mxu1 }
 0x364   : > { %2384 = vmatprep.mubr.f32.mxu0 %v1180_v28  ;;  %v1335_v58 = vpop.f32.mrb[15].mxu1 }
 0x367   : > { %2385 = vmatmul.mubr.f32.gmra.mrb[24].mxu0 %v1186_v54 }
 0x368   : > { %2387 = vmatprep.mubr.f32.mxu0 %v1192_v34 }
 0x36b   : > { %2388 = vmatmul.mubr.f32.gmra.mrb[26].mxu0 %v1198_v11  ;;  %v3903_v11 = vld [vmem:[%s4357_s5 + $0x8] sm:$0xff] }
 0x36c   : > { %2390 = vmatprep.mubr.f32.mxu0 %v1204_v8  ;;  %4529 = vst [vmem:[#allocation37_spill] sm:$0xff] %v3903_v11  ;;  %v3930_v8 = vld [vmem:[%s4357_s5 + $0x10] sm:$0xff] }
 0x36d   : > { %4531 = vst [vmem:[#allocation52_spill] sm:$0xff] %v3930_v8 }
 0x36f   : > { %2391 = vmatmul.mubr.f32.gmra.mrb[28].mxu0 %v1210_v22 }
 0x370   : > { %2393 = vmatprep.mubr.f32.mxu0 %v1216_v16  ;;  %v3952_v16 = vld [vmem:[%s4357_s5 + $0x28] sm:$0xff] }
 0x373   : > { %2394 = vmatmul.mubr.f32.gmra.mrb[30].mxu0 %v1222_v32 }
 0x374   : > { %2396 = vmatprep.mubr.f32.mxu0 %v1291_v31 }
 0x377   : > { %2397 = vmatmul.mubr.f32.gmra.mrb[32].mxu0 %v1297_v30 }
 0x378   : > { %2399 = vmatprep.mubr.f32.mxu0 %v1303_v1 }
 0x37b   : > { %2400 = vmatmul.mubr.f32.gmra.mrb[34].mxu0 %v1309_v26 }
 0x37c   : > { %2402 = vmatprep.mubr.f32.mxu0 %v1315_v46 }
 0x37f   : > { %2403 = vmatmul.mubr.f32.gmra.mrb[36].mxu0 %v1321_v45 }
 0x380   : > { %2405 = vmatprep.mubr.f32.mxu0 %v1327_v9 }
 0x383   : > { %2406 = vmatmul.mubr.f32.gmra.mrb[38].mxu0 %v1333_v0  ;;  %v3960_v0 = vld [vmem:[%s4357_s5 + $0x20] sm:$0xff] }
 0x384   : > { %2408 = vmatprep.mubr.f32.mxu0 %v1293_v53  ;;  %v3908_v53 = vld [vmem:[%s4357_s5] sm:$0xff] }
 0x385   : > { %4530 = vst [vmem:[#allocation38_spill] sm:$0xff] %v3908_v53 }
 0x387   : > { %2409 = vmatmul.mubr.f32.gmra.mrb[40].mxu0 %v1299_v12 }
 0x388   : > { %2411 = vmatprep.mubr.f32.mxu0 %v1305_v57 }
 0x38b   : > { %2412 = vmatmul.mubr.f32.gmra.mrb[42].mxu0 %v1311_v5  ;;  %v3922_v5 = vld [vmem:[%s4357_s5 + $0x18] sm:$0xff] }
 0x38c   : > { %2414 = vmatprep.mubr.f32.mxu0 %v1317_v18 }
 0x38f   : > { %2415 = vmatmul.mubr.f32.gmra.mrb[44].mxu0 %v1323_v15 }
 0x390   : > { %2417 = vmatprep.mubr.f32.mxu0 %v1329_v40 }
 0x393   : > { %2418 = vmatmul.mubr.f32.gmra.mrb[46].mxu0 %v1335_v58 }
 0x41e   : > { %v2374_v24 = vpop.f32.mrb[16].mxu0 }
 0x41f   : > { %v1404_v28 = vpop.f32.mrb[17].mxu0  ;;  %v3911_v58 = vmul.f32 %v2374_v24, %v3903_v11 }
 0x420   : > { %v3917_v26 = vmul.f32 %v1404_v28, %v3908_v53 }
 0x422   : > { %v1611_v35 = vmul.f32 %v3917_v26, %v3917_v26 }
 0x426   : > { %v2377_v54 = vpop.f32.mrb[18].mxu0 }
 0x427   : > { %v1414_v32 = vpop.f32.mrb[19].mxu0  ;;  %v3941_v22 = vmul.f32 %v2377_v54, %v3922_v5 }
 0x428   : > { %v3947_v52 = vmul.f32 %v1414_v32, %v3930_v8 }
 0x42a   : > { %v1613_v14 = vmul.f32 %v3947_v52, %v3947_v52 }
 0x42e   : > { %v2380_v31 = vpop.f32.mrb[20].mxu0 }
 0x42f   : > { %v1424_v30 = vpop.f32.mrb[21].mxu0  ;;  %v3971_v32 = vmul.f32 %v2380_v31, %v3952_v16  ;;  %v3990_v31 = vld [vmem:[%s4357_s5 + $0x30] sm:$0xff] }
 0x436   : > { %v2383_v34 = vpop.f32.mrb[22].mxu0 }
 0x437   : > { %v1434_v1 = vpop.f32.mrb[23].mxu0 }
 0x438   : > { %v4007_v55 = vmul.f32 %v1434_v1, %v3990_v31 }
 0x43a   : > { %v2386_v40 = vpop.f32.mrb[24].mxu0 }
 0x43b   : > { %v3914_v12 = vmul.f32 %v2386_v40, %v3903_v11  ;;  %v1444_v57 = vpop.f32.mrb[25].mxu0 }
 0x43c   : > { %v3925_v48 = vmul.f32 %v1444_v57, %v3908_v53 }
 0x43d   : > { %v3934_v46 = vmul.f32 %v3914_v12, %v3911_v58 }
 0x43e   : > { %v3938_v18 = vmul.f32 %v3925_v48, %v3917_v26  ;;  %v2389_v21 = vpop.f32.mrb[26].mxu0 }
 0x43f   : > { %v3944_v45 = vmul.f32 %v2389_v21, %v3922_v5  ;;  %v1454_v15 = vpop.f32.mrb[27].mxu0  ;;  %v3977_v21 = vmul.f32 %v1424_v30, %v3960_v0 }
 0x440   : > { %v3955_v9 = vmul.f32 %v1454_v15, %v3930_v8  ;;  %v3982_v15 = vld [vmem:[%s4357_s5 + $0x38] sm:$0xff] }
 0x441   : > { %v3964_v24 = vmul.f32 %v3944_v45, %v3941_v22  ;;  %v4001_v33 = vmul.f32 %v2383_v34, %v3982_v15 }
 0x442   : > { %v3968_v28 = vmul.f32 %v3955_v9, %v3947_v52  ;;  %v2392_v54 = vpop.f32.mrb[28].mxu0 }
 0x443   : > { %v3974_v40 = vmul.f32 %v2392_v54, %v3952_v16  ;;  %v1464_v57 = vpop.f32.mrb[29].mxu0 }
 0x444   : > { %v3985_v13 = vmul.f32 %v1464_v57, %v3960_v0 }
 0x445   : > { %v3994_v54 = vmul.f32 %v3974_v40, %v3971_v32 }
 0x446   : > { %v3998_v30 = vmul.f32 %v3985_v13, %v3977_v21  ;;  %v2395_v4 = vpop.f32.mrb[30].mxu0 }
 0x447   : > { %v4004_v57 = vmul.f32 %v2395_v4, %v3982_v15  ;;  %v1474_v63 = vpop.f32.mrb[31].mxu0 }
 0x448   : > { %v4010_v61 = vmul.f32 %v1474_v63, %v3990_v31 }
 0x449   : > { %v4014_v3 = vmul.f32 %v4004_v57, %v4001_v33 }
 0x44a   : > { %v4018_v10 = vmul.f32 %v4010_v61, %v4007_v55  ;;  %v2398_v34 = vpop.f32.mrb[32].mxu0 }
 0x44b   : > { %v4021_v29 = vmul.f32 %v2398_v34, %v3903_v11  ;;  %v1484_v4 = vpop.f32.mrb[33].mxu0 }
 0x44c   : > { %v4024_v62 = vmul.f32 %v1484_v4, %v3908_v53 }
 0x44e   : > { %v2401_v47 = vpop.f32.mrb[34].mxu0 }
 0x44f   : > { %v4031_v50 = vmul.f32 %v2401_v47, %v3922_v5  ;;  %v1494_v42 = vpop.f32.mrb[35].mxu0 }
 0x450   : > { %v4034_v43 = vmul.f32 %v1494_v42, %v3930_v8  ;;  %v1612_v42 = vmul.f32 %v3911_v58, %v3911_v58 }
 0x452   : > { %v2404_v60 = vpop.f32.mrb[36].mxu0 }
 0x453   : > { %v4041_v63 = vmul.f32 %v2404_v60, %v3952_v16  ;;  %v1504_v20 = vpop.f32.mrb[37].mxu0 }
 0x454   : > { %v4044_v1 = vmul.f32 %v1504_v20, %v3960_v0  ;;  %v1614_v20 = vmul.f32 %v3941_v22, %v3941_v22 }
 0x456   : > { %v2407_v19 = vpop.f32.mrb[38].mxu0 }
 0x457   : > { %v4051_v34 = vmul.f32 %v2407_v19, %v3982_v15  ;;  %v1514_v25 = vpop.f32.mrb[39].mxu0 }
 0x458   : > { %v4054_v4 = vmul.f32 %v1514_v25, %v3990_v31 }
 0x45a   : > { %v2410_v59 = vpop.f32.mrb[40].mxu0 }
 0x45b   : > { %v1604_v47 = vmul.f32 %v2410_v59, %v3903_v11  ;;  %v1524_v27 = vpop.f32.mrb[41].mxu0 }
 0x45c   : > { %v1603_v19 = vmul.f32 %v1524_v27, %v3908_v53 }
 0x45d   : > { %v1620_v25 = vsub.f32 %v1604_v47, %v1612_v42 }
 0x45e   : > { %v1619_v38 = vsub.f32 %v1603_v19, %v1611_v35  ;;  %v2413_v36 = vpop.f32.mrb[42].mxu0 }
 0x45f   : > { %v1628_v23 = vadd.f32 0.001, %v1620_v25  ;;  %v1606_v60 = vmul.f32 %v2413_v36, %v3922_v5  ;;  %v1534_v44 = vpop.f32.mrb[43].mxu0  ;;  %v1616_v36 = vmul.f32 %v3971_v32, %v3971_v32 }
 0x460   : > { %v1627_v59 = vadd.f32 0.001, %v1619_v38  ;;  %v1605_v11 = vmul.f32 %v1534_v44, %v3930_v8  ;;  %v1615_v44 = vmul.f32 %v3977_v21, %v3977_v21 }
 0x461   : > { %2681 = vrcp.f32 %v1628_v23  ;;  %v1622_v27 = vsub.f32 %v1606_v60, %v1614_v20  ;;  %v1618_v20 = vmul.f32 %v4001_v33, %v4001_v33 }
 0x462   : > { %2683 = vrcp.f32 %v1627_v59  ;;  %v1621_v53 = vsub.f32 %v1605_v11, %v1613_v14  ;;  %v2416_v47 = vpop.f32.mrb[44].mxu0 }
 0x463   : > { %v1630_v35 = vadd.f32 0.001, %v1622_v27  ;;  %v1608_v42 = vmul.f32 %v2416_v47, %v3952_v16  ;;  %v1544_v19 = vpop.f32.mrb[45].mxu0  ;;  %v1617_v47 = vmul.f32 %v4007_v55, %v4007_v55 }
 0x464   : > { %v1629_v25 = vadd.f32 0.001, %v1621_v53  ;;  %v1607_v38 = vmul.f32 %v1544_v19, %v3960_v0 }
 0x465   : > { %2685 = vrcp.f32 %v1630_v35  ;;  %v1624_v8 = vsub.f32 %v1608_v42, %v1616_v36 }
 0x466   : > { %2687 = vrcp.f32 %v1629_v25  ;;  %v1623_v23 = vsub.f32 %v1607_v38, %v1615_v44  ;;  %v2419_v60 = vpop.f32.mrb[46].mxu0  ;;  %v4532_v38 = vsub.f32 %v4021_v29, %v3934_v46 }
 0x467   : > { %v1632_v14 = vadd.f32 0.001, %v1624_v8  ;;  %v1610_v11 = vmul.f32 %v2419_v60, %v3982_v15  ;;  %v1554_v59 = vpop.f32.mrb[47].mxu0 }
 0x468   : > { %v1631_v27 = vadd.f32 0.001, %v1623_v23  ;;  %v1609_v53 = vmul.f32 %v1554_v59, %v3990_v31  ;;  %v4533_v23 = vsub.f32 %v4024_v62, %v3938_v18  ;;  %v4535_v62 = vsub.f32 %v4034_v43, %v3968_v28 }
 0x469   : > { %2689 = vrcp.f32 %v1632_v14  ;;  %v1626_v19 = vsub.f32 %v1610_v11, %v1618_v20  ;;  %v4537_v43 = vsub.f32 %v4044_v1, %v3998_v30  ;;  %v4539_v30 = vsub.f32 %v4054_v4, %v4018_v10  ;;  %v4543_v10 = vld [vmem:[#allocation35_spill] sm:$0xff] }
 0x46a   : > { %2691 = vrcp.f32 %v1631_v27  ;;  %v1625_v35 = vsub.f32 %v1609_v53, %v1617_v47  ;;  %v4534_v47 = vsub.f32 %v4031_v50, %v3964_v24  ;;  %v4536_v50 = vsub.f32 %v4041_v63, %v3994_v54 }
 0x46b   : > { %v2682_v42 = vpop.eup %2681  ;;  %v1634_v36 = vadd.f32 0.001, %v1626_v19  ;;  %v4538_v54 = vsub.f32 %v4051_v34, %v4014_v3 }
 0x46c   : > { %v2684_v25 = vpop.eup %2683  ;;  %v1633_v8 = vadd.f32 0.001, %v1625_v35  ;;  %v1638_v44 = vmul.f32 %v2682_v42, %v4532_v38 }
 0x46d   : > { %2693 = vrcp.f32 %v1634_v36  ;;  %v1636_v60 = vmul.f32 %v2684_v25, %v4533_v23 }
 0x46e   : > { %2695 = vrcp.f32 %v1633_v8  ;;  %v1652_v59 = vmul.f32 %v1638_v44, %v3911_v58 }
 0x46f   : > { %v2686_v14 = vpop.eup %2685  ;;  %v1651_v11 = vmul.f32 %v1636_v60, %v3917_v26  ;;  %v2542_v20 = vpack.c.bf16 %v1638_v44, %v1636_v60 }
 0x470   : > { %v2688_v27 = vpop.eup %2687  ;;  %v1660_v53 = vsub.f32 %v3914_v12, %v1652_v59  ;;  %v1642_v29 = vmul.f32 %v2686_v14, %v4534_v47 }
 0x471   : > { %v1659_v46 = vsub.f32 %v3925_v48, %v1651_v11  ;;  %v1640_v18 = vmul.f32 %v2688_v27, %v4535_v62 }
 0x472   : > { %v1654_v19 = vmul.f32 %v1642_v29, %v3941_v22 }
 0x473   : > { %v2690_v58 = vpop.eup %2689  ;;  %v2540_v35 = vpack.c.bf16 %v1660_v53, %v1659_v46  ;;  %v1653_v26 = vmul.f32 %v1640_v18, %v3947_v52  ;;  %v2546_v42 = vpack.c.bf16 %v1642_v29, %v1640_v18 }
 0x474   : > { %v2692_v36 = vpop.eup %2691  ;;  %v1662_v12 = vsub.f32 %v3944_v45, %v1654_v19  ;;  %v1646_v24 = vmul.f32 %v2690_v58, %v4536_v50 }
 0x475   : > { %2541 = vmatprep.subr.bf16.mxu1 %v2540_v35  ;;  %v1661_v48 = vsub.f32 %v3955_v9, %v1653_v26  ;;  %v1644_v28 = vmul.f32 %v2692_v36, %v4537_v43  ;;  %v4547_v35 = vld [vmem:[#allocation37_spill] sm:$0xff]  ;;  %v4548_v36 = vld [vmem:[#allocation38_spill] sm:$0xff] }
 0x476   : > { %2543 = vmatpush1.bf16.msra.mxu1 %v2542_v20  ;;  %v1656_v22 = vmul.f32 %v1646_v24, %v3971_v32 }
 0x477   : > { %v2694_v25 = vpop.eup %2693  ;;  %v2544_v52 = vpack.c.bf16 %v1662_v12, %v1661_v48  ;;  %v1655_v8 = vmul.f32 %v1644_v28, %v3977_v21  ;;  %v2550_v38 = vpack.c.bf16 %v1646_v24, %v1644_v28  ;;  %v4549_v24 = vld [vmem:[#allocation51_spill] sm:$0xff] }
 0x478   : > { %v2696_v45 = vpop.eup %2695  ;;  %v1664_v44 = vsub.f32 %v3974_v40, %v1656_v22  ;;  %v1650_v63 = vmul.f32 %v2694_v25, %v4538_v54  ;;  %v4550_v25 = vld [vmem:[#allocation50_spill] sm:$0xff] }
 0x479   : > { %2545 = vmatprep.subr.bf16.mxu1 %v2544_v52  ;;  %v1663_v9 = vsub.f32 %v3985_v13, %v1655_v8  ;;  %v1648_v1 = vmul.f32 %v2696_v45, %v4539_v30  ;;  %v4544_v13 = vld [vmem:[#allocation10_spill] sm:$0xff]  ;;  %v4551_v8 = vld [vmem:[#allocation52_spill] sm:$0xff] }
 0x47a   : > { %2547 = vmatpush1.bf16.msra.mxu1 %v2546_v42  ;;  %v1658_v32 = vmul.f32 %v1650_v63, %v4001_v33  ;;  %v4542_v33 = vld [vmem:[#allocation11_spill] sm:$0xff] }
 0x47b   : > { %v2548_v23 = vpack.c.bf16 %v1664_v44, %v1663_v9  ;;  %v1657_v21 = vmul.f32 %v1648_v1, %v4007_v55  ;;  %v2554_v60 = vpack.c.bf16 %v1650_v63, %v1648_v1  ;;  %v4540_v55 = vld [vmem:[#allocation8_spill] sm:$0xff] }
 0x47c   : > { %v1666_v40 = vsub.f32 %v4004_v57, %v1658_v32  ;;  %v4552_v9 = vld [vmem:[#allocation12_spill] sm:$0xff] }
 0x47d   : > { %2549 = vmatprep.subr.bf16.mxu1 %v2548_v23  ;;  %v1665_v3 = vsub.f32 %v4010_v61, %v1657_v21  ;;  %v4541_v61 = vld [vmem:[#allocation20_spill] sm:$0xff]  ;;  %v4553_v21 = vld [vmem:[#allocation13_spill] sm:$0xff] }
 0x47e   : > { %2551 = vmatpush1.bf16.msra.mxu1 %v2550_v38 }
 0x47f   : > { %v2552_v34 = vpack.c.bf16 %v1666_v40, %v1665_v3 }
 0x481   : > { %2553 = vmatprep.subr.bf16.mxu1 %v2552_v34  ;;  %v4554_v34 = vld [vmem:[#allocation47_spill] sm:$0xff] }
 0x482   : > { %2555 = vmatpush1.bf16.msra.mxu1 %v2554_v60 }
 0x483   : > { %2557 = vmatprep.subr.bf16.mxu1 %v3739_v56 }
 0x485   : > { %2232 = vmatmul.mubr.msk.f32.vlgmr.msra.gmra.mrb[16].mxu1 %vm1087_vm12, %v3750_v41  ;;  %v4546_v41 = vld [vmem:[#allocation24_spill] sm:$0xff] }
 0x486   : > { %1737 = vmatprep.mubr.f32.mxu1 %v4521_v17  ;;  %2559 = vmatpush3.bf16.msra.mxu1 %v3739_v56  ;;  %v4545_v56 = vld [vmem:[#allocation25_spill] sm:$0xff] }
 0x487   : > { %2561 = vmatprep.subr.bf16.mxu1 %v3753_v6 }
 0x489   : > { %2233 = vmatmul.mubr.msk.f32.gmra.mrb[18].mxu1 %vm1087_vm12, %v3767_v49 }
 0x48a   : > { %1743 = vmatprep.mubr.f32.mxu1 %v4521_v17  ;;  %2563 = vmatpush3.bf16.msra.mxu1 %v3753_v6 }
 0x48b   : > { %2565 = vmatprep.subr.bf16.mxu1 %v3774_v7 }
 0x48d   : > { %2234 = vmatmul.mubr.msk.f32.gmra.mrb[20].mxu1 %vm1087_vm12, %v3788_v37 }
 0x48e   : > { %1749 = vmatprep.mubr.f32.mxu1 %v4521_v17  ;;  %2567 = vmatpush3.bf16.msra.mxu1 %v3774_v7 }
 0x48f   : > { %2569 = vmatprep.subr.bf16.mxu1 %v3795_v51 }
 0x491   : > { %2235 = vmatmul.mubr.msk.f32.gmra.mrb[22].mxu1 %vm1087_vm12, %v3809_v39 }
 0x492   : > { %1755 = vmatprep.mubr.f32.mxu1 %v4521_v17  ;;  %2571 = vmatpush3.bf16.msra.mxu1 %v3795_v51 }
 0x493   : > { %2573 = vmatprep.subr.bf16.mxu1 %v3816_v2 }
 0x495   : > { %2236 = vmatmul.mubr.msk.f32.gmra.mrb[24].mxu1 %vm1087_vm12, %v4540_v55  ;;  %v4555_v55 = vld [vmem:[#allocation15_spill] sm:$0xff] }
 0x496   : > { %1761 = vmatprep.mubr.f32.mxu1 %v4521_v17  ;;  %2575 = vmatpush3.bf16.msra.mxu1 %v3816_v2 }
 0x497   : > { %2577 = vmatprep.subr.bf16.mxu1 %v4541_v61 }
 0x499   : > { %2237 = vmatmul.mubr.msk.f32.gmra.mrb[26].mxu1 %vm1087_vm12, %v4542_v33 }
 0x49a   : > { %1767 = vmatprep.mubr.f32.mxu1 %v4521_v17  ;;  %2579 = vmatpush3.bf16.msra.mxu1 %v4541_v61  ;;  %v1975_v61 = vsub.f32 %v4555_v55, %v4554_v34 }
 0x49b   : > { %2581 = vmatprep.subr.bf16.mxu1 %v4543_v10 }
 0x49d   : > { %2238 = vmatmul.mubr.msk.f32.gmra.mrb[28].mxu1 %vm1087_vm12, %v4544_v13 }
 0x49e   : > { %1773 = vmatprep.mubr.f32.mxu1 %v4521_v17  ;;  %2583 = vmatpush3.bf16.msra.mxu1 %v4543_v10  ;;  %v4556_v10 = vld [vmem:[#allocation14_spill] sm:$0xff] }
 0x49f   : > { %2585 = vmatprep.subr.bf16.mxu1 %v4545_v56  ;;  %v1974_v13 = vsub.f32 %v4556_v10, %v4554_v34 }
 0x4a1   : > { %2239 = vmatmul.mubr.msk.f32.gmra.mrb[30].mxu1 %vm1087_vm12, %v4546_v41 }
 0x4a2   : > { %2587 = vmatpush3.bf16.msra.mxu1 %v4545_v56  ;;  %v4557_v56 = vld [vmem:[#allocation17_spill] sm:$0xff] }
 0x4a3   : > { %v1977_v41 = vsub.f32 %v4557_v56, %v4554_v34 }
 0x558   : > { %v1733_v6 = vpop.f32.mrb[16].mxu1 }
 0x559   : > { %v1735_v49 = vpop.f32.mrb[17].mxu1  ;;  %2452 = vmatprep.mubr.f32.mxu1 %v1733_v6  ;;  %v4558_v6 = vld [vmem:[#allocation16_spill] sm:$0xff] }
 0x55c   : > { %v1739_v7 = vpop.f32.mrb[18].mxu1 }
 0x55d   : > { %v1741_v37 = vpop.f32.mrb[19].mxu1  ;;  %2453 = vmatmul.mubr.f32.vlgmr.msra.gmra.mrb[32].mxu1 %v1739_v7 }
 0x560   : > { %v1745_v51 = vpop.f32.mrb[20].mxu1 }
 0x561   : > { %v1747_v39 = vpop.f32.mrb[21].mxu1  ;;  %2455 = vmatprep.mubr.f32.mxu1 %v1745_v51 }
 0x564   : > { %v1751_v2 = vpop.f32.mrb[22].mxu1 }
 0x565   : > { %v1753_v17 = vpop.f32.mrb[23].mxu1  ;;  %2456 = vmatmul.mubr.f32.gmra.mrb[34].mxu1 %v1751_v2 }
 0x568   : > { %v1757_v57 = vpop.f32.mrb[24].mxu1 }
 0x569   : > { %v1759_v4 = vpop.f32.mrb[25].mxu1  ;;  %2458 = vmatprep.mubr.f32.mxu1 %v1757_v57  ;;  %v4560_v57 = vld [vmem:[#allocation26_spill] sm:$0xff] }
 0x56c   : > { %v1763_v59 = vpop.f32.mrb[26].mxu1 }
 0x56d   : > { %v1765_v14 = vpop.f32.mrb[27].mxu1  ;;  %2459 = vmatmul.mubr.f32.gmra.mrb[36].mxu1 %v1763_v59 }
 0x570   : > { %v1769_v11 = vpop.f32.mrb[28].mxu1 }
 0x571   : > { %v1771_v20 = vpop.f32.mrb[29].mxu1  ;;  %2461 = vmatprep.mubr.f32.mxu1 %v1769_v11  ;;  %v4561_v11 = vld [vmem:[#allocation48_spill] sm:$0xff] }
 0x574   : > { %v1775_v27 = vpop.f32.mrb[30].mxu1 }
 0x575   : > { %2462 = vmatmul.mubr.f32.gmra.mrb[38].mxu1 %v1775_v27  ;;  %v1777_v53 = vpop.f32.mrb[31].mxu1 }
 0x576   : > { %2464 = vmatprep.mubr.f32.mxu1 %v1735_v49  ;;  %v1976_v49 = vsub.f32 %v4558_v6, %v4554_v34 }
 0x579   : > { %2465 = vmatmul.mubr.f32.gmra.mrb[40].mxu1 %v1741_v37  ;;  %v4559_v37 = vld [vmem:[#allocation27_spill] sm:$0xff] }
 0x57a   : > { %2467 = vmatprep.mubr.f32.mxu1 %v1747_v39 }
 0x57d   : > { %2468 = vmatmul.mubr.f32.gmra.mrb[42].mxu1 %v1753_v17 }
 0x57e   : > { %2470 = vmatprep.mubr.f32.mxu1 %v1759_v4 }
 0x581   : > { %2471 = vmatmul.mubr.f32.gmra.mrb[44].mxu1 %v1765_v14 }
 0x582   : > { %2473 = vmatprep.mubr.f32.mxu1 %v1771_v20  ;;  %v4562_v20 = vld [vmem:[#allocation29_spill] sm:$0xff] }
 0x583   : > { %v2008_v27 = vsub.f32 %v4562_v20, %v4561_v11 }
 0x585   : > { %2474 = vmatmul.mubr.f32.gmra.mrb[46].mxu1 %v1777_v53 }
 0x630   : > { %v2454_v47 = vpop.f32.mrb[32].mxu1 }
 0x631   : > { %v1846_v29 = vpop.f32.mrb[33].mxu1  ;;  %v1926_v26 = vmul.f32 %v2454_v47, %v4547_v35  ;;  %v4563_v47 = vld [vmem:[#allocation19_spill] sm:$0xff] }
 0x632   : > { %v1925_v12 = vmul.f32 %v1846_v29, %v4548_v36  ;;  %v1979_v29 = vsub.f32 %v4563_v47, %v4554_v34  ;;  %v4582_v47 = vld [vmem:[#allocation34_spill] sm:$0xff] }
 0x633   : > { %v1934_v48 = vmul.f32 %v1926_v26, %v4549_v24 }
 0x634   : > { %v1933_v52 = vmul.f32 %v1925_v12, %v4550_v25  ;;  %v4571_v25 = vld [vmem:[#allocation49_spill] sm:$0xff] }
 0x638   : > { %v2457_v46 = vpop.f32.mrb[34].mxu1 }
 0x639   : > { %v1856_v62 = vpop.f32.mrb[35].mxu1  ;;  %v1928_v43 = vmul.f32 %v2457_v46, %v3922_v5  ;;  %v4564_v46 = vld [vmem:[#allocation18_spill] sm:$0xff] }
 0x63a   : > { %v1927_v38 = vmul.f32 %v1856_v62, %v4551_v8  ;;  %v4565_v62 = vld [vmem:[#allocation28_spill] sm:$0xff] }
 0x63b   : > { %v1936_v30 = vmul.f32 %v1928_v43, %v4552_v9 }
 0x63c   : > { %v1935_v60 = vmul.f32 %v1927_v38, %v4553_v21 }
 0x640   : > { %v2460_v18 = vpop.f32.mrb[36].mxu1 }
 0x641   : > { %v1866_v19 = vpop.f32.mrb[37].mxu1  ;;  %v1930_v1 = vmul.f32 %v2460_v18, %v3952_v16  ;;  %v2007_v18 = vsub.f32 %v4565_v62, %v4561_v11 }
 0x642   : > { %v1929_v40 = vmul.f32 %v1866_v19, %v3960_v0  ;;  %v4566_v19 = vld [vmem:[#allocation31_spill] sm:$0xff] }
 0x643   : > { %v1938_v51 = vmul.f32 %v1930_v1, %v4559_v37 }
 0x644   : > { %v1937_v4 = vmul.f32 %v1929_v40, %v4560_v57 }
 0x648   : > { %v2463_v58 = vpop.f32.mrb[38].mxu1 }
 0x649   : > { %v1876_v42 = vpop.f32.mrb[39].mxu1  ;;  %v1932_v39 = vmul.f32 %v2463_v58, %v3982_v15  ;;  %v2010_v58 = vsub.f32 %v4566_v19, %v4561_v11 }
 0x64a   : > { %v1931_v59 = vmul.f32 %v1876_v42, %v3990_v31 }
 0x64c   : > { %v2466_v50 = vpop.f32.mrb[40].mxu1 }
 0x64d   : > { %v1942_v28 = vmul.f32 %v2466_v50, %v4547_v35  ;;  %v1886_v22 = vpop.f32.mrb[41].mxu1  ;;  %v4567_v35 = vld [vmem:[#allocation30_spill] sm:$0xff]  ;;  %v4569_v50 = vld [vmem:[#allocation33_spill] sm:$0xff] }
 0x64e   : > { %v1941_v45 = vmul.f32 %v1886_v22, %v4548_v36  ;;  %v2009_v26 = vsub.f32 %v4567_v35, %v4561_v11  ;;  %v4568_v36 = vld [vmem:[#allocation23_spill] sm:$0xff]  ;;  %v2012_v24 = vsub.f32 %v4569_v50, %v4561_v11 }
 0x64f   : > { %v1950_v44 = vadd.f32 %v1942_v28, %v1934_v48  ;;  %v1940_v12 = vmul.f32 %v1932_v39, %v4568_v36  ;;  %v4570_v28 = vld [vmem:[#allocation9_spill] sm:$0xff] }
 0x650   : > { %v1949_v54 = vadd.f32 %v1941_v45, %v1933_v52  ;;  %v2469_v63 = vpop.f32.mrb[42].mxu1  ;;  %v1939_v22 = vmul.f32 %v1931_v59, %v4570_v28  ;;  %v4572_v52 = vld [vmem:[#allocation40_spill] sm:$0xff]  ;;  %v4581_v28 = vld [vmem:[#allocation21_spill] sm:$0xff] }
 0x651   : > { %2697 = vrcp.f32 %v1950_v44  ;;  %v1944_v32 = vmul.f32 %v2469_v63, %v3922_v5  ;;  %v1896_v23 = vpop.f32.mrb[43].mxu1  ;;  %v4573_v44 = vld [vmem:[#allocation39_spill] sm:$0xff]  ;;  %v4574_v63 = vld [vmem:[#allocation42_spill] sm:$0xff] }
 0x652   : > { %2699 = vrcp.f32 %v1949_v54  ;;  %v1943_v3 = vmul.f32 %v1896_v23, %v4551_v8  ;;  %v2042_v8 = vsub.f32 %v4572_v52, %v4571_v25  ;;  %v2041_v54 = vsub.f32 %v4573_v44, %v4571_v25 }
 0x653   : > { %v1952_v33 = vadd.f32 %v1944_v32, %v1936_v30  ;;  %v2044_v9 = vsub.f32 %v4574_v63, %v4571_v25  ;;  %v4575_v30 = vld [vmem:[#allocation32_spill] sm:$0xff] }
 0x654   : > { %v1951_v5 = vadd.f32 %v1943_v3, %v1935_v60  ;;  %v2472_v7 = vpop.f32.mrb[44].mxu1  ;;  %v2011_v1 = vsub.f32 %v4575_v30, %v4561_v11 }
 0x655   : > { %2701 = vrcp.f32 %v1952_v33  ;;  %v1946_v2 = vmul.f32 %v2472_v7, %v3952_v16  ;;  %v1906_v17 = vpop.f32.mrb[45].mxu1  ;;  %v1978_v16 = vsub.f32 %v4564_v46, %v4554_v34 }
 0x656   : > { %2703 = vrcp.f32 %v1951_v5  ;;  %v1945_v14 = vmul.f32 %v1906_v17, %v3960_v0 }
 0x657   : > { %v1954_v53 = vadd.f32 %v1946_v2, %v1938_v51  ;;  %v4576_v51 = vld [vmem:[#allocation41_spill] sm:$0xff] }
 0x658   : > { %v1953_v0 = vadd.f32 %v1945_v14, %v1937_v4  ;;  %v2475_v42 = vpop.f32.mrb[46].mxu1  ;;  %v4577_v4 = vld [vmem:[#allocation22_spill] sm:$0xff] }
 0x659   : > { %2705 = vrcp.f32 %v1954_v53  ;;  %v1948_v48 = vmul.f32 %v2475_v42, %v3982_v15  ;;  %v1916_v43 = vpop.f32.mrb[47].mxu1  ;;  %v1981_v59 = vsub.f32 %v4577_v4, %v4554_v34  ;;  %v4578_v53 = vld [vmem:[#allocation36_spill] sm:$0xff]  ;;  %v4580_v42 = vld [vmem:[#allocation43_spill] sm:$0xff] }
 0x65a   : > { %2707 = vrcp.f32 %v1953_v0  ;;  %v1947_v38 = vmul.f32 %v1916_v43, %v3990_v31  ;;  %v2045_v36 = vsub.f32 %v4580_v42, %v4571_v25 }
 0x65b   : > { %v2698_v45 = vpop.eup %2697  ;;  %v1956_v15 = vadd.f32 %v1948_v48, %v1940_v12 }
 0x65c   : > { %v2700_v32 = vpop.eup %2699  ;;  %v1983_v23 = vmul.f32 %v2698_v45, %v1975_v61  ;;  %v2016_v21 = vmul.f32 %v2698_v45, %v2008_v27  ;;  %v2050_v60 = vmul.f32 %v2698_v45, %v2042_v8  ;;  %v1955_v40 = vadd.f32 %v1947_v38, %v1939_v22 }
 0x65d   : > { %v1982_v3 = vmul.f32 %v2700_v32, %v1974_v13  ;;  %v2015_v55 = vmul.f32 %v2700_v32, %v2007_v18  ;;  %v2049_v31 = vmul.f32 %v2700_v32, %v2041_v54  ;;  %2709 = vrcp.f32 %v1956_v15  ;;  %v4583_v54 = vld [vmem:[#allocation46_spill] sm:$0xff] }
 0x65e   : > { %v1991_v33 = vadd.f32 %v1983_v23, %v4554_v34  ;;  %v2024_v10 = vadd.f32 %v2016_v21, %v4561_v11  ;;  %v2058_v56 = vadd.f32 %v2050_v60, %v4571_v25  ;;  %2711 = vrcp.f32 %v1955_v40 }
 0x65f   : > { %v2702_v5 = vpop.eup %2701  ;;  %v1990_v7 = vadd.f32 %v1982_v3, %v4554_v34  ;;  %v2023_v61 = vadd.f32 %v2015_v55, %v4561_v11  ;;  %v2057_v37 = vadd.f32 %v2049_v31, %v4571_v25  ;;  %v2043_v13 = vsub.f32 %v4576_v51, %v4571_v25 }
 0x660   : > { %v2704_v39 = vpop.eup %2703  ;;  %1999 = vst [vmem:[%s4231_s19 + $0x8] sm:$0xff] %v1991_v33  ;;  %2241 = vst [vmem:[%s4231_s19 + $0x48] sm:$0xff] %v2024_v10  ;;  %v1985_v2 = vmul.f32 %v2702_v5, %v1977_v41  ;;  %v2018_v17 = vmul.f32 %v2702_v5, %v2010_v58  ;;  %v2052_v57 = vmul.f32 %v2702_v5, %v2044_v9  ;;  %v4579_v58 = vld [vmem:[#allocation44_spill] sm:$0xff] }
 0x661   : > { %2249 = vst [vmem:[%s4231_s19 + $0x88] sm:$0xff] %v2058_v56  ;;  %1998 = vst [vmem:[%s4231_s19] sm:$0xff] %v1990_v7  ;;  %v1984_v14 = vmul.f32 %v2704_v39, %v1976_v49  ;;  %v2017_v20 = vmul.f32 %v2704_v39, %v2009_v26  ;;  %v2051_v27 = vmul.f32 %v2704_v39, %v2043_v13 }
 0x662   : > { %2240 = vst [vmem:[%s4231_s19 + $0x40] sm:$0xff] %v2023_v61  ;;  %2248 = vst [vmem:[%s4231_s19 + $0x80] sm:$0xff] %v2057_v37  ;;  %v2014_v41 = vsub.f32 %v4578_v53, %v4561_v11  ;;  %v1993_v62 = vadd.f32 %v1985_v2, %v4554_v34  ;;  %v2026_v18 = vadd.f32 %v2018_v17, %v4561_v11 }
 0x663   : > { %v2060_v19 = vadd.f32 %v2052_v57, %v4571_v25  ;;  %v2046_v35 = vsub.f32 %v4579_v58, %v4571_v25  ;;  %v2706_v6 = vpop.eup %2705  ;;  %v1992_v49 = vadd.f32 %v1984_v14, %v4554_v34  ;;  %v2025_v26 = vadd.f32 %v2017_v20, %v4561_v11 }
 0x664   : > { %v2059_v0 = vadd.f32 %v2051_v27, %v4571_v25  ;;  %v2708_v12 = vpop.eup %2707  ;;  %2001 = vst [vmem:[%s4231_s19 + $0x18] sm:$0xff] %v1993_v62  ;;  %2243 = vst [vmem:[%s4231_s19 + $0x58] sm:$0xff] %v2026_v18  ;;  %v1987_v50 = vmul.f32 %v2706_v6, %v1979_v29  ;;  %v2020_v48 = vmul.f32 %v2706_v6, %v2012_v24 }
 0x665   : > { %2251 = vst [vmem:[%s4231_s19 + $0x98] sm:$0xff] %v2060_v19  ;;  %v2054_v43 = vmul.f32 %v2706_v6, %v2046_v35  ;;  %v1980_v22 = vsub.f32 %v4581_v28, %v4554_v34  ;;  %2000 = vst [vmem:[%s4231_s19 + $0x10] sm:$0xff] %v1992_v49  ;;  %v1986_v52 = vmul.f32 %v2708_v12, %v1978_v16 }
 0x666   : > { %2242 = vst [vmem:[%s4231_s19 + $0x50] sm:$0xff] %v2025_v26  ;;  %2250 = vst [vmem:[%s4231_s19 + $0x90] sm:$0xff] %v2059_v0  ;;  %v2019_v8 = vmul.f32 %v2708_v12, %v2011_v1  ;;  %v2053_v38 = vmul.f32 %v2708_v12, %v2045_v36  ;;  %v2013_v29 = vsub.f32 %v4582_v47, %v4561_v11  ;;  %v4584_v1 = vld [vmem:[#allocation45_spill] sm:$0xff] }
 0x667   : > { %v1995_v24 = vadd.f32 %v1987_v50, %v4554_v34  ;;  %v2028_v45 = vadd.f32 %v2020_v48, %v4561_v11  ;;  %v2062_v44 = vadd.f32 %v2054_v43, %v4571_v25  ;;  %v2048_v63 = vsub.f32 %v4583_v54, %v4571_v25  ;;  %v2710_v46 = vpop.eup %2709 }
 0x668   : > { %v1994_v16 = vadd.f32 %v1986_v52, %v4554_v34  ;;  %v2027_v9 = vadd.f32 %v2019_v8, %v4561_v11  ;;  %v2061_v30 = vadd.f32 %v2053_v38, %v4571_v25  ;;  %v2047_v15 = vsub.f32 %v4584_v1, %v4571_v25  ;;  %v2712_v32 = vpop.eup %2711 }
 0x669   : > { %2003 = vst [vmem:[%s4231_s19 + $0x28] sm:$0xff] %v1995_v24  ;;  %2245 = vst [vmem:[%s4231_s19 + $0x68] sm:$0xff] %v2028_v45  ;;  %v1989_v23 = vmul.f32 %v2710_v46, %v1981_v59  ;;  %v2022_v21 = vmul.f32 %v2710_v46, %v2014_v41  ;;  %v2056_v60 = vmul.f32 %v2710_v46, %v2048_v63 }
 0x66a   : > { %2253 = vst [vmem:[%s4231_s19 + $0xa8] sm:$0xff] %v2062_v44  ;;  %2002 = vst [vmem:[%s4231_s19 + $0x20] sm:$0xff] %v1994_v16  ;;  %v1988_v40 = vmul.f32 %v2712_v32, %v1980_v22  ;;  %v2021_v3 = vmul.f32 %v2712_v32, %v2013_v29  ;;  %v2055_v55 = vmul.f32 %v2712_v32, %v2047_v15 }
 0x66b   : > { %2244 = vst [vmem:[%s4231_s19 + $0x60] sm:$0xff] %v2027_v9  ;;  %2252 = vst [vmem:[%s4231_s19 + $0xa0] sm:$0xff] %v2061_v30  ;;  %v1997_v31 = vadd.f32 %v1989_v23, %v4554_v34  ;;  %v2030_v33 = vadd.f32 %v2022_v21, %v4561_v11  ;;  %v2064_v10 = vadd.f32 %v2056_v60, %v4571_v25 }
 0x66c   : > { %v1996_v56 = vadd.f32 %v1988_v40, %v4554_v34  ;;  %v2029_v5 = vadd.f32 %v2021_v3, %v4561_v11  ;;  %v2063_v7 = vadd.f32 %v2055_v55, %v4571_v25 }
 0x66d   : > { %2005 = vst [vmem:[%s4231_s19 + $0x38] sm:$0xff] %v1997_v31  ;;  %2247 = vst [vmem:[%s4231_s19 + $0x78] sm:$0xff] %v2030_v33 }
 0x66e   : > { %2255 = vst [vmem:[%s4231_s19 + $0xb8] sm:$0xff] %v2064_v10  ;;  %2004 = vst [vmem:[%s4231_s19 + $0x30] sm:$0xff] %v1996_v56 }
 0x66f   : > { %2246 = vst [vmem:[%s4231_s19 + $0x70] sm:$0xff] %v2029_v5  ;;  %2254 = vst [vmem:[%s4231_s19 + $0xb0] sm:$0xff] %v2063_v7 }
 0x670   : > { %2741 = shalt.err (!%p2738_p2)
}
 0x671   : > { %s2742_s11 = scalar_lea.hbm %s4301_s29, 3072  ;;  %s2746_s0 = scalar_lea.hbm %s4358_s6, 6144 }
 0x672   : > { %p2743_p3 = scmp.ne.s32.totalorder %s4301_s29, %s2742_s11  ;;  %p2747_p8 = scmp.lt.u32.totalorder %s4301_s29, %s4358_s6 }
 0x673   : > { %p2748_p11 = scmp.lt.u32.totalorder %s2746_s0, %s2742_s11  ;;  %p2750_p10 = scmp.lt.u32.totalorder %s2742_s11, %s4301_s29 }
 0x674   : > { %p2744_p4 = pnand %p2743_p3, %p2879_p5 }
 0x675   : > { %p2749_p9 = por %p2748_p11, %p2747_p8 }
 0x676   : > { %p2745_p7 = pneg %p2744_p4 }
 0x677   : > { %p2751_p12 = por %p2750_p10, %p2749_p9 }
 0x679   : > { %p2752_p13 = pnand %p2751_p12, %p2745_p7 }
 0x67b   : > { %2755 = shalt.err (!%p2752_p13)
}
 0x67c   : > { %s2804_s18 = smov 128   ;;  %s2805_s19 = smov 8  }
 0x67d   : > { %2619 = dma.vmem_to_hbm [thread:$0]  (%p2879_p5), %s4293_s26, 3072, %s4301_s29, %s4311_s9, %s2804_s18, %s2804_s18, %s2805_s19  }
 0x67e PF: > { %p2631_p0 = scmp.ge.s32.totalorder %s2794_s24, 2  ;;  %s2103_s20 = sand.u32 1, %s2782_s21  }
 0x67f   : > { %s2104_s25 = scalar_lea.sflag [#allocation3], %s2103_s20 }
 0x680   : > { %p2626_p1 = pnand %p2631_p0, %p2883_p6 }
 0x682   : > { %2777 = dma.done.wait (!%p2626_p1), %s2104_s25, 3072  }
 0x683   : > { %2779 = vsyncadd (!%p2626_p1), %s2104_s25, 4294964224  ;;  %p17_p2 = scmp.ge.s32.totalorder %s2866_s27, 4   ;;  %s4585_s21 = smov %s2786_s22 }
 0x684   : > { %s4586_s22 = smov %s2790_s23  ;;  %s4587_s23 = smov %s2877_s30 }
 0x685   : > { %s4588_s24 = smov %s2866_s27  ;;  %19 = sbr.rel (!%p17_p2) target bundleno = 7 (0x7), region = 91 }
 0x68c   :  { %2109 = vsyncpa [#allocation3], 1 }
 0x68d   :  { %2111 = vsyncpa [#allocation3 + $0x1], 1 }
 0x68e   :  { %2112 = vsyncpa [#allocation4], 1 }
 0x68f   :  { %2114 = vsyncpa [#allocation4 + $0x1], 1 }

</bundles_post_ra>
